<compile_context>
chip_gen: v6e
topology: v6e:2x2x1
jax: 0.10.0
libtpu: 0.0.40
codegen_flags: <defaults>
</compile_context>

<pallas_src>
import math
import functools

import jax
import jax.numpy as jnp
from jax.experimental import pallas as pl
from jax.experimental.pallas import tpu as pltpu

EPS = 1e-5
LANE = 128
_SMALL_M = 16    # GEMMs with <= this many rows -> plain XLA (launch overhead dominates)
_SMALL_R = 64    # BN-apply row counts below this -> plain XLA


def _round_up(x, m):
    return (x + m - 1) // m * m


# ---------------------------------------------------------------------------
# Per-generation GEMM tiling configuration.
# ---------------------------------------------------------------------------
@functools.lru_cache(maxsize=None)
def _gemm_config():
    """Returns (max_tm, max_tn, vmem_budget_bytes, vmem_limit_bytes_or_None)."""
    gen = None
    try:
        kind = jax.devices()[0].device_kind.lower()
        for g in (7, 6, 5, 4, 3, 2):
            if ("v%d" % g) in kind or ("tpu%d" % g) in kind:
                gen = g
                break
    except Exception:
        gen = None
    if gen == 5:
        # v5e: 128x128 MXU, most HBM-starved -> 128-wide tiles, modest VMEM.
        return 128, 128, 24 * 2**20, 32 * 2**20
    if gen == 6:
        # v6e: 128 MiB VMEM -> 256x256 full-K-resident tiles.
        return 256, 256, 44 * 2**20, 64 * 2**20
    if gen is not None and gen >= 7:
        # v7x: only 64 MiB VMEM -> 128x256 full-K tiles, capped scoped limit.
        return 128, 256, 30 * 2**20, 40 * 2**20
    # Unknown / older generation: conservative tiles, default scoped limit.
    return 128, 128, 12 * 2**20, None


# ---------------------------------------------------------------------------
# Pallas tiled matmul (bf16 operands, f32 accumulator) with fused per-channel
# sum / sum-of-squares for BatchNorm statistics.
# ---------------------------------------------------------------------------
def _matmul_stats_kernel(a_ref, b_ref, o_ref, sum_ref, sq_ref, acc_ref):
    @pl.when(pl.program_id(2) == 0)
    def _():
        acc_ref[...] = jnp.zeros_like(acc_ref)

    acc_ref[...] += jnp.dot(a_ref[...], b_ref[...],
                            preferred_element_type=jnp.float32)

    @pl.when(pl.program_id(2) == pl.num_programs(2) - 1)
    def _():
        acc = acc_ref[...]
        o_ref[...] = acc.astype(o_ref.dtype)
        # Fused BN statistics: the conv-output tile is already resident in
        # VMEM, so the per-channel reductions cost no extra HBM pass.
        sum_ref[...] = jnp.sum(acc, axis=0, keepdims=True)[None]
        sq_ref[...] = jnp.sum(acc * acc, axis=0, keepdims=True)[None]


def _pick_mn_tile(dim, max_tile):
    if dim <= max_tile:
        return dim, dim                        # full-dim block is always legal
    for t in (max_tile, 128):
        if dim % t == 0:
            return t, dim
    return 128, _round_up(dim, 128)


def pallas_matmul_stats(a, b):
    """a:(M,K) x b:(K,N) -> (out bf16 (M,N), col_sum f32 (N,), col_sumsq f32 (N,)).

    bf16 MXU operands, f32 accumulation.  N must be a multiple of 128 (the
    caller pads the weight matrix) so all output stores are lane-dense."""
    M, K = a.shape
    K2, N = b.shape
    assert K == K2 and N % LANE == 0

    a = a.astype(jnp.bfloat16)
    b = b.astype(jnp.bfloat16)

    max_tm, max_tn, budget, vmem_limit = _gemm_config()
    tm, Mp = _pick_mn_tile(M, max_tm)
    tn, Np = _pick_mn_tile(N, max_tn)
    Kp = _round_up(K, 128)

    def vmem_bytes(tm_, tn_, tk_):
        # double-buffered bf16 A & B tiles + f32 acc scratch
        # + double-buffered bf16 output tile + (tiny) stats outputs.
        return (2 * (tm_ * tk_ + tk_ * tn_) * 2
                + tm_ * tn_ * 4 + 2 * tm_ * tn_ * 2 + 4 * 2 * tn_ * 4)

    # Prefer full-K residency (weight block stays in VMEM across the whole
    # reduction); shrink the output tile before giving up on it.
    tk = Kp
    if vmem_bytes(tm, tn, tk) > budget and tn > 128 and Np % 128 == 0:
        tn = 128
    if vmem_bytes(tm, tn, tk) > budget and tm > 128 and Mp % 128 == 0:
        tm = 128
    if vmem_bytes(tm, tn, tk) > budget:
        # K-streamed fallback: largest tk that is a multiple of 128, divides
        # Kp (at most 127 elements of K padding) and fits the budget.
        nk = Kp // 128
        tk = 128
        for d in range(nk - 1, 1, -1):
            if nk % d == 0 and vmem_bytes(tm, tn, d * 128) <= budget:
                tk = d * 128
                break
        # TODO(synk): on v5e consider pipeline_mode=pl.Buffered(3) on the A/B
        # specs here if profiling shows exposed DMA on the K-streamed path.

    a_p = a if (Mp == M and Kp == K) else jnp.pad(a, ((0, Mp - M), (0, Kp - K)))
    b_p = b if (Kp == K) else jnp.pad(b, ((0, Kp - K), (0, 0)))

    n_m, n_n, n_k = Mp // tm, Np // tn, Kp // tk

    cp = dict(dimension_semantics=("parallel", "parallel", "arbitrary"))
    if vmem_limit is not None:
        cp["vmem_limit_bytes"] = vmem_limit

    # Grid order (j, i, k): with full-K residency (n_k == 1) the weight block
    # (k, j) is stationary while the M tiles sweep (weight-stationary).
    out, psum, psq = pl.pallas_call(
        _matmul_stats_kernel,
        out_shape=(jax.ShapeDtypeStruct((Mp, Np), jnp.bfloat16),
                   jax.ShapeDtypeStruct((n_m, 1, Np), jnp.float32),
                   jax.ShapeDtypeStruct((n_m, 1, Np), jnp.float32)),
        grid_spec=pltpu.PrefetchScalarGridSpec(
            num_scalar_prefetch=0,
            grid=(n_n, n_m, n_k),
            in_specs=[pl.BlockSpec((tm, tk), lambda j, i, k: (i, k)),
                      pl.BlockSpec((tk, tn), lambda j, i, k: (k, j))],
            out_specs=[pl.BlockSpec((tm, tn), lambda j, i, k: (i, j)),
                       pl.BlockSpec((1, 1, tn), lambda j, i, k: (i, 0, j)),
                       pl.BlockSpec((1, 1, tn), lambda j, i, k: (i, 0, j))],
            scratch_shapes=[pltpu.VMEM((tm, tn), jnp.float32)]),
        compiler_params=pltpu.CompilerParams(**cp),
    )(a_p, b_p)

    if Mp != M:
        out = out[:M]                       # padded rows are zero -> stats unaffected
    col_sum = jnp.sum(psum, axis=(0, 1))    # tiny (n_m, 1, N) reduction in XLA
    col_sq = jnp.sum(psq, axis=(0, 1))
    return out, col_sum, col_sq


# ---------------------------------------------------------------------------
# BatchNorm apply (training-mode batch statistics), row-tiled, lane-dense.
# Stats come fused from the GEMM; scale/shift are tiny per-channel vectors.
# ---------------------------------------------------------------------------
def _bn_apply_kernel(x_ref, scale_ref, shift_ref, o_ref, *, relu):
    y = x_ref[...].astype(jnp.float32) * scale_ref[...] + shift_ref[...]
    if relu:
        y = jnp.maximum(y, 0.0)
    o_ref[...] = y.astype(o_ref.dtype)


def _bn_apply_add_relu_kernel(x_ref, scale_ref, shift_ref, r_ref, o_ref):
    y = (x_ref[...].astype(jnp.float32) * scale_ref[...] + shift_ref[...]
         + r_ref[...].astype(jnp.float32))
    o_ref[...] = jnp.maximum(y, 0.0).astype(o_ref.dtype)


def _pick_row_tile(rows, max_rows=512):
    if rows <= max_rows:
        return rows
    for t in (max_rows, 256, 128, 64, 32, 16, 8):
        if rows % t == 0:
            return t
    # TODO(synk): pad ragged row counts (masked apply) instead of falling back
    # to a single whole-array block.
    return rows


def _bn_scale_shift(col_sum, col_sq, gamma, beta, n_rows, c_out, n_phys):
    inv_n = 1.0 / float(n_rows)
    mean = col_sum[:c_out] * inv_n
    var = jnp.maximum(col_sq[:c_out] * inv_n - mean * mean, 0.0)  # biased, torch BN fwd
    scale = gamma * jax.lax.rsqrt(var + EPS)
    shift = beta - mean * scale
    if n_phys > c_out:
        # Physical-only (padded) channels get scale = shift = 0 -> stay zero.
        scale = jnp.pad(scale, (0, n_phys - c_out))
        shift = jnp.pad(shift, (0, n_phys - c_out))
    return scale.reshape(1, n_phys), shift.reshape(1, n_phys)


def bn_apply(x2, scale, shift, relu=True, residual2=None):
    """x2: (R, C), scale/shift: (1, C) f32, optional residual (R, C). -> bf16 (R, C)."""
    R, C = x2.shape
    if R < _SMALL_R or C % LANE != 0:
        y = x2.astype(jnp.float32) * scale + shift
        if residual2 is not None:
            y = y + residual2.astype(jnp.float32)
        if relu:
            y = jnp.maximum(y, 0.0)
        return y.astype(jnp.bfloat16)

    x2 = x2.astype(jnp.bfloat16)
    tr = _pick_row_tile(R)
    if residual2 is None:
        return pl.pallas_call(
            functools.partial(_bn_apply_kernel, relu=relu),
            out_shape=jax.ShapeDtypeStruct((R, C), jnp.bfloat16),
            grid_spec=pltpu.PrefetchScalarGridSpec(
                num_scalar_prefetch=0,
                grid=(R // tr,),
                in_specs=[pl.BlockSpec((tr, C), lambda i: (i, 0)),
                          pl.BlockSpec((1, C), lambda i: (0, 0)),
                          pl.BlockSpec((1, C), lambda i: (0, 0))],
                out_specs=pl.BlockSpec((tr, C), lambda i: (i, 0))),
            compiler_params=pltpu.CompilerParams(
                dimension_semantics=("parallel",)),
        )(x2, scale, shift)
    return pl.pallas_call(
        _bn_apply_add_relu_kernel,
        out_shape=jax.ShapeDtypeStruct((R, C), jnp.bfloat16),
        grid_spec=pltpu.PrefetchScalarGridSpec(
            num_scalar_prefetch=0,
            grid=(R // tr,),
            in_specs=[pl.BlockSpec((tr, C), lambda i: (i, 0)),
                      pl.BlockSpec((1, C), lambda i: (0, 0)),
                      pl.BlockSpec((1, C), lambda i: (0, 0)),
                      pl.BlockSpec((tr, C), lambda i: (i, 0))],
            out_specs=pl.BlockSpec((tr, C), lambda i: (i, 0))),
        compiler_params=pltpu.CompilerParams(
            dimension_semantics=("parallel",)),
    )(x2, scale, shift, residual2.astype(jnp.bfloat16))


# ---------------------------------------------------------------------------
# Conv3d = im2col (bf16 patches, JAX glue) + Pallas GEMM w/ fused BN stats
# ---------------------------------------------------------------------------
def conv3d_gemm(x, c_in, w, stride, padding):
    """x: (B,D,H,W,Cphys) NDHWC, first `c_in` channels valid.
    w: (Cout,Cin,kd,kh,kw) torch layout.
    Returns (out2d (M,Nphys), (B,Od,Oh,Ow), M, Cout, Nphys, col_sum, col_sq)."""
    Cout, Cin, kd, kh, kw = w.shape
    assert Cin == c_in
    sd, sh, sw = stride
    pd, ph, pw = padding

    xl = x[..., :c_in]
    xp = jnp.pad(xl, ((0, 0), (pd, pd), (ph, ph), (pw, pw), (0, 0))).astype(jnp.bfloat16)
    B, D, H, W, _ = xp.shape
    Od = (D - kd) // sd + 1
    Oh = (H - kh) // sh + 1
    Ow = (W - kw) // sw + 1
    M = B * Od * Oh * Ow
    K = kd * kh * kw * c_in

    # TODO(synk): replace the materialized im2col patch matrix with a direct
    # tap-accumulation Pallas kernel (A blocks read straight from the padded
    # NDHWC activation) to remove the kd*kh*kw-times HBM expansion at large
    # spatial resolutions.
    patches = []
    for i in range(kd):
        for j in range(kh):
            for k in range(kw):
                patches.append(
                    xp[:, i:i + (Od - 1) * sd + 1:sd,
                          j:j + (Oh - 1) * sh + 1:sh,
                          k:k + (Ow - 1) * sw + 1:sw, :])
    a = jnp.stack(patches, axis=4).reshape(M, K)

    # Weight as a (K, Nphys) matrix; Cout zero-padded to a multiple of 128 so
    # the GEMM output tile and all downstream BN tiles are lane-dense.
    n_phys = _round_up(Cout, LANE)
    wm = jnp.transpose(w, (2, 3, 4, 1, 0)).reshape(K, Cout).astype(jnp.bfloat16)
    if n_phys > Cout:
        wm = jnp.pad(wm, ((0, 0), (0, n_phys - Cout)))

    if M <= _SMALL_M:
        # Tiny late-stage GEMM: pallas_call fixed overhead dominates.
        out = jnp.dot(a, wm, preferred_element_type=jnp.float32)
        col_sum = jnp.sum(out, axis=0)
        col_sq = jnp.sum(out * out, axis=0)
    else:
        out, col_sum, col_sq = pallas_matmul_stats(a, wm)
    return out, (B, Od, Oh, Ow), M, Cout, n_phys, col_sum, col_sq


def conv_bn_act(x, c_in, w, gamma, beta, stride, padding, residual=None, relu=True):
    """Conv3d -> BatchNorm (training-mode stats) -> (+residual) -> ReLU.
    Returns ((B,Od,Oh,Ow,Nphys) bf16 activation, logical channel count)."""
    out2d, dims, M, c_out, n_phys, col_sum, col_sq = conv3d_gemm(
        x, c_in, w, stride, padding)
    scale, shift = _bn_scale_shift(col_sum, col_sq, gamma, beta, M, c_out, n_phys)

    r2 = None
    if residual is not None:
        r = residual
        if r.shape[-1] < n_phys:
            r = jnp.pad(r, ((0, 0),) * 4 + ((0, n_phys - r.shape[-1]),))
        elif r.shape[-1] > n_phys:
            r = r[..., :n_phys]
        r2 = r.reshape(M, n_phys)

    out2d = bn_apply(out2d, scale, shift, relu=relu, residual2=r2)
    B, Od, Oh, Ow = dims
    return out2d.reshape(B, Od, Oh, Ow, n_phys), c_out


# ---------------------------------------------------------------------------
# Pooling / shortcut glue
# ---------------------------------------------------------------------------
# TODO(synk): max pooling uses lax.reduce_window glue rather than a dedicated
# Pallas kernel (negligible fraction of the FLOPs / bytes).
def maxpool3d(x, ksize=3, stride=2, pad=1):
    init = jnp.array(-jnp.inf, dtype=x.dtype)
    return jax.lax.reduce_window(
        x, init, jax.lax.max,
        window_dimensions=(1, ksize, ksize, ksize, 1),
        window_strides=(1, stride, stride, stride, 1),
        padding=((0, 0), (pad, pad), (pad, pad), (pad, pad), (0, 0)))


def downsample_basic_block(x, c_in, planes, stride):
    # F.avg_pool3d(kernel_size=1, stride=s) == strided slicing; 'type A'
    # shortcut then zero-pads the channel dim up to `planes`.
    out = x[:, ::stride, ::stride, ::stride, :c_in]
    if planes > c_in:
        out = jnp.pad(out, ((0, 0),) * 4 + ((0, planes - c_in),))
    return out


# ---------------------------------------------------------------------------
# Parameter init (deterministic, mirrors the PyTorch __init__)
# ---------------------------------------------------------------------------
def init_params(key, num_classes=400):
    keys = iter(jax.random.split(key, 64))

    def conv_w(cout, cin, k):
        fan_out = cout * k * k * k                     # kaiming_normal, mode='fan_out'
        std = math.sqrt(2.0 / fan_out)
        return jax.random.normal(next(keys), (cout, cin, k, k, k), jnp.float32) * std

    def make_block(inplanes, planes):
        return {
            "conv1_w": conv_w(planes, inplanes, 3),
            "bn1_g": jnp.ones((planes,), jnp.float32),
            "bn1_b": jnp.zeros((planes,), jnp.float32),
            "conv2_w": conv_w(planes, planes, 3),
            "bn2_g": jnp.ones((planes,), jnp.float32),
            "bn2_b": jnp.zeros((planes,), jnp.float32),
        }

    params = {
        "conv1_w": conv_w(64, 3, 7),
        "bn1_g": jnp.ones((64,), jnp.float32),
        "bn1_b": jnp.zeros((64,), jnp.float32),
        "layers": [],
    }
    for inplanes, planes, _stride in [(64, 64, 1), (64, 128, 2),
                                      (128, 256, 2), (256, 512, 2)]:
        params["layers"].append([make_block(inplanes, planes),
                                 make_block(planes, planes)])

    bound = 1.0 / math.sqrt(512.0)                      # torch Linear default init
    params["fc_w"] = jax.random.uniform(next(keys), (num_classes, 512),
                                        jnp.float32, -bound, bound)
    params["fc_b"] = jax.random.uniform(next(keys), (num_classes,),
                                        jnp.float32, -bound, bound)
    return params


# ---------------------------------------------------------------------------
# Forward pass
# ---------------------------------------------------------------------------
def basic_block(x, c_in, bp, stride, need_downsample):
    planes = bp["conv1_w"].shape[0]
    if need_downsample:
        residual = downsample_basic_block(x, c_in, planes, stride)
    else:
        residual = x
    out, _ = conv_bn_act(x, c_in, bp["conv1_w"], bp["bn1_g"], bp["bn1_b"],
                         (stride, stride, stride), (1, 1, 1))
    out, c_out = conv_bn_act(out, planes, bp["conv2_w"], bp["bn2_g"], bp["bn2_b"],
                             (1, 1, 1), (1, 1, 1), residual=residual)
    return out, c_out


def resnet_forward(params, x_ncdhw, get_featuremap=False):
    x = jnp.transpose(x_ncdhw, (0, 2, 3, 4, 1)).astype(jnp.float32)  # NCDHW -> NDHWC
    c_log = x.shape[-1]
    x, c_log = conv_bn_act(x, c_log, params["conv1_w"],
                           params["bn1_g"], params["bn1_b"], (1, 2, 2), (3, 3, 3))
    x = maxpool3d(x, 3, 2, 1)

    strides = [1, 2, 2, 2]
    for li, layer in enumerate(params["layers"]):
        s = strides[li]
        planes = layer[0]["conv1_w"].shape[0]
        need_ds = (s != 1) or (c_log != planes)
        x, c_log = basic_block(x, c_log, layer[0], s, need_ds)
        x, c_log = basic_block(x, c_log, layer[1], 1, False)

    # AvgPool3d over the full remaining spatial extent, then flatten.
    feat = jnp.mean(x[..., :c_log].astype(jnp.float32), axis=(1, 2, 3))  # (B, 512)

    if get_featuremap:
        return feat
    # Tiny (batch x 512) x (512 x classes) GEMM: plain XLA dot; a Pallas launch
    # would cost more than the matmul itself.
    return jnp.dot(feat, params["fc_w"].T,
                   preferred_element_type=jnp.float32) + params["fc_b"]


if __name__ == "__main__":
    key = jax.random.PRNGKey(0)
    pkey, xkey = jax.random.split(key)

    num_classes = 400
    params = init_params(pkey, num_classes=num_classes)

    # Input matches the PyTorch NCDHW convention:
    # batch=2, channels=3, sample_duration=8, sample_size=16 (H=W=16).
    x = jax.random.normal(xkey, (2, 3, 8, 16, 16), jnp.float32)

    fwd = jax.jit(lambda inp: resnet_forward(params, inp, get_featuremap=False))
    out = fwd(x)
    jax.block_until_ready(out)

    assert out.shape == (2, num_classes)
    assert bool(jnp.all(jnp.isfinite(out)))
    print("KERNEL_OK")
</pallas_src>

<mosaic_0001>
module attributes {stable_mosaic.version = 11 : i64} {
  func.func @_matmul_stats_kernel(%arg0: i32, %arg1: i32, %arg2: i32, %arg3: memref<128x1152xbf16, #tpu.memory_space<vmem>>, %arg4: memref<1152x128xbf16, #tpu.memory_space<vmem>>, %arg5: memref<128x128xbf16, #tpu.memory_space<vmem>>, %arg6: memref<1x1x128xf32, #tpu.memory_space<vmem>>, %arg7: memref<1x1x128xf32, #tpu.memory_space<vmem>>, %arg8: memref<128x128xf32, #tpu.memory_space<vmem>>) attributes {dimension_semantics = [#tpu.dimension_semantics<parallel>, #tpu.dimension_semantics<parallel>, #tpu.dimension_semantics<arbitrary>], iteration_bounds = array<i64: 1, 8, 1>, scalar_prefetch = 0 : i64, scratch_operands = 1 : i64, tpu.core_type = #tpu.core_type<tc>, window_params = [{transform_indices = @transform_0, window_bounds = array<i64: 128, 1152>}, {transform_indices = @transform_1, window_bounds = array<i64: 1152, 128>}, {transform_indices = @transform_2, window_bounds = array<i64: 128, 128>}, {transform_indices = @transform_3, window_bounds = array<i64: 1, 1, 128>}, {transform_indices = @transform_4, window_bounds = array<i64: 1, 1, 128>}]} {
    %c0_i32 = arith.constant 0 : i32
    %0 = arith.cmpi eq, %arg2, %c0_i32 : i32
    %1 = arith.extui %0 : i1 to i32
    %c0_i32_0 = arith.constant 0 : i32
    %2 = arith.cmpi ne, %1, %c0_i32_0 : i32
    scf.if %2 {
      %cst_10 = arith.constant 0.000000e+00 : f32
      %12 = vector.broadcast %cst_10 : f32 to vector<128x128xf32>
      %c0_11 = arith.constant 0 : index
      %c0_12 = arith.constant 0 : index
      %13 = vector.load %arg8[%c0_11, %c0_12] : memref<128x128xf32, #tpu.memory_space<vmem>>, vector<128x128xf32>
      tpu.vector_store %arg8[%c0_11, %c0_12], %12 {strides = array<i32>} : memref<128x128xf32, #tpu.memory_space<vmem>>, vector<128x128xf32>,
    } else {
    }
    %c0 = arith.constant 0 : index
    %c0_1 = arith.constant 0 : index
    %3 = vector.load %arg8[%c0, %c0_1] : memref<128x128xf32, #tpu.memory_space<vmem>>, vector<128x128xf32>
    %c0_2 = arith.constant 0 : index
    %c0_3 = arith.constant 0 : index
    %4 = vector.load %arg3[%c0_2, %c0_3] : memref<128x1152xbf16, #tpu.memory_space<vmem>>, vector<128x1152xbf16>
    %c0_4 = arith.constant 0 : index
    %c0_5 = arith.constant 0 : index
    %5 = vector.load %arg4[%c0_4, %c0_5] : memref<1152x128xbf16, #tpu.memory_space<vmem>>, vector<1152x128xbf16>
    %cst = arith.constant dense<0.000000e+00> : vector<128x128xf32>
    %6 = tpu.matmul %4, %5, %cst {dimension_numbers = #tpu.dot_dimension_numbers<[1], [0], [0], [1], [0, 0, 1, 1], [], []>} : vector<128x1152xbf16>, vector<1152x128xbf16>, vector<128x128xf32> -> vector<128x128xf32>
    %7 = arith.addf %3, %6 : vector<128x128xf32>
    %c0_6 = arith.constant 0 : index
    %c0_7 = arith.constant 0 : index
    %8 = vector.load %arg8[%c0_6, %c0_7] : memref<128x128xf32, #tpu.memory_space<vmem>>, vector<128x128xf32>
    tpu.vector_store %arg8[%c0_6, %c0_7], %7 {strides = array<i32>} : memref<128x128xf32, #tpu.memory_space<vmem>>, vector<128x128xf32>,
    %c0_i32_8 = arith.constant 0 : i32
    %9 = arith.cmpi eq, %arg2, %c0_i32_8 : i32
    %10 = arith.extui %9 : i1 to i32
    %c0_i32_9 = arith.constant 0 : i32
    %11 = arith.cmpi ne, %10, %c0_i32_9 : i32
    scf.if %11 {
      %c0_10 = arith.constant 0 : index
      %c0_11 = arith.constant 0 : index
      %12 = vector.load %arg8[%c0_10, %c0_11] : memref<128x128xf32, #tpu.memory_space<vmem>>, vector<128x128xf32>
      %13 = arith.truncf %12 : vector<128x128xf32> to vector<128x128xbf16>
      %c0_12 = arith.constant 0 : index
      %c0_13 = arith.constant 0 : index
      %14 = vector.load %arg5[%c0_12, %c0_13] : memref<128x128xbf16, #tpu.memory_space<vmem>>, vector<128x128xbf16>
      tpu.vector_store %arg5[%c0_12, %c0_13], %13 {strides = array<i32>} : memref<128x128xbf16, #tpu.memory_space<vmem>>, vector<128x128xbf16>,
      %cst_14 = arith.constant dense<0.000000e+00> : vector<128xf32>
      %15 = vector.multi_reduction <add>, %12, %cst_14 [0] : vector<128x128xf32> to vector<128xf32>
      %16 = vector.shape_cast %15 : vector<128xf32> to vector<1x128xf32>
      %17 = vector.shape_cast %16 : vector<1x128xf32> to vector<1x1x128xf32>
      %c0_15 = arith.constant 0 : index
      %c0_16 = arith.constant 0 : index
      %c0_17 = arith.constant 0 : index
      %18 = vector.load %arg6[%c0_15, %c0_16, %c0_17] : memref<1x1x128xf32, #tpu.memory_space<vmem>>, vector<1x1x128xf32>
      tpu.vector_store %arg6[%c0_15, %c0_16, %c0_17], %17 {strides = array<i32>} : memref<1x1x128xf32, #tpu.memory_space<vmem>>, vector<1x1x128xf32>,
      %19 = arith.mulf %12, %12 : vector<128x128xf32>
      %cst_18 = arith.constant dense<0.000000e+00> : vector<128xf32>
      %20 = vector.multi_reduction <add>, %19, %cst_18 [0] : vector<128x128xf32> to vector<128xf32>
      %21 = vector.shape_cast %20 : vector<128xf32> to vector<1x128xf32>
      %22 = vector.shape_cast %21 : vector<1x128xf32> to vector<1x1x128xf32>
      %c0_19 = arith.constant 0 : index
      %c0_20 = arith.constant 0 : index
      %c0_21 = arith.constant 0 : index
      %23 = vector.load %arg7[%c0_19, %c0_20, %c0_21] : memref<1x1x128xf32, #tpu.memory_space<vmem>>, vector<1x1x128xf32>
      tpu.vector_store %arg7[%c0_19, %c0_20, %c0_21], %22 {strides = array<i32>} : memref<1x1x128xf32, #tpu.memory_space<vmem>>, vector<1x1x128xf32>,
    } else {
    }
    return
  }
  func.func @transform_0(%arg0: i32, %arg1: i32, %arg2: i32) -> (i32, i32) {
    %c0_i32 = arith.constant 0 : i32
    return %arg1, %arg2 : i32, i32
  }
  func.func @transform_1(%arg0: i32, %arg1: i32, %arg2: i32) -> (i32, i32) {
    %c0_i32 = arith.constant 0 : i32
    return %arg2, %arg0 : i32, i32
  }
  func.func @transform_2(%arg0: i32, %arg1: i32, %arg2: i32) -> (i32, i32) {
    %c0_i32 = arith.constant 0 : i32
    return %arg1, %arg0 : i32, i32
  }
  func.func @transform_3(%arg0: i32, %arg1: i32, %arg2: i32) -> (i32, i32, i32) {
    %c0_i32 = arith.constant 0 : i32
    %c0_i32_0 = arith.constant 0 : i32
    return %arg1, %c0_i32, %arg0 : i32, i32, i32
  }
  func.func @transform_4(%arg0: i32, %arg1: i32, %arg2: i32) -> (i32, i32, i32) {
    %c0_i32 = arith.constant 0 : i32
    %c0_i32_0 = arith.constant 0 : i32
    return %arg1, %c0_i32, %arg0 : i32, i32, i32
  }
}

module attributes {stable_mosaic.version = 11 : i64} {
  func.func @_bn_apply_kernel(%arg0: i32, %arg1: memref<512x128xbf16, #tpu.memory_space<vmem>>, %arg2: memref<1x128xf32, #tpu.memory_space<vmem>>, %arg3: memref<1x128xf32, #tpu.memory_space<vmem>>, %arg4: memref<512x128xbf16, #tpu.memory_space<vmem>>) attributes {dimension_semantics = [#tpu.dimension_semantics<parallel>], iteration_bounds = array<i64: 2>, scalar_prefetch = 0 : i64, scratch_operands = 0 : i64, tpu.core_type = #tpu.core_type<tc>, window_params = [{transform_indices = @transform_0, window_bounds = array<i64: 512, 128>}, {pipeline_mode = #tpu.pipeline_mode<synchronous>, transform_indices = @transform_1, window_bounds = array<i64: 1, 128>}, {pipeline_mode = #tpu.pipeline_mode<synchronous>, transform_indices = @transform_2, window_bounds = array<i64: 1, 128>}, {transform_indices = @transform_3, window_bounds = array<i64: 512, 128>}]} {
    %c0 = arith.constant 0 : index
    %c0_0 = arith.constant 0 : index
    %0 = vector.load %arg1[%c0, %c0_0] : memref<512x128xbf16, #tpu.memory_space<vmem>>, vector<512x128xbf16>
    %1 = arith.extf %0 : vector<512x128xbf16> to vector<512x128xf32>
    %c0_1 = arith.constant 0 : index
    %c0_2 = arith.constant 0 : index
    %2 = vector.load %arg2[%c0_1, %c0_2] : memref<1x128xf32, #tpu.memory_space<vmem>>, vector<1x128xf32>
    %3 = vector.broadcast %2 : vector<1x128xf32> to vector<512x128xf32>
    %4 = arith.mulf %1, %3 : vector<512x128xf32>
    %c0_3 = arith.constant 0 : index
    %c0_4 = arith.constant 0 : index
    %5 = vector.load %arg3[%c0_3, %c0_4] : memref<1x128xf32, #tpu.memory_space<vmem>>, vector<1x128xf32>
    %6 = vector.broadcast %5 : vector<1x128xf32> to vector<512x128xf32>
    %7 = arith.addf %4, %6 : vector<512x128xf32>
    %cst = arith.constant 0.000000e+00 : f32
    %8 = vector.broadcast %cst : f32 to vector<512x128xf32>
    %9 = arith.maximumf %7, %8 : vector<512x128xf32>
    %10 = arith.truncf %9 : vector<512x128xf32> to vector<512x128xbf16>
    %c0_5 = arith.constant 0 : index
    %c0_6 = arith.constant 0 : index
    %11 = vector.load %arg4[%c0_5, %c0_6] : memref<512x128xbf16, #tpu.memory_space<vmem>>, vector<512x128xbf16>
    tpu.vector_store %arg4[%c0_5, %c0_6], %10 {strides = array<i32>} : memref<512x128xbf16, #tpu.memory_space<vmem>>, vector<512x128xbf16>,
    return
  }
  func.func @transform_0(%arg0: i32) -> (i32, i32) {
    %c0_i32 = arith.constant 0 : i32
    %c0_i32_0 = arith.constant 0 : i32
    return %arg0, %c0_i32 : i32, i32
  }
  func.func @transform_1(%arg0: i32) -> (i32, i32) {
    %c0_i32 = arith.constant 0 : i32
    %c0_i32_0 = arith.constant 0 : i32
    %c0_i32_1 = arith.constant 0 : i32
    return %c0_i32, %c0_i32_0 : i32, i32
  }
  func.func @transform_2(%arg0: i32) -> (i32, i32) {
    %c0_i32 = arith.constant 0 : i32
    %c0_i32_0 = arith.constant 0 : i32
    %c0_i32_1 = arith.constant 0 : i32
    return %c0_i32, %c0_i32_0 : i32, i32
  }
  func.func @transform_3(%arg0: i32) -> (i32, i32) {
    %c0_i32 = arith.constant 0 : i32
    %c0_i32_0 = arith.constant 0 : i32
    return %arg0, %c0_i32 : i32, i32
  }
}

module attributes {stable_mosaic.version = 11 : i64} {
  func.func @_matmul_stats_kernel(%arg0: i32, %arg1: i32, %arg2: i32, %arg3: memref<128x1792xbf16, #tpu.memory_space<vmem>>, %arg4: memref<1792x128xbf16, #tpu.memory_space<vmem>>, %arg5: memref<128x128xbf16, #tpu.memory_space<vmem>>, %arg6: memref<1x1x128xf32, #tpu.memory_space<vmem>>, %arg7: memref<1x1x128xf32, #tpu.memory_space<vmem>>, %arg8: memref<128x128xf32, #tpu.memory_space<vmem>>) attributes {dimension_semantics = [#tpu.dimension_semantics<parallel>, #tpu.dimension_semantics<parallel>, #tpu.dimension_semantics<arbitrary>], iteration_bounds = array<i64: 1, 1, 1>, scalar_prefetch = 0 : i64, scratch_operands = 1 : i64, tpu.core_type = #tpu.core_type<tc>, window_params = [{transform_indices = @transform_0, window_bounds = array<i64: 128, 1792>}, {transform_indices = @transform_1, window_bounds = array<i64: 1792, 128>}, {transform_indices = @transform_2, window_bounds = array<i64: 128, 128>}, {transform_indices = @transform_3, window_bounds = array<i64: 1, 1, 128>}, {transform_indices = @transform_4, window_bounds = array<i64: 1, 1, 128>}]} {
    %c0_i32 = arith.constant 0 : i32
    %0 = arith.cmpi eq, %arg2, %c0_i32 : i32
    %1 = arith.extui %0 : i1 to i32
    %c0_i32_0 = arith.constant 0 : i32
    %2 = arith.cmpi ne, %1, %c0_i32_0 : i32
    scf.if %2 {
      %cst_10 = arith.constant 0.000000e+00 : f32
      %12 = vector.broadcast %cst_10 : f32 to vector<128x128xf32>
      %c0_11 = arith.constant 0 : index
      %c0_12 = arith.constant 0 : index
      %13 = vector.load %arg8[%c0_11, %c0_12] : memref<128x128xf32, #tpu.memory_space<vmem>>, vector<128x128xf32>
      tpu.vector_store %arg8[%c0_11, %c0_12], %12 {strides = array<i32>} : memref<128x128xf32, #tpu.memory_space<vmem>>, vector<128x128xf32>,
    } else {
    }
    %c0 = arith.constant 0 : index
    %c0_1 = arith.constant 0 : index
    %3 = vector.load %arg8[%c0, %c0_1] : memref<128x128xf32, #tpu.memory_space<vmem>>, vector<128x128xf32>
    %c0_2 = arith.constant 0 : index
    %c0_3 = arith.constant 0 : index
    %4 = vector.load %arg3[%c0_2, %c0_3] : memref<128x1792xbf16, #tpu.memory_space<vmem>>, vector<128x1792xbf16>
    %c0_4 = arith.constant 0 : index
    %c0_5 = arith.constant 0 : index
    %5 = vector.load %arg4[%c0_4, %c0_5] : memref<1792x128xbf16, #tpu.memory_space<vmem>>, vector<1792x128xbf16>
    %cst = arith.constant dense<0.000000e+00> : vector<128x128xf32>
    %6 = tpu.matmul %4, %5, %cst {dimension_numbers = #tpu.dot_dimension_numbers<[1], [0], [0], [1], [0, 0, 1, 1], [], []>} : vector<128x1792xbf16>, vector<1792x128xbf16>, vector<128x128xf32> -> vector<128x128xf32>
    %7 = arith.addf %3, %6 : vector<128x128xf32>
    %c0_6 = arith.constant 0 : index
    %c0_7 = arith.constant 0 : index
    %8 = vector.load %arg8[%c0_6, %c0_7] : memref<128x128xf32, #tpu.memory_space<vmem>>, vector<128x128xf32>
    tpu.vector_store %arg8[%c0_6, %c0_7], %7 {strides = array<i32>} : memref<128x128xf32, #tpu.memory_space<vmem>>, vector<128x128xf32>,
    %c0_i32_8 = arith.constant 0 : i32
    %9 = arith.cmpi eq, %arg2, %c0_i32_8 : i32
    %10 = arith.extui %9 : i1 to i32
    %c0_i32_9 = arith.constant 0 : i32
    %11 = arith.cmpi ne, %10, %c0_i32_9 : i32
    scf.if %11 {
      %c0_10 = arith.constant 0 : index
      %c0_11 = arith.constant 0 : index
      %12 = vector.load %arg8[%c0_10, %c0_11] : memref<128x128xf32, #tpu.memory_space<vmem>>, vector<128x128xf32>
      %13 = arith.truncf %12 : vector<128x128xf32> to vector<128x128xbf16>
      %c0_12 = arith.constant 0 : index
      %c0_13 = arith.constant 0 : index
      %14 = vector.load %arg5[%c0_12, %c0_13] : memref<128x128xbf16, #tpu.memory_space<vmem>>, vector<128x128xbf16>
      tpu.vector_store %arg5[%c0_12, %c0_13], %13 {strides = array<i32>} : memref<128x128xbf16, #tpu.memory_space<vmem>>, vector<128x128xbf16>,
      %cst_14 = arith.constant dense<0.000000e+00> : vector<128xf32>
      %15 = vector.multi_reduction <add>, %12, %cst_14 [0] : vector<128x128xf32> to vector<128xf32>
      %16 = vector.shape_cast %15 : vector<128xf32> to vector<1x128xf32>
      %17 = vector.shape_cast %16 : vector<1x128xf32> to vector<1x1x128xf32>
      %c0_15 = arith.constant 0 : index
      %c0_16 = arith.constant 0 : index
      %c0_17 = arith.constant 0 : index
      %18 = vector.load %arg6[%c0_15, %c0_16, %c0_17] : memref<1x1x128xf32, #tpu.memory_space<vmem>>, vector<1x1x128xf32>
      tpu.vector_store %arg6[%c0_15, %c0_16, %c0_17], %17 {strides = array<i32>} : memref<1x1x128xf32, #tpu.memory_space<vmem>>, vector<1x1x128xf32>,
      %19 = arith.mulf %12, %12 : vector<128x128xf32>
      %cst_18 = arith.constant dense<0.000000e+00> : vector<128xf32>
      %20 = vector.multi_reduction <add>, %19, %cst_18 [0] : vector<128x128xf32> to vector<128xf32>
      %21 = vector.shape_cast %20 : vector<128xf32> to vector<1x128xf32>
      %22 = vector.shape_cast %21 : vector<1x128xf32> to vector<1x1x128xf32>
      %c0_19 = arith.constant 0 : index
      %c0_20 = arith.constant 0 : index
      %c0_21 = arith.constant 0 : index
      %23 = vector.load %arg7[%c0_19, %c0_20, %c0_21] : memref<1x1x128xf32, #tpu.memory_space<vmem>>, vector<1x1x128xf32>
      tpu.vector_store %arg7[%c0_19, %c0_20, %c0_21], %22 {strides = array<i32>} : memref<1x1x128xf32, #tpu.memory_space<vmem>>, vector<1x1x128xf32>,
    } else {
    }
    return
  }
  func.func @transform_0(%arg0: i32, %arg1: i32, %arg2: i32) -> (i32, i32) {
    %c0_i32 = arith.constant 0 : i32
    return %arg1, %arg2 : i32, i32
  }
  func.func @transform_1(%arg0: i32, %arg1: i32, %arg2: i32) -> (i32, i32) {
    %c0_i32 = arith.constant 0 : i32
    return %arg2, %arg0 : i32, i32
  }
  func.func @transform_2(%arg0: i32, %arg1: i32, %arg2: i32) -> (i32, i32) {
    %c0_i32 = arith.constant 0 : i32
    return %arg1, %arg0 : i32, i32
  }
  func.func @transform_3(%arg0: i32, %arg1: i32, %arg2: i32) -> (i32, i32, i32) {
    %c0_i32 = arith.constant 0 : i32
    %c0_i32_0 = arith.constant 0 : i32
    return %arg1, %c0_i32, %arg0 : i32, i32, i32
  }
  func.func @transform_4(%arg0: i32, %arg1: i32, %arg2: i32) -> (i32, i32, i32) {
    %c0_i32 = arith.constant 0 : i32
    %c0_i32_0 = arith.constant 0 : i32
    return %arg1, %c0_i32, %arg0 : i32, i32, i32
  }
}

module attributes {stable_mosaic.version = 11 : i64} {
  func.func @_bn_apply_kernel(%arg0: i32, %arg1: memref<128x128xbf16, #tpu.memory_space<vmem>>, %arg2: memref<1x128xf32, #tpu.memory_space<vmem>>, %arg3: memref<1x128xf32, #tpu.memory_space<vmem>>, %arg4: memref<128x128xbf16, #tpu.memory_space<vmem>>) attributes {dimension_semantics = [#tpu.dimension_semantics<parallel>], iteration_bounds = array<i64: 1>, scalar_prefetch = 0 : i64, scratch_operands = 0 : i64, tpu.core_type = #tpu.core_type<tc>, window_params = [{transform_indices = @transform_0, window_bounds = array<i64: 128, 128>}, {pipeline_mode = #tpu.pipeline_mode<synchronous>, transform_indices = @transform_1, window_bounds = array<i64: 1, 128>}, {pipeline_mode = #tpu.pipeline_mode<synchronous>, transform_indices = @transform_2, window_bounds = array<i64: 1, 128>}, {transform_indices = @transform_3, window_bounds = array<i64: 128, 128>}]} {
    %c0 = arith.constant 0 : index
    %c0_0 = arith.constant 0 : index
    %0 = vector.load %arg1[%c0, %c0_0] : memref<128x128xbf16, #tpu.memory_space<vmem>>, vector<128x128xbf16>
    %1 = arith.extf %0 : vector<128x128xbf16> to vector<128x128xf32>
    %c0_1 = arith.constant 0 : index
    %c0_2 = arith.constant 0 : index
    %2 = vector.load %arg2[%c0_1, %c0_2] : memref<1x128xf32, #tpu.memory_space<vmem>>, vector<1x128xf32>
    %3 = vector.broadcast %2 : vector<1x128xf32> to vector<128x128xf32>
    %4 = arith.mulf %1, %3 : vector<128x128xf32>
    %c0_3 = arith.constant 0 : index
    %c0_4 = arith.constant 0 : index
    %5 = vector.load %arg3[%c0_3, %c0_4] : memref<1x128xf32, #tpu.memory_space<vmem>>, vector<1x128xf32>
    %6 = vector.broadcast %5 : vector<1x128xf32> to vector<128x128xf32>
    %7 = arith.addf %4, %6 : vector<128x128xf32>
    %cst = arith.constant 0.000000e+00 : f32
    %8 = vector.broadcast %cst : f32 to vector<128x128xf32>
    %9 = arith.maximumf %7, %8 : vector<128x128xf32>
    %10 = arith.truncf %9 : vector<128x128xf32> to vector<128x128xbf16>
    %c0_5 = arith.constant 0 : index
    %c0_6 = arith.constant 0 : index
    %11 = vector.load %arg4[%c0_5, %c0_6] : memref<128x128xbf16, #tpu.memory_space<vmem>>, vector<128x128xbf16>
    tpu.vector_store %arg4[%c0_5, %c0_6], %10 {strides = array<i32>} : memref<128x128xbf16, #tpu.memory_space<vmem>>, vector<128x128xbf16>,
    return
  }
  func.func @transform_0(%arg0: i32) -> (i32, i32) {
    %c0_i32 = arith.constant 0 : i32
    %c0_i32_0 = arith.constant 0 : i32
    return %arg0, %c0_i32 : i32, i32
  }
  func.func @transform_1(%arg0: i32) -> (i32, i32) {
    %c0_i32 = arith.constant 0 : i32
    %c0_i32_0 = arith.constant 0 : i32
    %c0_i32_1 = arith.constant 0 : i32
    return %c0_i32, %c0_i32_0 : i32, i32
  }
  func.func @transform_2(%arg0: i32) -> (i32, i32) {
    %c0_i32 = arith.constant 0 : i32
    %c0_i32_0 = arith.constant 0 : i32
    %c0_i32_1 = arith.constant 0 : i32
    return %c0_i32, %c0_i32_0 : i32, i32
  }
  func.func @transform_3(%arg0: i32) -> (i32, i32) {
    %c0_i32 = arith.constant 0 : i32
    %c0_i32_0 = arith.constant 0 : i32
    return %arg0, %c0_i32 : i32, i32
  }
}

module attributes {stable_mosaic.version = 11 : i64} {
  func.func @_bn_apply_add_relu_kernel(%arg0: i32, %arg1: memref<128x128xbf16, #tpu.memory_space<vmem>>, %arg2: memref<1x128xf32, #tpu.memory_space<vmem>>, %arg3: memref<1x128xf32, #tpu.memory_space<vmem>>, %arg4: memref<128x128xbf16, #tpu.memory_space<vmem>>, %arg5: memref<128x128xbf16, #tpu.memory_space<vmem>>) attributes {dimension_semantics = [#tpu.dimension_semantics<parallel>], iteration_bounds = array<i64: 1>, scalar_prefetch = 0 : i64, scratch_operands = 0 : i64, tpu.core_type = #tpu.core_type<tc>, window_params = [{transform_indices = @transform_0, window_bounds = array<i64: 128, 128>}, {pipeline_mode = #tpu.pipeline_mode<synchronous>, transform_indices = @transform_1, window_bounds = array<i64: 1, 128>}, {pipeline_mode = #tpu.pipeline_mode<synchronous>, transform_indices = @transform_2, window_bounds = array<i64: 1, 128>}, {transform_indices = @transform_3, window_bounds = array<i64: 128, 128>}, {transform_indices = @transform_4, window_bounds = array<i64: 128, 128>}]} {
    %c0 = arith.constant 0 : index
    %c0_0 = arith.constant 0 : index
    %0 = vector.load %arg1[%c0, %c0_0] : memref<128x128xbf16, #tpu.memory_space<vmem>>, vector<128x128xbf16>
    %1 = arith.extf %0 : vector<128x128xbf16> to vector<128x128xf32>
    %c0_1 = arith.constant 0 : index
    %c0_2 = arith.constant 0 : index
    %2 = vector.load %arg2[%c0_1, %c0_2] : memref<1x128xf32, #tpu.memory_space<vmem>>, vector<1x128xf32>
    %3 = vector.broadcast %2 : vector<1x128xf32> to vector<128x128xf32>
    %4 = arith.mulf %1, %3 : vector<128x128xf32>
    %c0_3 = arith.constant 0 : index
    %c0_4 = arith.constant 0 : index
    %5 = vector.load %arg3[%c0_3, %c0_4] : memref<1x128xf32, #tpu.memory_space<vmem>>, vector<1x128xf32>
    %6 = vector.broadcast %5 : vector<1x128xf32> to vector<128x128xf32>
    %7 = arith.addf %4, %6 : vector<128x128xf32>
    %c0_5 = arith.constant 0 : index
    %c0_6 = arith.constant 0 : index
    %8 = vector.load %arg4[%c0_5, %c0_6] : memref<128x128xbf16, #tpu.memory_space<vmem>>, vector<128x128xbf16>
    %9 = arith.extf %8 : vector<128x128xbf16> to vector<128x128xf32>
    %10 = arith.addf %7, %9 : vector<128x128xf32>
    %cst = arith.constant 0.000000e+00 : f32
    %11 = vector.broadcast %cst : f32 to vector<128x128xf32>
    %12 = arith.maximumf %10, %11 : vector<128x128xf32>
    %13 = arith.truncf %12 : vector<128x128xf32> to vector<128x128xbf16>
    %c0_7 = arith.constant 0 : index
    %c0_8 = arith.constant 0 : index
    %14 = vector.load %arg5[%c0_7, %c0_8] : memref<128x128xbf16, #tpu.memory_space<vmem>>, vector<128x128xbf16>
    tpu.vector_store %arg5[%c0_7, %c0_8], %13 {strides = array<i32>} : memref<128x128xbf16, #tpu.memory_space<vmem>>, vector<128x128xbf16>,
    return
  }
  func.func @transform_0(%arg0: i32) -> (i32, i32) {
    %c0_i32 = arith.constant 0 : i32
    %c0_i32_0 = arith.constant 0 : i32
    return %arg0, %c0_i32 : i32, i32
  }
  func.func @transform_1(%arg0: i32) -> (i32, i32) {
    %c0_i32 = arith.constant 0 : i32
    %c0_i32_0 = arith.constant 0 : i32
    %c0_i32_1 = arith.constant 0 : i32
    return %c0_i32, %c0_i32_0 : i32, i32
  }
  func.func @transform_2(%arg0: i32) -> (i32, i32) {
    %c0_i32 = arith.constant 0 : i32
    %c0_i32_0 = arith.constant 0 : i32
    %c0_i32_1 = arith.constant 0 : i32
    return %c0_i32, %c0_i32_0 : i32, i32
  }
  func.func @transform_3(%arg0: i32) -> (i32, i32) {
    %c0_i32 = arith.constant 0 : i32
    %c0_i32_0 = arith.constant 0 : i32
    return %arg0, %c0_i32 : i32, i32
  }
  func.func @transform_4(%arg0: i32) -> (i32, i32) {
    %c0_i32 = arith.constant 0 : i32
    %c0_i32_0 = arith.constant 0 : i32
    return %arg0, %c0_i32 : i32, i32
  }
}

</mosaic_0001>

<bundles_post_ra>
// kernel: _lambda_.11
= control target key start
LH: loop header
LB: loop body
LE: loop exit
PB: predicated region body
PF: predicated region fallthrough
CT: control target
= control target key end

     0   :  { %s1411_s12 = smov 0   ;;  %s1641_s0 = inlined_call_operand.vmem [shape: bf16[1024,128], index: 0, kind: input, shape index: {}]   ;;  %s1642_s1 = inlined_call_operand.vmem [shape: f32[1,128], index: 1, kind: input, shape index: {}]   ;;  %s1643_s2 = inlined_call_operand.vmem [shape: f32[1,128], index: 2, kind: input, shape index: {}]   ;;  %s1644_s3 = inlined_call_operand.vmem [shape: bf16[1024,128], index: 3, kind: output, shape index: {}]  }
   0x1 LB: > { %s884_s13 = sadd.s32 4294967295, %s1389_s12   ;;  %p888_p0 = scmp.ge.s32.totalorder %s1389_s12, 1  ;;  %s1389_s12 = sphi %s1411_s12, %s13_s12  }
   0x2   : > { %p138_p1 = scmp.lt.s32.totalorder %s1389_s12, 3 }
   0x4   : > { %p139_p2 = pnand %p888_p0, %p138_p1 }
   0x5   : > { %s889_s14 = sshll.u32 (!%p139_p2), %s884_s13, 6 }
   0x6   : > { %142 = sbr.rel (%p139_p2) target bundleno = 93 (0x5d), region = 32  ;;  %p163_p3 = scmp.lt.s32.totalorder (!%p139_p2), %s889_s14, 127 }
   0xb   : > { %s1646_s14 = smov (!%p163_p3, %s889_s14), 127  ;;  %v1432_v0 = vld [vmem:[%s1642_s1] ss:$0 sm:$0xff] }
   0xc   : > { %s890_s15 = sshll.u32 %s1646_s14, 2  ;;  %v1441_v9 = vld [vmem:[%s1643_s2] ss:$0 sm:$0xff] }
   0xd   : > { %s1427_s18 = scalar_lea.vmem %s1641_s0, %s890_s15  ;;  %s1466_s25 = scalar_lea.vmem %s1644_s3, %s890_s15 }
   0xe   : > { %v1026_v1 = vld [vmem:[%s1427_s18] sm:$0xff]   ;;  %v1313_v2 = vld [vmem:[%s1427_s18 + $0x8] sm:$0xff]   ;;  %v1314_v3 = vld [vmem:[%s1427_s18 + $0x10] sm:$0xff]  }
   0xf   : > { %v1027_v4 = vunpack.c.l.bf16 %v1026_v1  ;;  %v1028_v5 = vunpack.c.h.bf16 %v1026_v1  ;;  %v1031_v6 = vunpack.c.l.bf16 %v1313_v2  ;;  %v1032_v7 = vunpack.c.h.bf16 %v1313_v2  ;;  %v1315_v8 = vld [vmem:[%s1427_s18 + $0x18] sm:$0xff]   ;;  %v1316_v30 = vld [vmem:[%s1427_s18 + $0x20] sm:$0xff]   ;;  %v1317_v35 = vld [vmem:[%s1427_s18 + $0x28] sm:$0xff]  }
  0x10   : > { %v1035_v10 = vunpack.c.l.bf16 %v1314_v3  ;;  %v1036_v11 = vunpack.c.h.bf16 %v1314_v3  ;;  %v1039_v12 = vunpack.c.l.bf16 %v1315_v8  ;;  %v1040_v13 = vunpack.c.h.bf16 %v1315_v8  ;;  %v1318_v40 = vld [vmem:[%s1427_s18 + $0x30] sm:$0xff]   ;;  %v1319_v45 = vld [vmem:[%s1427_s18 + $0x38] sm:$0xff]   ;;  %v1320_v3 = vld [vmem:[%s1427_s18 + $0x40] sm:$0xff]  }
  0x11   : > { %v309_v14 = vmul.f32 %v1027_v4, %v1432_v0  ;;  %v310_v15 = vmul.f32 %v1028_v5, %v1432_v0  ;;  %v311_v16 = vmul.f32 %v1031_v6, %v1432_v0  ;;  %v312_v17 = vmul.f32 %v1032_v7, %v1432_v0 }
  0x12   : > { %v313_v18 = vmul.f32 %v1035_v10, %v1432_v0  ;;  %v314_v19 = vmul.f32 %v1036_v11, %v1432_v0  ;;  %v315_v20 = vmul.f32 %v1039_v12, %v1432_v0  ;;  %v316_v21 = vmul.f32 %v1040_v13, %v1432_v0  ;;  %v1321_v13 = vld [vmem:[%s1427_s18 + $0x48] sm:$0xff]  }
  0x13   : > { %v380_v22 = vadd.f32 %v1441_v9, %v309_v14  ;;  %v381_v23 = vadd.f32 %v1441_v9, %v310_v15  ;;  %v382_v24 = vadd.f32 %v1441_v9, %v311_v16  ;;  %v383_v25 = vadd.f32 %v1441_v9, %v312_v17 }
  0x14   : > { %v384_v26 = vadd.f32 %v1441_v9, %v313_v18  ;;  %v385_v27 = vadd.f32 %v1441_v9, %v314_v19  ;;  %v386_v28 = vadd.f32 %v1441_v9, %v315_v20  ;;  %v387_v29 = vadd.f32 %v1441_v9, %v316_v21  ;;  %v1322_v18 = vld [vmem:[%s1427_s18 + $0x50] sm:$0xff]  }
  0x15   : > { %v444_v31 = vmax.f32 %v380_v22, 0.0  ;;  %v445_v32 = vmax.f32 %v381_v23, 0.0  ;;  %v446_v33 = vmax.f32 %v382_v24, 0.0  ;;  %v447_v34 = vmax.f32 %v383_v25, 0.0  ;;  %v1323_v23 = vld [vmem:[%s1427_s18 + $0x58] sm:$0xff]  }
  0x16   : > { %v448_v36 = vmax.f32 %v384_v26, 0.0  ;;  %v449_v37 = vmax.f32 %v385_v27, 0.0  ;;  %v450_v38 = vmax.f32 %v386_v28, 0.0  ;;  %v451_v39 = vmax.f32 %v387_v29, 0.0 }
  0x17   : > { %v1156_v41 = vpack.c.bf16 %v445_v32, %v444_v31  ;;  %v1161_v42 = vpack.c.bf16 %v447_v34, %v446_v33  ;;  %v1043_v43 = vunpack.c.l.bf16 %v1316_v30  ;;  %v1044_v44 = vunpack.c.h.bf16 %v1316_v30 }
  0x18   : > { %v1166_v46 = vpack.c.bf16 %v449_v37, %v448_v36  ;;  %v1171_v47 = vpack.c.bf16 %v451_v39, %v450_v38  ;;  %v1047_v48 = vunpack.c.l.bf16 %v1317_v35  ;;  %v1048_v49 = vunpack.c.h.bf16 %v1317_v35 }
  0x19   : > { %1157 = vst [vmem:[%s1466_s25] sm:$0xff] %v1156_v41   ;;  %1344 = vst [vmem:[%s1466_s25 + $0x8] sm:$0xff] %v1161_v42   ;;  %v317_v50 = vmul.f32 %v1043_v43, %v1432_v0  ;;  %v318_v51 = vmul.f32 %v1044_v44, %v1432_v0  ;;  %v1051_v52 = vunpack.c.l.bf16 %v1318_v40  ;;  %v1052_v53 = vunpack.c.h.bf16 %v1318_v40  ;;  %v1324_v40 = vld [vmem:[%s1427_s18 + $0x60] sm:$0xff]  }
  0x1a   : > { %1345 = vst [vmem:[%s1466_s25 + $0x10] sm:$0xff] %v1166_v46   ;;  %1346 = vst [vmem:[%s1466_s25 + $0x18] sm:$0xff] %v1171_v47   ;;  %v319_v54 = vmul.f32 %v1047_v48, %v1432_v0  ;;  %v320_v55 = vmul.f32 %v1048_v49, %v1432_v0  ;;  %v1055_v56 = vunpack.c.l.bf16 %v1319_v45  ;;  %v1056_v57 = vunpack.c.h.bf16 %v1319_v45 }
  0x1b   : > { %v388_v58 = vadd.f32 %v1441_v9, %v317_v50  ;;  %v389_v59 = vadd.f32 %v1441_v9, %v318_v51  ;;  %v321_v60 = vmul.f32 %v1051_v52, %v1432_v0  ;;  %v322_v61 = vmul.f32 %v1052_v53, %v1432_v0  ;;  %v1325_v53 = vld [vmem:[%s1427_s18 + $0x68] sm:$0xff]  }
  0x1c   : > { %v390_v62 = vadd.f32 %v1441_v9, %v319_v54  ;;  %v391_v63 = vadd.f32 %v1441_v9, %v320_v55  ;;  %v323_v1 = vmul.f32 %v1055_v56, %v1432_v0  ;;  %v324_v2 = vmul.f32 %v1056_v57, %v1432_v0 }
  0x1d   : > { %v452_v4 = vmax.f32 %v388_v58, 0.0  ;;  %v453_v5 = vmax.f32 %v389_v59, 0.0  ;;  %v392_v6 = vadd.f32 %v1441_v9, %v321_v60  ;;  %v393_v7 = vadd.f32 %v1441_v9, %v322_v61  ;;  %v1326_v58 = vld [vmem:[%s1427_s18 + $0x70] sm:$0xff]  }
  0x1e   : > { %v454_v8 = vmax.f32 %v390_v62, 0.0  ;;  %v455_v10 = vmax.f32 %v391_v63, 0.0  ;;  %v394_v11 = vadd.f32 %v1441_v9, %v323_v1  ;;  %v395_v12 = vadd.f32 %v1441_v9, %v324_v2  ;;  %v1327_v63 = vld [vmem:[%s1427_s18 + $0x78] sm:$0xff]  }
  0x1f   : > { %v1176_v14 = vpack.c.bf16 %v453_v5, %v452_v4  ;;  %v456_v15 = vmax.f32 %v392_v6, 0.0  ;;  %v457_v16 = vmax.f32 %v393_v7, 0.0  ;;  %v1059_v17 = vunpack.c.l.bf16 %v1320_v3 }
  0x20   : > { %v1181_v19 = vpack.c.bf16 %v455_v10, %v454_v8  ;;  %v458_v20 = vmax.f32 %v394_v11, 0.0  ;;  %v459_v21 = vmax.f32 %v395_v12, 0.0  ;;  %v1060_v22 = vunpack.c.h.bf16 %v1320_v3 }
  0x21   : > { %1347 = vst [vmem:[%s1466_s25 + $0x20] sm:$0xff] %v1176_v14   ;;  %v1186_v24 = vpack.c.bf16 %v457_v16, %v456_v15  ;;  %v325_v25 = vmul.f32 %v1059_v17, %v1432_v0  ;;  %v1063_v26 = vunpack.c.l.bf16 %v1321_v13  ;;  %v1064_v27 = vunpack.c.h.bf16 %v1321_v13  ;;  %v1328_v14 = vld [vmem:[%s1427_s18 + $0x80] sm:$0xff]  }
  0x22   : > { %1348 = vst [vmem:[%s1466_s25 + $0x28] sm:$0xff] %v1181_v19   ;;  %v1191_v28 = vpack.c.bf16 %v459_v21, %v458_v20  ;;  %v326_v29 = vmul.f32 %v1060_v22, %v1432_v0  ;;  %v1067_v30 = vunpack.c.l.bf16 %v1322_v18  ;;  %v1068_v31 = vunpack.c.h.bf16 %v1322_v18 }
  0x23   : > { %1349 = vst [vmem:[%s1466_s25 + $0x30] sm:$0xff] %v1186_v24   ;;  %v396_v32 = vadd.f32 %v1441_v9, %v325_v25  ;;  %v327_v33 = vmul.f32 %v1063_v26, %v1432_v0  ;;  %v328_v34 = vmul.f32 %v1064_v27, %v1432_v0  ;;  %v1071_v35 = vunpack.c.l.bf16 %v1323_v23 }
  0x24   : > { %1350 = vst [vmem:[%s1466_s25 + $0x38] sm:$0xff] %v1191_v28   ;;  %v397_v36 = vadd.f32 %v1441_v9, %v326_v29  ;;  %v329_v37 = vmul.f32 %v1067_v30, %v1432_v0  ;;  %v330_v38 = vmul.f32 %v1068_v31, %v1432_v0  ;;  %v1072_v39 = vunpack.c.h.bf16 %v1323_v23  ;;  %v1329_v31 = vld [vmem:[%s1427_s18 + $0x88] sm:$0xff]  }
  0x25   : > { %v460_v41 = vmax.f32 %v396_v32, 0.0  ;;  %v398_v42 = vadd.f32 %v1441_v9, %v327_v33  ;;  %v399_v43 = vadd.f32 %v1441_v9, %v328_v34  ;;  %v331_v44 = vmul.f32 %v1071_v35, %v1432_v0 }
  0x26   : > { %v461_v45 = vmax.f32 %v397_v36, 0.0  ;;  %v400_v46 = vadd.f32 %v1441_v9, %v329_v37  ;;  %v401_v47 = vadd.f32 %v1441_v9, %v330_v38  ;;  %v332_v48 = vmul.f32 %v1072_v39, %v1432_v0  ;;  %v1330_v36 = vld [vmem:[%s1427_s18 + $0x90] sm:$0xff]  }
  0x27   : > { %v462_v49 = vmax.f32 %v398_v42, 0.0  ;;  %v463_v50 = vmax.f32 %v399_v43, 0.0  ;;  %v402_v51 = vadd.f32 %v1441_v9, %v331_v44  ;;  %v1075_v52 = vunpack.c.l.bf16 %v1324_v40 }
  0x28   : > { %v1196_v54 = vpack.c.bf16 %v461_v45, %v460_v41  ;;  %v464_v55 = vmax.f32 %v400_v46, 0.0  ;;  %v465_v56 = vmax.f32 %v401_v47, 0.0  ;;  %v403_v57 = vadd.f32 %v1441_v9, %v332_v48  ;;  %v1331_v41 = vld [vmem:[%s1427_s18 + $0x98] sm:$0xff]  }
  0x29   : > { %v1201_v59 = vpack.c.bf16 %v463_v50, %v462_v49  ;;  %v466_v60 = vmax.f32 %v402_v51, 0.0  ;;  %v1076_v61 = vunpack.c.h.bf16 %v1324_v40  ;;  %v333_v62 = vmul.f32 %v1075_v52, %v1432_v0 }
  0x2a   : > { %1351 = vst [vmem:[%s1466_s25 + $0x40] sm:$0xff] %v1196_v54   ;;  %v1206_v1 = vpack.c.bf16 %v465_v56, %v464_v55  ;;  %v467_v2 = vmax.f32 %v403_v57, 0.0  ;;  %v1079_v3 = vunpack.c.l.bf16 %v1325_v53  ;;  %v1080_v4 = vunpack.c.h.bf16 %v1325_v53  ;;  %v1332_v54 = vld [vmem:[%s1427_s18 + $0xa0] sm:$0xff]  }
  0x2b   : > { %1352 = vst [vmem:[%s1466_s25 + $0x48] sm:$0xff] %v1201_v59   ;;  %v334_v5 = vmul.f32 %v1076_v61, %v1432_v0  ;;  %v404_v6 = vadd.f32 %v1441_v9, %v333_v62  ;;  %v1083_v7 = vunpack.c.l.bf16 %v1326_v58  ;;  %v1084_v8 = vunpack.c.h.bf16 %v1326_v58 }
  0x2c   : > { %1353 = vst [vmem:[%s1466_s25 + $0x50] sm:$0xff] %v1206_v1   ;;  %v1211_v10 = vpack.c.bf16 %v467_v2, %v466_v60  ;;  %v335_v11 = vmul.f32 %v1079_v3, %v1432_v0  ;;  %v336_v12 = vmul.f32 %v1080_v4, %v1432_v0  ;;  %v1087_v13 = vunpack.c.l.bf16 %v1327_v63  ;;  %v1333_v4 = vld [vmem:[%s1427_s18 + $0xa8] sm:$0xff]  }
  0x2d   : > { %v405_v15 = vadd.f32 %v1441_v9, %v334_v5  ;;  %v468_v16 = vmax.f32 %v404_v6, 0.0  ;;  %v337_v17 = vmul.f32 %v1083_v7, %v1432_v0  ;;  %v338_v18 = vmul.f32 %v1084_v8, %v1432_v0 }
  0x2e   : > { %1354 = vst [vmem:[%s1466_s25 + $0x58] sm:$0xff] %v1211_v10   ;;  %v406_v19 = vadd.f32 %v1441_v9, %v335_v11  ;;  %v407_v20 = vadd.f32 %v1441_v9, %v336_v12  ;;  %v1088_v21 = vunpack.c.h.bf16 %v1327_v63  ;;  %v339_v22 = vmul.f32 %v1087_v13, %v1432_v0 }
  0x2f   : > { %v469_v23 = vmax.f32 %v405_v15, 0.0  ;;  %v408_v24 = vadd.f32 %v1441_v9, %v337_v17  ;;  %v409_v25 = vadd.f32 %v1441_v9, %v338_v18  ;;  %v1091_v26 = vunpack.c.l.bf16 %v1328_v14 }
  0x30   : > { %v470_v27 = vmax.f32 %v406_v19, 0.0  ;;  %v471_v28 = vmax.f32 %v407_v20, 0.0  ;;  %v340_v29 = vmul.f32 %v1088_v21, %v1432_v0  ;;  %v410_v30 = vadd.f32 %v1441_v9, %v339_v22  ;;  %v1335_v19 = vld [vmem:[%s1427_s18 + $0xb8] sm:$0xff]  }
  0x31   : > { %v1216_v32 = vpack.c.bf16 %v469_v23, %v468_v16  ;;  %v472_v33 = vmax.f32 %v408_v24, 0.0  ;;  %v473_v34 = vmax.f32 %v409_v25, 0.0  ;;  %v1092_v35 = vunpack.c.h.bf16 %v1328_v14  ;;  %v1334_v14 = vld [vmem:[%s1427_s18 + $0xb0] sm:$0xff]  }
  0x32   : > { %v1221_v37 = vpack.c.bf16 %v471_v28, %v470_v27  ;;  %v411_v38 = vadd.f32 %v1441_v9, %v340_v29  ;;  %v474_v39 = vmax.f32 %v410_v30, 0.0  ;;  %v341_v40 = vmul.f32 %v1091_v26, %v1432_v0 }
  0x33   : > { %1355 = vst [vmem:[%s1466_s25 + $0x60] sm:$0xff] %v1216_v32   ;;  %v1226_v42 = vpack.c.bf16 %v473_v34, %v472_v33  ;;  %v342_v43 = vmul.f32 %v1092_v35, %v1432_v0  ;;  %v1095_v44 = vunpack.c.l.bf16 %v1329_v31  ;;  %v1096_v45 = vunpack.c.h.bf16 %v1329_v31  ;;  %v1336_v32 = vld [vmem:[%s1427_s18 + $0xc0] sm:$0xff]  }
  0x34   : > { %1356 = vst [vmem:[%s1466_s25 + $0x68] sm:$0xff] %v1221_v37   ;;  %v475_v46 = vmax.f32 %v411_v38, 0.0  ;;  %v412_v47 = vadd.f32 %v1441_v9, %v341_v40  ;;  %v1099_v48 = vunpack.c.l.bf16 %v1330_v36  ;;  %v1100_v49 = vunpack.c.h.bf16 %v1330_v36 }
  0x35   : > { %1357 = vst [vmem:[%s1466_s25 + $0x70] sm:$0xff] %v1226_v42   ;;  %v413_v50 = vadd.f32 %v1441_v9, %v342_v43  ;;  %v343_v51 = vmul.f32 %v1095_v44, %v1432_v0  ;;  %v344_v52 = vmul.f32 %v1096_v45, %v1432_v0  ;;  %v1103_v53 = vunpack.c.l.bf16 %v1331_v41  ;;  %v1337_v45 = vld [vmem:[%s1427_s18 + $0xc8] sm:$0xff]  }
  0x36   : > { %v1231_v55 = vpack.c.bf16 %v475_v46, %v474_v39  ;;  %v476_v56 = vmax.f32 %v412_v47, 0.0  ;;  %v345_v57 = vmul.f32 %v1099_v48, %v1432_v0  ;;  %v346_v58 = vmul.f32 %v1100_v49, %v1432_v0 }
  0x37   : > { %v477_v59 = vmax.f32 %v413_v50, 0.0  ;;  %v414_v60 = vadd.f32 %v1441_v9, %v343_v51  ;;  %v415_v61 = vadd.f32 %v1441_v9, %v344_v52  ;;  %v1104_v62 = vunpack.c.h.bf16 %v1331_v41 }
  0x38   : > { %1358 = vst [vmem:[%s1466_s25 + $0x78] sm:$0xff] %v1231_v55   ;;  %v416_v63 = vadd.f32 %v1441_v9, %v345_v57  ;;  %v417_v1 = vadd.f32 %v1441_v9, %v346_v58  ;;  %v347_v2 = vmul.f32 %v1103_v53, %v1432_v0  ;;  %v1107_v3 = vunpack.c.l.bf16 %v1332_v54 }
  0x39   : > { %v1236_v5 = vpack.c.bf16 %v477_v59, %v476_v56  ;;  %v478_v6 = vmax.f32 %v414_v60, 0.0  ;;  %v479_v7 = vmax.f32 %v415_v61, 0.0  ;;  %v348_v8 = vmul.f32 %v1104_v62, %v1432_v0 }
  0x3a   : > { %v480_v10 = vmax.f32 %v416_v63, 0.0  ;;  %v481_v11 = vmax.f32 %v417_v1, 0.0  ;;  %v418_v12 = vadd.f32 %v1441_v9, %v347_v2  ;;  %v1108_v13 = vunpack.c.h.bf16 %v1332_v54  ;;  %v1338_v54 = vld [vmem:[%s1427_s18 + $0xd0] sm:$0xff]   ;;  %v1339_v63 = vld [vmem:[%s1427_s18 + $0xd8] sm:$0xff]  }
  0x3b   : > { %1359 = vst [vmem:[%s1466_s25 + $0x80] sm:$0xff] %v1236_v5   ;;  %v1241_v15 = vpack.c.bf16 %v479_v7, %v478_v6  ;;  %v419_v16 = vadd.f32 %v1441_v9, %v348_v8  ;;  %v349_v17 = vmul.f32 %v1107_v3, %v1432_v0  ;;  %v1111_v18 = vunpack.c.l.bf16 %v1333_v4 }
  0x3c   : > { %v1246_v20 = vpack.c.bf16 %v481_v11, %v480_v10  ;;  %v482_v21 = vmax.f32 %v418_v12, 0.0  ;;  %v350_v22 = vmul.f32 %v1108_v13, %v1432_v0  ;;  %v1112_v23 = vunpack.c.h.bf16 %v1333_v4  ;;  %v1340_v10 = vld [vmem:[%s1427_s18 + $0xe0] sm:$0xff]  }
  0x3d   : > { %1360 = vst [vmem:[%s1466_s25 + $0x88] sm:$0xff] %v1241_v15   ;;  %v483_v24 = vmax.f32 %v419_v16, 0.0  ;;  %v420_v25 = vadd.f32 %v1441_v9, %v349_v17  ;;  %v351_v26 = vmul.f32 %v1111_v18, %v1432_v0  ;;  %v1115_v27 = vunpack.c.l.bf16 %v1334_v14 }
  0x3e   : > { %1361 = vst [vmem:[%s1466_s25 + $0x90] sm:$0xff] %v1246_v20   ;;  %v421_v28 = vadd.f32 %v1441_v9, %v350_v22  ;;  %v352_v29 = vmul.f32 %v1112_v23, %v1432_v0  ;;  %v1116_v30 = vunpack.c.h.bf16 %v1334_v14  ;;  %v1119_v31 = vunpack.c.l.bf16 %v1335_v19  ;;  %v1341_v23 = vld [vmem:[%s1427_s18 + $0xe8] sm:$0xff]  }
  0x3f   : > { %v1251_v33 = vpack.c.bf16 %v483_v24, %v482_v21  ;;  %v484_v34 = vmax.f32 %v420_v25, 0.0  ;;  %v422_v35 = vadd.f32 %v1441_v9, %v351_v26  ;;  %v353_v36 = vmul.f32 %v1115_v27, %v1432_v0 }
  0x40   : > { %v485_v37 = vmax.f32 %v421_v28, 0.0  ;;  %v423_v38 = vadd.f32 %v1441_v9, %v352_v29  ;;  %v354_v39 = vmul.f32 %v1116_v30, %v1432_v0  ;;  %v1120_v40 = vunpack.c.h.bf16 %v1335_v19 }
  0x41   : > { %1362 = vst [vmem:[%s1466_s25 + $0x98] sm:$0xff] %v1251_v33   ;;  %v486_v41 = vmax.f32 %v422_v35, 0.0  ;;  %v424_v42 = vadd.f32 %v1441_v9, %v353_v36  ;;  %v355_v43 = vmul.f32 %v1119_v31, %v1432_v0  ;;  %v1123_v44 = vunpack.c.l.bf16 %v1336_v32 }
  0x42   : > { %v1256_v46 = vpack.c.bf16 %v485_v37, %v484_v34  ;;  %v487_v47 = vmax.f32 %v423_v38, 0.0  ;;  %v425_v48 = vadd.f32 %v1441_v9, %v354_v39  ;;  %v356_v49 = vmul.f32 %v1120_v40, %v1432_v0 }
  0x43   : > { %v488_v50 = vmax.f32 %v424_v42, 0.0  ;;  %v426_v51 = vadd.f32 %v1441_v9, %v355_v43  ;;  %v1124_v52 = vunpack.c.h.bf16 %v1336_v32  ;;  %v357_v53 = vmul.f32 %v1123_v44, %v1432_v0  ;;  %v1342_v32 = vld [vmem:[%s1427_s18 + $0xf0] sm:$0xff]  }
  0x44   : > { %1363 = vst [vmem:[%s1466_s25 + $0xa0] sm:$0xff] %v1256_v46   ;;  %v1261_v55 = vpack.c.bf16 %v487_v47, %v486_v41  ;;  %v489_v56 = vmax.f32 %v425_v48, 0.0  ;;  %v427_v57 = vadd.f32 %v1441_v9, %v356_v49  ;;  %v1127_v58 = vunpack.c.l.bf16 %v1337_v45  ;;  %v1343_v41 = vld [vmem:[%s1427_s18 + $0xf8] sm:$0xff]  }
  0x45   : > { %v490_v59 = vmax.f32 %v426_v51, 0.0  ;;  %v358_v60 = vmul.f32 %v1124_v52, %v1432_v0  ;;  %v428_v61 = vadd.f32 %v1441_v9, %v357_v53  ;;  %v1128_v62 = vunpack.c.h.bf16 %v1337_v45 }
  0x46   : > { %1364 = vst [vmem:[%s1466_s25 + $0xa8] sm:$0xff] %v1261_v55   ;;  %v1266_v1 = vpack.c.bf16 %v489_v56, %v488_v50  ;;  %v491_v2 = vmax.f32 %v427_v57, 0.0  ;;  %v359_v3 = vmul.f32 %v1127_v58, %v1432_v0  ;;  %v1131_v4 = vunpack.c.l.bf16 %v1338_v54 }
  0x47   : > { %v429_v5 = vadd.f32 %v1441_v9, %v358_v60  ;;  %v492_v6 = vmax.f32 %v428_v61, 0.0  ;;  %v360_v7 = vmul.f32 %v1128_v62, %v1432_v0  ;;  %v1132_v8 = vunpack.c.h.bf16 %v1338_v54 }
  0x48   : > { %1365 = vst [vmem:[%s1466_s25 + $0xb0] sm:$0xff] %v1266_v1   ;;  %v1271_v11 = vpack.c.bf16 %v491_v2, %v490_v59  ;;  %v430_v12 = vadd.f32 %v1441_v9, %v359_v3  ;;  %v361_v13 = vmul.f32 %v1131_v4, %v1432_v0  ;;  %v1135_v14 = vunpack.c.l.bf16 %v1339_v63 }
  0x49   : > { %v493_v15 = vmax.f32 %v429_v5, 0.0  ;;  %v431_v16 = vadd.f32 %v1441_v9, %v360_v7  ;;  %v362_v17 = vmul.f32 %v1132_v8, %v1432_v0  ;;  %v1136_v18 = vunpack.c.h.bf16 %v1339_v63 }
  0x4a   : > { %1366 = vst [vmem:[%s1466_s25 + $0xb8] sm:$0xff] %v1271_v11   ;;  %v494_v19 = vmax.f32 %v430_v12, 0.0  ;;  %v432_v20 = vadd.f32 %v1441_v9, %v361_v13  ;;  %v363_v21 = vmul.f32 %v1135_v14, %v1432_v0  ;;  %v1139_v22 = vunpack.c.l.bf16 %v1340_v10 }
  0x4b   : > { %v1276_v24 = vpack.c.bf16 %v493_v15, %v492_v6  ;;  %v495_v25 = vmax.f32 %v431_v16, 0.0  ;;  %v433_v26 = vadd.f32 %v1441_v9, %v362_v17  ;;  %v364_v27 = vmul.f32 %v1136_v18, %v1432_v0 }
  0x4c   : > { %v496_v28 = vmax.f32 %v432_v20, 0.0  ;;  %v434_v29 = vadd.f32 %v1441_v9, %v363_v21  ;;  %v1140_v30 = vunpack.c.h.bf16 %v1340_v10  ;;  %v365_v31 = vmul.f32 %v1139_v22, %v1432_v0 }
  0x4d   : > { %1367 = vst [vmem:[%s1466_s25 + $0xc0] sm:$0xff] %v1276_v24   ;;  %v1281_v33 = vpack.c.bf16 %v495_v25, %v494_v19  ;;  %v497_v34 = vmax.f32 %v433_v26, 0.0  ;;  %v435_v35 = vadd.f32 %v1441_v9, %v364_v27  ;;  %v1143_v36 = vunpack.c.l.bf16 %v1341_v23 }
  0x4e   : > { %v498_v37 = vmax.f32 %v434_v29, 0.0  ;;  %v366_v38 = vmul.f32 %v1140_v30, %v1432_v0  ;;  %v436_v39 = vadd.f32 %v1441_v9, %v365_v31  ;;  %v1144_v40 = vunpack.c.h.bf16 %v1341_v23 }
  0x4f   : > { %1368 = vst [vmem:[%s1466_s25 + $0xc8] sm:$0xff] %v1281_v33   ;;  %v1286_v42 = vpack.c.bf16 %v497_v34, %v496_v28  ;;  %v499_v43 = vmax.f32 %v435_v35, 0.0  ;;  %v367_v44 = vmul.f32 %v1143_v36, %v1432_v0  ;;  %v1147_v45 = vunpack.c.l.bf16 %v1342_v32 }
  0x50   : > { %v437_v46 = vadd.f32 %v1441_v9, %v366_v38  ;;  %v500_v47 = vmax.f32 %v436_v39, 0.0  ;;  %v368_v48 = vmul.f32 %v1144_v40, %v1432_v0  ;;  %v1148_v49 = vunpack.c.h.bf16 %v1342_v32 }
  0x51   : > { %1369 = vst [vmem:[%s1466_s25 + $0xd0] sm:$0xff] %v1286_v42   ;;  %v1291_v50 = vpack.c.bf16 %v499_v43, %v498_v37  ;;  %v438_v51 = vadd.f32 %v1441_v9, %v367_v44  ;;  %v369_v52 = vmul.f32 %v1147_v45, %v1432_v0  ;;  %v1151_v53 = vunpack.c.l.bf16 %v1343_v41 }
  0x52   : > { %v501_v54 = vmax.f32 %v437_v46, 0.0  ;;  %v439_v55 = vadd.f32 %v1441_v9, %v368_v48  ;;  %v370_v56 = vmul.f32 %v1148_v49, %v1432_v0  ;;  %v1152_v57 = vunpack.c.h.bf16 %v1343_v41 }
  0x53   : > { %1370 = vst [vmem:[%s1466_s25 + $0xd8] sm:$0xff] %v1291_v50   ;;  %v502_v58 = vmax.f32 %v438_v51, 0.0  ;;  %v440_v59 = vadd.f32 %v1441_v9, %v369_v52  ;;  %v371_v60 = vmul.f32 %v1151_v53, %v1432_v0 }
  0x54   : > { %v1296_v61 = vpack.c.bf16 %v501_v54, %v500_v47  ;;  %v503_v62 = vmax.f32 %v439_v55, 0.0  ;;  %v441_v63 = vadd.f32 %v1441_v9, %v370_v56  ;;  %v372_v1 = vmul.f32 %v1152_v57, %v1432_v0 }
  0x55   : > { %v504_v2 = vmax.f32 %v440_v59, 0.0  ;;  %v442_v3 = vadd.f32 %v1441_v9, %v371_v60 }
  0x56   : > { %1371 = vst [vmem:[%s1466_s25 + $0xe0] sm:$0xff] %v1296_v61   ;;  %v1301_v4 = vpack.c.bf16 %v503_v62, %v502_v58  ;;  %v505_v5 = vmax.f32 %v441_v63, 0.0  ;;  %v443_v6 = vadd.f32 %v1441_v9, %v372_v1 }
  0x57   : > { %v506_v7 = vmax.f32 %v442_v3, 0.0 }
  0x58   : > { %1372 = vst [vmem:[%s1466_s25 + $0xe8] sm:$0xff] %v1301_v4   ;;  %v1306_v8 = vpack.c.bf16 %v505_v5, %v504_v2  ;;  %v507_v10 = vmax.f32 %v443_v6, 0.0 }
  0x5a   : > { %1373 = vst [vmem:[%s1466_s25 + $0xf0] sm:$0xff] %v1306_v8   ;;  %v1311_v11 = vpack.c.bf16 %v507_v10, %v506_v7 }
  0x5c   : > { %1374 = vst [vmem:[%s1466_s25 + $0xf8] sm:$0xff] %v1311_v11  }
  0x5d PF: > { %s13_s12 = sadd.s32 1, %s1389_s12  }
  0x5e   : > { %p10_p4 = scmp.ge.s32.totalorder %s13_s12, 4  }
  0x60   :  { %12 = sbr.rel (!%p10_p4) target bundleno = 1 (0x1), region = 62 }

// kernel: _lambda_.10
= control target key start
LH: loop header
LB: loop body
LE: loop exit
PB: predicated region body
PF: predicated region fallthrough
CT: control target
= control target key end

     0   :  { %s3027_s15 = smov 0   ;;  %s3029_s16 = smov 0   ;;  %s3477_s0 = inlined_call_operand.vmem [shape: bf16[1024,1152], index: 0, kind: input, shape index: {}]   ;;  %s3478_s1 = inlined_call_operand.vmem [shape: bf16[1152,128], index: 1, kind: input, shape index: {}]   ;;  %s3479_s2 = inlined_call_operand.vmem [shape: bf16[1024,128], index: 2, kind: output, shape index: {0}]   ;;  %s3480_s3 = inlined_call_operand.vmem [shape: f32[8,1,128], index: 3, kind: output, shape index: {1}]   ;;  %s3481_s4 = inlined_call_operand.vmem [shape: f32[8,1,128], index: 4, kind: output, shape index: {2}]  }
   0x1   :  { %s3031_s17 = smov 0  }
   0x2 LB: > { %s30_s18 = sadd.s32 1, %s2996_s16  ;;  %p2227_p0 = scmp.ge.s32.totalorder %s3000_s17, 1  ;;  %s3000_s17 = sphi %s3031_s17, %s15_s17   ;;  %s2996_s16 = sphi %s3029_s16, %s3525_s16   ;;  %s2992_s15 = sphi %s3027_s15, %s3524_s15  }
   0x3   : > { %p32_p1 = scmp.ge.s32.totalorder %s30_s18, 8  ;;  %p217_p2 = scmp.lt.s32.totalorder %s3000_s17, 9 }
   0x5   : > { %s3527_s18 = smov (%p32_p1, %s30_s18), 0  ;;  %p218_p3 = pnand %p2227_p0, %p217_p2 }
   0x7   : > { %221 = sbr.rel (%p218_p3) target bundleno = 420 (0x1a4), region = 28 }
   0xc   : > { %v2802_v0 = vld [vmem:[%s3478_s1 + $0x78] sm:$0xff]   ;;  %v2806_v4 = vld [vmem:[%s3478_s1 + $0x70] sm:$0xff]   ;;  %v2810_v8 = vld [vmem:[%s3478_s1 + $0x68] sm:$0xff]   ;;  %s2228_s27 = sshll.u32 %s2992_s15, 4  ;;  %p301_p5 = scmp.lt.s32.totalorder %s2992_s15, 7 }
   0xd   : > { %v2803_v1 = vld [vmem:[%s3478_s1 + $0xf8] sm:$0xff]   ;;  %2457 = vmatprep.subr.bf16.mxu0 %v2802_v0  ;;  %v2807_v5 = vld [vmem:[%s3478_s1 + $0xf0] sm:$0xff]   ;;  %v2811_v9 = vld [vmem:[%s3478_s1 + $0xe8] sm:$0xff]   ;;  %p273_p4 = scmp.lt.s32.totalorder %s2228_s27, 127 }
   0xe   : > { %v2804_v2 = vld [vmem:[%s3478_s1 + $0x38] sm:$0xff]   ;;  %2521 = vmatprep.subr.bf16.mxu1 %v2803_v1  ;;  %v2808_v6 = vld [vmem:[%s3478_s1 + $0x30] sm:$0xff]   ;;  %v2812_v10 = vld [vmem:[%s3478_s1 + $0x28] sm:$0xff]   ;;  %s3531_s15 = smov (!%p301_p5, %s2992_s15), 7 }
   0xf   : > { %v2805_v3 = vld [vmem:[%s3478_s1 + $0xb8] sm:$0xff]   ;;  %2458 = vmatpush3.bf16.msra.mxu0 %v2804_v2  ;;  %v2809_v7 = vld [vmem:[%s3478_s1 + $0xb0] sm:$0xff]   ;;  %v2813_v11 = vld [vmem:[%s3478_s1 + $0xa8] sm:$0xff]   ;;  %s3529_s27 = smov (!%p273_p4, %s2228_s27), 127  ;;  %s306_s28 = scalar_lea.vmem %s3480_s3, %s3531_s15 }
  0x10   : > { %2522 = vmatpush3.bf16.msra.mxu1 %v2805_v3  ;;  %2459 = vmatprep.subr.bf16.mxu0 %v2806_v4  ;;  %v2814_v12 = vld [vmem:[%s3478_s1 + $0x60] sm:$0xff]   ;;  %v2818_v16 = vld [vmem:[%s3478_s1 + $0x58] sm:$0xff]   ;;  %v2822_v20 = vld [vmem:[%s3478_s1 + $0x50] sm:$0xff]   ;;  %s2777_s29 = smul.u32 36, %s3529_s27  ;;  %s312_s5 = scalar_lea.vmem %s3481_s4, %s3531_s15 }
  0x11   : > { %2523 = vmatprep.subr.bf16.mxu1 %v2807_v5  ;;  %v2815_v13 = vld [vmem:[%s3478_s1 + $0xe0] sm:$0xff]   ;;  %v2819_v17 = vld [vmem:[%s3478_s1 + $0xd8] sm:$0xff]   ;;  %v2823_v21 = vld [vmem:[%s3478_s1 + $0xd0] sm:$0xff]  }
  0x12   : > { %v2816_v14 = vld [vmem:[%s3478_s1 + $0x20] sm:$0xff]   ;;  %v2820_v18 = vld [vmem:[%s3478_s1 + $0x18] sm:$0xff]   ;;  %v2824_v22 = vld [vmem:[%s3478_s1 + $0x10] sm:$0xff]   ;;  %s3144_s14 = scalar_lea.vmem %s3477_s0, %s2777_s29 }
  0x13   : > { %2460 = vmatpush3.bf16.msra.mxu0 %v2808_v6  ;;  %v2817_v15 = vld [vmem:[%s3478_s1 + $0xa0] sm:$0xff]   ;;  %v2821_v19 = vld [vmem:[%s3478_s1 + $0x98] sm:$0xff]   ;;  %v2825_v23 = vld [vmem:[%s3478_s1 + $0x90] sm:$0xff]  }
  0x14   : > { %2524 = vmatpush3.bf16.msra.mxu1 %v2809_v7  ;;  %2461 = vmatprep.subr.bf16.mxu0 %v2810_v8  ;;  %v2826_v24 = vld [vmem:[%s3478_s1 + $0x48] sm:$0xff]   ;;  %v2830_v28 = vld [vmem:[%s3478_s1 + $0x40] sm:$0xff]   ;;  %v2840_v36 = vld [vmem:[%s3478_s1 + $0x178] sm:$0xff]  }
  0x15   : > { %2525 = vmatprep.subr.bf16.mxu1 %v2811_v9  ;;  %v2827_v25 = vld [vmem:[%s3478_s1 + $0xc8] sm:$0xff]   ;;  %v2831_v29 = vld [vmem:[%s3478_s1 + $0xc0] sm:$0xff]   ;;  %v2841_v37 = vld [vmem:[%s3478_s1 + $0x138] sm:$0xff]  }
  0x16   : > { %v2828_v26 = vld [vmem:[%s3478_s1 + $0x8] sm:$0xff]   ;;  %v2832_v30 = vld [vmem:[%s3478_s1] sm:$0xff]   ;;  %v2844_v39 = vld [vmem:[%s3144_s14 + $0x54] ss:$36 sps:$4 sm:$0xff]  }
  0x17   : > { %2462 = vmatpush3.bf16.msra.mxu0 %v2812_v10  ;;  %v2829_v27 = vld [vmem:[%s3478_s1 + $0x88] sm:$0xff]   ;;  %v2833_v31 = vld [vmem:[%s3478_s1 + $0x80] sm:$0xff]   ;;  %v2847_v41 = vld [vmem:[%s3144_s14 + $0x50] ss:$36 sps:$4 sm:$0xff]  }
  0x18   : > { %2526 = vmatpush3.bf16.msra.mxu1 %v2813_v11  ;;  %2463 = vmatprep.subr.bf16.mxu0 %v2814_v12  ;;  %v2834_v32 = vld [vmem:[%s3144_s14] ss:$36 sps:$4 sm:$0xff]   ;;  %v2837_v34 = vld [vmem:[%s3144_s14 + $0x8] ss:$36 sps:$4 sm:$0xff]   ;;  %v2848_v42 = vld [vmem:[%s3478_s1 + $0x170] sm:$0xff]  }
  0x19   : > { %2527 = vmatprep.subr.bf16.mxu1 %v2815_v13  ;;  %v2836_v33 = vld [vmem:[%s3144_s14 + $0x4] ss:$36 sps:$4 sm:$0xff]   ;;  %v2839_v35 = vld [vmem:[%s3144_s14 + $0xc] ss:$36 sps:$4 sm:$0xff]   ;;  %v2850_v44 = vld [vmem:[%s3144_s14 + $0x94] ss:$36 sps:$4 sm:$0xff]  }
  0x1a   : > { %1406 = vmatprep.mubr.bf16.mxu0 %v2836_v33  ;;  %1503 = vmatprep.mubr.bf16.mxu1 %v2839_v35  ;;  %v2842_v38 = vld [vmem:[%s3144_s14 + $0x4c] ss:$36 sps:$4 sm:$0xff]   ;;  %v2852_v45 = vld [vmem:[%s3144_s14 + $0x9c] ss:$36 sps:$4 sm:$0xff]   ;;  %v2862_v53 = vld [vmem:[%s3144_s14 + $0xe4] ss:$36 sps:$4 sm:$0xff]  }
  0x1b   : > { %2464 = vmatpush3.bf16.msra.mxu0 %v2816_v14  ;;  %v2846_v40 = vld [vmem:[%s3144_s14 + $0x48] ss:$36 sps:$4 sm:$0xff]   ;;  %v2849_v43 = vld [vmem:[%s3478_s1 + $0x130] sm:$0xff]   ;;  %v2857_v47 = vld [vmem:[%s3478_s1 + $0x1f8] sm:$0xff]  }
  0x1c   : > { %2528 = vmatpush3.bf16.msra.mxu1 %v2817_v15  ;;  %2465 = vmatprep.subr.bf16.mxu0 %v2818_v16  ;;  %v2856_v46 = vld [vmem:[%s3478_s1 + $0x168] sm:$0xff]   ;;  %v2854_v48 = vld [vmem:[%s3144_s14 + $0x90] ss:$36 sps:$4 sm:$0xff]   ;;  %v2859_v50 = vld [vmem:[%s3478_s1 + $0x1b8] sm:$0xff]  }
  0x1d   : > { %2529 = vmatprep.subr.bf16.mxu1 %v2819_v17  ;;  %v2858_v49 = vld [vmem:[%s3478_s1 + $0x128] sm:$0xff]   ;;  %v2855_v51 = vld [vmem:[%s3144_s14 + $0x98] ss:$36 sps:$4 sm:$0xff]   ;;  %v2866_v54 = vld [vmem:[%s3478_s1 + $0x160] sm:$0xff]  }
  0x1e   : > { %v2860_v52 = vld [vmem:[%s3144_s14 + $0xdc] ss:$36 sps:$4 sm:$0xff]   ;;  %v2867_v55 = vld [vmem:[%s3478_s1 + $0x1f0] sm:$0xff]   ;;  %v2870_v60 = vld [vmem:[%s3144_s14 + $0x124] ss:$36 sps:$4 sm:$0xff]  }
  0x1f   : > { %2466 = vmatpush3.bf16.msra.mxu0 %v2820_v18  ;;  %v2868_v56 = vld [vmem:[%s3478_s1 + $0x120] sm:$0xff]   ;;  %v2869_v57 = vld [vmem:[%s3478_s1 + $0x1b0] sm:$0xff]   ;;  %v2864_v58 = vld [vmem:[%s3144_s14 + $0xd8] ss:$36 sps:$4 sm:$0xff]  }
  0x20   : > { %2530 = vmatpush3.bf16.msra.mxu1 %v2821_v19  ;;  %2467 = vmatprep.subr.bf16.mxu0 %v2822_v20  ;;  %v2865_v59 = vld [vmem:[%s3144_s14 + $0xe0] ss:$36 sps:$4 sm:$0xff]   ;;  %v2872_v61 = vld [vmem:[%s3144_s14 + $0x12c] ss:$36 sps:$4 sm:$0xff]   ;;  %v2876_v62 = vld [vmem:[%s3478_s1 + $0x158] sm:$0xff]  }
  0x21   : > { %2531 = vmatprep.subr.bf16.mxu1 %v2823_v21  ;;  %v2877_v63 = vld [vmem:[%s3478_s1 + $0x1e8] sm:$0xff]   ;;  %v2878_v0 = vld [vmem:[%s3478_s1 + $0x118] sm:$0xff]   ;;  %v2874_v2 = vld [vmem:[%s3144_s14 + $0x120] ss:$36 sps:$4 sm:$0xff]  }
  0x22   : > { %v2879_v1 = vld [vmem:[%s3478_s1 + $0x1a8] sm:$0xff]   ;;  %v2882_v5 = vld [vmem:[%s3144_s14 + $0x174] ss:$36 sps:$4 sm:$0xff]   ;;  %v2887_v7 = vld [vmem:[%s3478_s1 + $0x1e0] sm:$0xff]  }
  0x23   : > { %2468 = vmatpush3.bf16.msra.mxu0 %v2824_v22  ;;  %v2875_v3 = vld [vmem:[%s3144_s14 + $0x128] ss:$36 sps:$4 sm:$0xff]   ;;  %v2886_v6 = vld [vmem:[%s3478_s1 + $0x150] sm:$0xff]   ;;  %v2889_v9 = vld [vmem:[%s3478_s1 + $0x1a0] sm:$0xff]  }
  0x24   : > { %2532 = vmatpush3.bf16.msra.mxu1 %v2825_v23  ;;  %2469 = vmatprep.subr.bf16.mxu0 %v2826_v24  ;;  %v2880_v4 = vld [vmem:[%s3144_s14 + $0x16c] ss:$36 sps:$4 sm:$0xff]   ;;  %v2890_v12 = vld [vmem:[%s3144_s14 + $0x1b4] ss:$36 sps:$4 sm:$0xff]   ;;  %v2892_v14 = vld [vmem:[%s3144_s14 + $0x1bc] ss:$36 sps:$4 sm:$0xff]  }
  0x25   : > { %2533 = vmatprep.subr.bf16.mxu1 %v2827_v25  ;;  %v2888_v8 = vld [vmem:[%s3478_s1 + $0x110] sm:$0xff]   ;;  %v2884_v10 = vld [vmem:[%s3144_s14 + $0x168] ss:$36 sps:$4 sm:$0xff]   ;;  %v2897_v15 = vld [vmem:[%s3478_s1 + $0x1d8] sm:$0xff]  }
  0x26   : > { %v2885_v11 = vld [vmem:[%s3144_s14 + $0x170] ss:$36 sps:$4 sm:$0xff]   ;;  %v2896_v13 = vld [vmem:[%s3478_s1 + $0x148] sm:$0xff]   ;;  %v2899_v17 = vld [vmem:[%s3478_s1 + $0x198] sm:$0xff]  }
  0x27   : > { %2470 = vmatpush3.bf16.msra.mxu0 %v2828_v26  ;;  %v2898_v16 = vld [vmem:[%s3478_s1 + $0x108] sm:$0xff]   ;;  %v2900_v18 = vld [vmem:[%s3478_s1 + $0x1d0] sm:$0xff]   ;;  %v2895_v21 = vld [vmem:[%s3144_s14 + $0x1b8] ss:$36 sps:$4 sm:$0xff]  }
  0x28   : > { %2534 = vmatpush3.bf16.msra.mxu1 %v2829_v27  ;;  %2471 = vmatprep.subr.bf16.mxu0 %v2830_v28  ;;  %v2901_v19 = vld [vmem:[%s3478_s1 + $0x190] sm:$0xff]   ;;  %v2902_v22 = vld [vmem:[%s3144_s14 + $0x1fc] ss:$36 sps:$4 sm:$0xff]   ;;  %v2904_v23 = vld [vmem:[%s3144_s14 + $0x204] ss:$36 sps:$4 sm:$0xff]  }
  0x29   : > { %2535 = vmatprep.subr.bf16.mxu1 %v2831_v29  ;;  %v2894_v20 = vld [vmem:[%s3144_s14 + $0x1b0] ss:$36 sps:$4 sm:$0xff]   ;;  %v2908_v24 = vld [vmem:[%s3478_s1 + $0x140] sm:$0xff]   ;;  %v2909_v25 = vld [vmem:[%s3478_s1 + $0x1c8] sm:$0xff]  }
  0x2a   : > { %v2910_v26 = vld [vmem:[%s3478_s1 + $0x100] sm:$0xff]   ;;  %v2911_v27 = vld [vmem:[%s3478_s1 + $0x188] sm:$0xff]   ;;  %v2906_v29 = vld [vmem:[%s3144_s14 + $0x1f8] ss:$36 sps:$4 sm:$0xff]  }
  0x2b   : > { %2472 = vmatpush3.bf16.msra.mxu0 %v2832_v30  ;;  %v2912_v28 = vld [vmem:[%s3478_s1 + $0x1c0] sm:$0xff]   ;;  %v2916_v33 = vld [vmem:[%s3144_s14 + $0x14] ss:$36 sps:$4 sm:$0xff]  }
  0x2c   : > { %2536 = vmatpush3.bf16.msra.mxu1 %v2833_v31  ;;  %2585 = vmatprep.subr.bf16.mxu0 %v2840_v36  ;;  %v2907_v30 = vld [vmem:[%s3144_s14 + $0x200] ss:$36 sps:$4 sm:$0xff]   ;;  %v2914_v35 = vld [vmem:[%s3144_s14 + $0x10] ss:$36 sps:$4 sm:$0xff]   ;;  %v2917_v36 = vld [vmem:[%s3144_s14 + $0x18] ss:$36 sps:$4 sm:$0xff]  }
  0x2d   : > { %2649 = vmatprep.subr.bf16.mxu1 %v2857_v47  ;;  %v2913_v31 = vld [vmem:[%s3478_s1 + $0x180] sm:$0xff]  }
  0x2e   : > { %1407 = vmatmul.mubr.bf16.vlgmr.msra.gmra.mxu0 %v2834_v32  ;;  %v2920_v32 = vld [vmem:[%s3478_s1 + $0x238] sm:$0xff]   ;;  %v2932_v47 = vld [vmem:[%s3144_s14 + $0xa0] ss:$36 sps:$4 sm:$0xff]  }
  0x2f   : > { %1504 = vmatmul.mubr.bf16.vlgmr.msra.gmra.mxu1 %v2837_v34  ;;  %2586 = vmatpush3.bf16.msra.mxu0 %v2841_v37  ;;  %v2919_v34 = vld [vmem:[%s3144_s14 + $0x1c] ss:$36 sps:$4 sm:$0xff]  }
  0x30   : > { %1414 = vmatprep.mubr.bf16.mxu0 %v2842_v38  ;;  %1511 = vmatprep.mubr.bf16.mxu1 %v2844_v39  ;;  %v2921_v37 = vld [vmem:[%s3144_s14 + $0x5c] ss:$36 sps:$4 sm:$0xff]   ;;  %v2923_v38 = vld [vmem:[%s3144_s14 + $0x64] ss:$36 sps:$4 sm:$0xff]   ;;  %v2927_v39 = vld [vmem:[%s3478_s1 + $0x230] sm:$0xff]  }
  0x31   : > { %2587 = vmatprep.subr.bf16.mxu0 %v2848_v42  ;;  %2650 = vmatpush3.bf16.msra.mxu1 %v2859_v50  ;;  %v2926_v42 = vld [vmem:[%s3144_s14 + $0x60] ss:$36 sps:$4 sm:$0xff]   ;;  %v2937_v50 = vld [vmem:[%s3144_s14 + $0xf4] ss:$36 sps:$4 sm:$0xff]  }
  0x32   : > { %2651 = vmatprep.subr.bf16.mxu1 %v2867_v55  ;;  %v2942_v55 = vld [vmem:[%s3144_s14 + $0x134] ss:$36 sps:$4 sm:$0xff]  }
  0x33   : > { %2588 = vmatpush3.bf16.msra.mxu0 %v2849_v43  ;;  %v2928_v43 = vld [vmem:[%s3144_s14 + $0xa4] ss:$36 sps:$4 sm:$0xff]  }
  0x34   : > { %2589 = vmatprep.subr.bf16.mxu0 %v2856_v46  ;;  %v2948_v46 = vld [vmem:[%s3478_s1 + $0x218] sm:$0xff]  }
  0x35   : > { %2652 = vmatpush3.bf16.msra.mxu1 %v2869_v57  ;;  %v2969_v57 = vld [vmem:[%s3478_s1 + $0x200] sm:$0xff]  }
  0x36   : > { %1415 = vmatmul.mubr.bf16.gmra.mxu0 %v2846_v40  ;;  %2653 = vmatprep.subr.bf16.mxu1 %v2877_v63  ;;  %v2934_v40 = vld [vmem:[%s3478_s1 + $0x228] sm:$0xff]   ;;  %v2954_v63 = vld [vmem:[%s3144_s14 + $0x180] ss:$36 sps:$4 sm:$0xff]  }
  0x37   : > { %1512 = vmatmul.mubr.bf16.gmra.mxu1 %v2847_v41  ;;  %1422 = vmatprep.mubr.bf16.mxu0 %v2850_v44  ;;  %v2925_v41 = vld [vmem:[%s3144_s14 + $0x58] ss:$36 sps:$4 sm:$0xff]   ;;  %v2930_v44 = vld [vmem:[%s3144_s14 + $0xac] ss:$36 sps:$4 sm:$0xff]  }
  0x38   : > { %1519 = vmatprep.mubr.bf16.mxu1 %v2852_v45  ;;  %2590 = vmatpush3.bf16.msra.mxu0 %v2858_v49  ;;  %v2941_v45 = vld [vmem:[%s3478_s1 + $0x220] sm:$0xff]   ;;  %v2935_v49 = vld [vmem:[%s3144_s14 + $0xec] ss:$36 sps:$4 sm:$0xff]  }
  0x39   : > { %2591 = vmatprep.subr.bf16.mxu0 %v2866_v54  ;;  %2654 = vmatpush3.bf16.msra.mxu1 %v2879_v1  ;;  %v2940_v54 = vld [vmem:[%s3144_s14 + $0xf0] ss:$36 sps:$4 sm:$0xff]  }
  0x3a   : > { %2655 = vmatprep.subr.bf16.mxu1 %v2887_v7  ;;  %v2958_v1 = vld [vmem:[%s3144_s14 + $0x1cc] ss:$36 sps:$4 sm:$0xff]  }
  0x3b   : > { %v2968_v7 = vld [vmem:[%s3144_s14 + $0x210] ss:$36 sps:$4 sm:$0xff]  }
  0x3c   : > { %2592 = vmatpush3.bf16.msra.mxu0 %v2868_v56  ;;  %v2944_v56 = vld [vmem:[%s3144_s14 + $0x13c] ss:$36 sps:$4 sm:$0xff]  }
  0x3d   : > { %2593 = vmatprep.subr.bf16.mxu0 %v2876_v62  ;;  %2656 = vmatpush3.bf16.msra.mxu1 %v2889_v9  ;;  %v2953_v62 = vld [vmem:[%s3144_s14 + $0x178] ss:$36 sps:$4 sm:$0xff]   ;;  %v2971_v9 = vld [vmem:[%s3144_s14 + $0x140] ss:$36 sps:$4 sm:$0xff]  }
  0x3e   : > { %1423 = vmatmul.mubr.bf16.gmra.mxu0 %v2854_v48  ;;  %2657 = vmatprep.subr.bf16.mxu1 %v2897_v15  ;;  %v2933_v48 = vld [vmem:[%s3144_s14 + $0xa8] ss:$36 sps:$4 sm:$0xff]   ;;  %v2977_v15 = vld [vmem:[%s3144_s14 + $0x218] ss:$36 sps:$4 sm:$0xff]  }
  0x3f   : > { %1520 = vmatmul.mubr.bf16.gmra.mxu1 %v2855_v51  ;;  %1430 = vmatprep.mubr.bf16.mxu0 %v2860_v52  ;;  %v2955_v51 = vld [vmem:[%s3478_s1 + $0x210] sm:$0xff]   ;;  %v2939_v52 = vld [vmem:[%s3144_s14 + $0xe8] ss:$36 sps:$4 sm:$0xff]  }
  0x40   : > { %1527 = vmatprep.mubr.bf16.mxu1 %v2862_v53  ;;  %2594 = vmatpush3.bf16.msra.mxu0 %v2878_v0  ;;  %v2962_v53 = vld [vmem:[%s3478_s1 + $0x208] sm:$0xff]  }
  0x41   : > { %2595 = vmatprep.subr.bf16.mxu0 %v2886_v6  ;;  %2658 = vmatpush3.bf16.msra.mxu1 %v2899_v17  ;;  %v2956_v0 = vld [vmem:[%s3144_s14 + $0x1c4] ss:$36 sps:$4 sm:$0xff]  }
  0x42   : > { %2659 = vmatprep.subr.bf16.mxu1 %v2900_v18  ;;  %v2967_v6 = vld [vmem:[%s3144_s14 + $0x208] ss:$36 sps:$4 sm:$0xff]  }
  0x44   : > { %2596 = vmatpush3.bf16.msra.mxu0 %v2888_v8  ;;  %v2970_v8 = vld [vmem:[%s3144_s14 + $0x20] ss:$36 sps:$4 sm:$0xff]  }
  0x45   : > { %2597 = vmatprep.subr.bf16.mxu0 %v2896_v13  ;;  %2660 = vmatpush3.bf16.msra.mxu1 %v2901_v19  ;;  %v2975_v13 = vld [vmem:[%s3144_s14 + $0x1d0] ss:$36 sps:$4 sm:$0xff]  }
  0x46   : > { %1431 = vmatmul.mubr.bf16.gmra.mxu0 %v2864_v58  ;;  %2661 = vmatprep.subr.bf16.mxu1 %v2909_v25  ;;  %v2946_v58 = vld [vmem:[%s3144_s14 + $0x130] ss:$36 sps:$4 sm:$0xff]  }
  0x47   : > { %1528 = vmatmul.mubr.bf16.gmra.mxu1 %v2865_v59  ;;  %1438 = vmatprep.mubr.bf16.mxu0 %v2870_v60  ;;  %v2947_v59 = vld [vmem:[%s3144_s14 + $0x138] ss:$36 sps:$4 sm:$0xff]  }
  0x48   : > { %1535 = vmatprep.mubr.bf16.mxu1 %v2872_v61  ;;  %2598 = vmatpush3.bf16.msra.mxu0 %v2898_v16  ;;  %v2949_v60 = vld [vmem:[%s3144_s14 + $0x17c] ss:$36 sps:$4 sm:$0xff]   ;;  %v2951_v61 = vld [vmem:[%s3144_s14 + $0x184] ss:$36 sps:$4 sm:$0xff]  }
  0x49   : > { %2599 = vmatprep.subr.bf16.mxu0 %v2908_v24  ;;  %2662 = vmatpush3.bf16.msra.mxu1 %v2911_v27 }
  0x4a   : > { %2663 = vmatprep.subr.bf16.mxu1 %v2912_v28 }
  0x4c   : > { %2600 = vmatpush3.bf16.msra.mxu0 %v2910_v26 }
  0x4d   : > { %2729 = vmatprep.subr.bf16.mxu0 %v2920_v32  ;;  %2664 = vmatpush3.bf16.msra.mxu1 %v2913_v31 }
  0x4e   : > { %1439 = vmatmul.mubr.bf16.gmra.mxu0 %v2874_v2  ;;  %2761 = vmatprep.subr.bf16.mxu1 %v2920_v32  ;;  %v2960_v2 = vld [vmem:[%s3144_s14 + $0x1c0] ss:$36 sps:$4 sm:$0xff]  }
  0x4f   : > { %1536 = vmatmul.mubr.bf16.gmra.mxu1 %v2875_v3  ;;  %1446 = vmatprep.mubr.bf16.mxu0 %v2880_v4  ;;  %v2961_v3 = vld [vmem:[%s3144_s14 + $0x1c8] ss:$36 sps:$4 sm:$0xff]  }
  0x50   : > { %1543 = vmatprep.mubr.bf16.mxu1 %v2882_v5  ;;  %v2963_v4 = vld [vmem:[%s3144_s14 + $0x20c] ss:$36 sps:$4 sm:$0xff]   ;;  %v2965_v5 = vld [vmem:[%s3144_s14 + $0x214] ss:$36 sps:$4 sm:$0xff]  }
  0x56   : > { %1447 = vmatmul.mubr.bf16.gmra.mxu0 %v2884_v10  ;;  %v2972_v10 = vld [vmem:[%s3144_s14 + $0x68] ss:$36 sps:$4 sm:$0xff]  }
  0x57   : > { %1544 = vmatmul.mubr.bf16.gmra.mxu1 %v2885_v11  ;;  %1454 = vmatprep.mubr.bf16.mxu0 %v2890_v12  ;;  %v2973_v11 = vld [vmem:[%s3144_s14 + $0x188] ss:$36 sps:$4 sm:$0xff]   ;;  %v2974_v12 = vld [vmem:[%s3144_s14 + $0xb0] ss:$36 sps:$4 sm:$0xff]  }
  0x58   : > { %1551 = vmatprep.mubr.bf16.mxu1 %v2892_v14  ;;  %v2976_v14 = vld [vmem:[%s3144_s14 + $0xf8] ss:$36 sps:$4 sm:$0xff]   ;;  %s2231_s14 = sshll.u32 %s3529_s27, 2 }
  0x59   : > { %s3422_s24 = scalar_lea.vmem %s3479_s2, %s2231_s14 }
  0x5e   : > { %1455 = vmatmul.mubr.bf16.gmra.mxu0 %v2894_v20 }
  0x5f   : > { %1552 = vmatmul.mubr.bf16.gmra.mxu1 %v2895_v21  ;;  %1462 = vmatprep.mubr.bf16.mxu0 %v2902_v22 }
  0x60   : > { %1559 = vmatprep.mubr.bf16.mxu1 %v2904_v23 }
  0x66   : > { %1463 = vmatmul.mubr.bf16.gmra.mxu0 %v2906_v29 }
  0x67   : > { %1560 = vmatmul.mubr.bf16.gmra.mxu1 %v2907_v30  ;;  %1600 = vmatprep.mubr.bf16.mxu0 %v2916_v33 }
  0x68   : > { %1697 = vmatprep.mubr.bf16.mxu1 %v2919_v34 }
  0x6e   : > { %1601 = vmatmul.mubr.bf16.vlgmr.msra.gmra.mxu0 %v2914_v35 }
  0x6f   : > { %1698 = vmatmul.mubr.bf16.vlgmr.msra.gmra.mxu1 %v2917_v36  ;;  %2730 = vmatpush3.bf16.msra.mxu0 %v2920_v32 }
  0x70   : > { %1608 = vmatprep.mubr.bf16.mxu0 %v2921_v37  ;;  %1705 = vmatprep.mubr.bf16.mxu1 %v2923_v38 }
  0x71   : > { %2731 = vmatprep.subr.bf16.mxu0 %v2927_v39  ;;  %2769 = vmatpush3.bf16.msra.mxu1 %v2920_v32 }
  0x72   : > { %2762 = vmatprep.subr.bf16.mxu1 %v2927_v39 }
  0x73   : > { %2732 = vmatpush3.bf16.msra.mxu0 %v2927_v39 }
  0x74   : > { %2733 = vmatprep.subr.bf16.mxu0 %v2934_v40 }
  0x75   : > { %2770 = vmatpush3.bf16.msra.mxu1 %v2927_v39 }
  0x76   : > { %1609 = vmatmul.mubr.bf16.gmra.mxu0 %v2925_v41  ;;  %2763 = vmatprep.subr.bf16.mxu1 %v2934_v40 }
  0x77   : > { %1706 = vmatmul.mubr.bf16.gmra.mxu1 %v2926_v42  ;;  %1616 = vmatprep.mubr.bf16.mxu0 %v2928_v43 }
  0x78   : > { %1713 = vmatprep.mubr.bf16.mxu1 %v2930_v44  ;;  %2734 = vmatpush3.bf16.msra.mxu0 %v2934_v40 }
  0x79   : > { %2735 = vmatprep.subr.bf16.mxu0 %v2941_v45  ;;  %2771 = vmatpush3.bf16.msra.mxu1 %v2934_v40 }
  0x7a   : > { %2764 = vmatprep.subr.bf16.mxu1 %v2941_v45 }
  0x7c   : > { %2736 = vmatpush3.bf16.msra.mxu0 %v2941_v45 }
  0x7d   : > { %2737 = vmatprep.subr.bf16.mxu0 %v2948_v46  ;;  %2772 = vmatpush3.bf16.msra.mxu1 %v2941_v45 }
  0x7e   : > { %1617 = vmatmul.mubr.bf16.gmra.mxu0 %v2932_v47  ;;  %2765 = vmatprep.subr.bf16.mxu1 %v2948_v46 }
  0x7f   : > { %1714 = vmatmul.mubr.bf16.gmra.mxu1 %v2933_v48  ;;  %1624 = vmatprep.mubr.bf16.mxu0 %v2935_v49 }
  0x80   : > { %1721 = vmatprep.mubr.bf16.mxu1 %v2937_v50  ;;  %2738 = vmatpush3.bf16.msra.mxu0 %v2948_v46 }
  0x81   : > { %2739 = vmatprep.subr.bf16.mxu0 %v2955_v51  ;;  %2773 = vmatpush3.bf16.msra.mxu1 %v2948_v46 }
  0x82   : > { %2766 = vmatprep.subr.bf16.mxu1 %v2955_v51 }
  0x84   : > { %2740 = vmatpush3.bf16.msra.mxu0 %v2955_v51 }
  0x85   : > { %2741 = vmatprep.subr.bf16.mxu0 %v2962_v53  ;;  %2774 = vmatpush3.bf16.msra.mxu1 %v2955_v51 }
  0x86   : > { %1625 = vmatmul.mubr.bf16.gmra.mxu0 %v2939_v52  ;;  %2767 = vmatprep.subr.bf16.mxu1 %v2962_v53 }
  0x87   : > { %1722 = vmatmul.mubr.bf16.gmra.mxu1 %v2940_v54  ;;  %1632 = vmatprep.mubr.bf16.mxu0 %v2942_v55 }
  0x88   : > { %1729 = vmatprep.mubr.bf16.mxu1 %v2944_v56  ;;  %2742 = vmatpush3.bf16.msra.mxu0 %v2962_v53 }
  0x89   : > { %2743 = vmatprep.subr.bf16.mxu0 %v2969_v57  ;;  %2775 = vmatpush3.bf16.msra.mxu1 %v2962_v53 }
  0x8a   : > { %2768 = vmatprep.subr.bf16.mxu1 %v2969_v57 }
  0x8c   : > { %2744 = vmatpush3.bf16.msra.mxu0 %v2969_v57 }
  0x8d   : > { %2776 = vmatpush3.bf16.msra.mxu1 %v2969_v57 }
  0x8e   : > { %1633 = vmatmul.mubr.bf16.gmra.mxu0 %v2946_v58 }
  0x8f   : > { %1730 = vmatmul.mubr.bf16.gmra.mxu1 %v2947_v59  ;;  %1640 = vmatprep.mubr.bf16.mxu0 %v2949_v60 }
  0x90   : > { %1737 = vmatprep.mubr.bf16.mxu1 %v2951_v61 }
  0x96   : > { %1641 = vmatmul.mubr.bf16.gmra.mxu0 %v2953_v62 }
  0x97   : > { %1738 = vmatmul.mubr.bf16.gmra.mxu1 %v2954_v63  ;;  %1648 = vmatprep.mubr.bf16.mxu0 %v2956_v0 }
  0x98   : > { %1745 = vmatprep.mubr.bf16.mxu1 %v2958_v1 }
  0x9e   : > { %1649 = vmatmul.mubr.bf16.gmra.mxu0 %v2960_v2 }
  0x9f   : > { %1746 = vmatmul.mubr.bf16.gmra.mxu1 %v2961_v3  ;;  %1656 = vmatprep.mubr.bf16.mxu0 %v2963_v4 }
  0xa0   : > { %1753 = vmatprep.mubr.bf16.mxu1 %v2965_v5 }
  0xa6   : > { %1657 = vmatmul.mubr.bf16.gmra.mxu0 %v2967_v6 }
  0xa7   : > { %1754 = vmatmul.mubr.bf16.gmra.mxu1 %v2968_v7  ;;  %2745 = vmatprep.mubr.bf16.mxu0 %v2970_v8 }
  0xa8   : > { %2753 = vmatprep.mubr.bf16.mxu1 %v2971_v9 }
  0xae   : > { %2746 = vmatmul.mubr.bf16.vlgmr.msra.gmra.mxu0 %v2972_v10 }
  0xaf   : > { %2754 = vmatmul.mubr.bf16.vlgmr.msra.gmra.mxu1 %v2973_v11  ;;  %2749 = vmatprep.mubr.bf16.mxu0 %v2974_v12 }
  0xb0   : > { %2757 = vmatprep.mubr.bf16.mxu1 %v2975_v13 }
  0xb6   : > { %2750 = vmatmul.mubr.bf16.gmra.mxu0 %v2976_v14 }
  0xb7   : > { %2758 = vmatmul.mubr.bf16.gmra.mxu1 %v2977_v15 }
  0xee   : > { %v2473_v16 = vpop.f32.mrf.mxu0 }
  0xef   : > { %v2537_v17 = vpop.f32.mrf.mxu1 }
  0xf0   : > { %v2474_v18 = vpop.f32.mrf.mxu0 }
  0xf1   : > { %v2475_v19 = vadd.f32 %v2474_v18, %v2473_v16  ;;  %v2538_v20 = vpop.f32.mrf.mxu1 }
  0xf2   : > { %v2539_v21 = vadd.f32 %v2538_v20, %v2537_v17  ;;  %v2476_v22 = vpop.f32.mrf.mxu0 }
  0xf3   : > { %v2540_v23 = vpop.f32.mrf.mxu1 }
  0xf4   : > { %v3344_v24 = vadd.f32 %v2539_v21, %v2475_v19  ;;  %v2477_v25 = vpop.f32.mrf.mxu0 }
  0xf5   : > { %v2478_v26 = vadd.f32 %v2477_v25, %v2476_v22  ;;  %v2541_v27 = vpop.f32.mrf.mxu1 }
  0xf6   : > { %v2542_v28 = vadd.f32 %v2541_v27, %v2540_v23  ;;  %v2479_v29 = vpop.f32.mrf.mxu0 }
  0xf7   : > { %v2543_v30 = vpop.f32.mrf.mxu1 }
  0xf8   : > { %v3346_v31 = vadd.f32 %v2542_v28, %v2478_v26  ;;  %v2480_v32 = vpop.f32.mrf.mxu0 }
  0xf9   : > { %v2481_v33 = vadd.f32 %v2480_v32, %v2479_v29  ;;  %v2544_v34 = vpop.f32.mrf.mxu1 }
  0xfa   : > { %v2545_v35 = vadd.f32 %v2544_v34, %v2543_v30  ;;  %v2482_v36 = vpop.f32.mrf.mxu0 }
  0xfb   : > { %v2546_v37 = vpop.f32.mrf.mxu1 }
  0xfc   : > { %v3348_v38 = vadd.f32 %v2545_v35, %v2481_v33  ;;  %v2483_v39 = vpop.f32.mrf.mxu0 }
  0xfd   : > { %v2484_v40 = vadd.f32 %v2483_v39, %v2482_v36  ;;  %v2547_v41 = vpop.f32.mrf.mxu1 }
  0xfe   : > { %v2548_v42 = vadd.f32 %v2547_v41, %v2546_v37  ;;  %v2485_v43 = vpop.f32.mrf.mxu0 }
  0xff   : > { %v2549_v44 = vpop.f32.mrf.mxu1 }
 0x100   : > { %v3350_v45 = vadd.f32 %v2548_v42, %v2484_v40  ;;  %v2486_v46 = vpop.f32.mrf.mxu0 }
 0x101   : > { %v2487_v47 = vadd.f32 %v2486_v46, %v2485_v43  ;;  %v2550_v48 = vpop.f32.mrf.mxu1 }
 0x102   : > { %v2551_v49 = vadd.f32 %v2550_v48, %v2549_v44  ;;  %v2488_v50 = vpop.f32.mrf.mxu0 }
 0x103   : > { %v2552_v51 = vpop.f32.mrf.mxu1 }
 0x104   : > { %v3352_v52 = vadd.f32 %v2551_v49, %v2487_v47  ;;  %v2489_v53 = vpop.f32.mrf.mxu0 }
 0x105   : > { %v2490_v54 = vadd.f32 %v2489_v53, %v2488_v50  ;;  %v2553_v55 = vpop.f32.mrf.mxu1 }
 0x106   : > { %v2554_v56 = vadd.f32 %v2553_v55, %v2552_v51  ;;  %v2491_v57 = vpop.f32.mrf.mxu0 }
 0x107   : > { %v2555_v58 = vpop.f32.mrf.mxu1 }
 0x108   : > { %v3354_v59 = vadd.f32 %v2554_v56, %v2490_v54  ;;  %v2492_v60 = vpop.f32.mrf.mxu0 }
 0x109   : > { %v2493_v61 = vadd.f32 %v2492_v60, %v2491_v57  ;;  %v2556_v62 = vpop.f32.mrf.mxu1 }
 0x10a   : > { %3482 = vst [vmem:[#allocation3_spill] sm:$0xff] %v3354_v59  ;;  %v2557_v63 = vadd.f32 %v2556_v62, %v2555_v58  ;;  %v2494_v0 = vpop.f32.mrf.mxu0 }
 0x10b   : > { %v2558_v1 = vpop.f32.mrf.mxu1 }
 0x10c   : > { %v3356_v2 = vadd.f32 %v2557_v63, %v2493_v61  ;;  %v2495_v3 = vpop.f32.mrf.mxu0 }
 0x10d   : > { %v2496_v4 = vadd.f32 %v2495_v3, %v2494_v0  ;;  %v2559_v5 = vpop.f32.mrf.mxu1 }
 0x10e   : > { %3483 = vst [vmem:[#allocation4_spill] sm:$0xff] %v3356_v2  ;;  %v2560_v6 = vadd.f32 %v2559_v5, %v2558_v1  ;;  %v2497_v7 = vpop.f32.mrf.mxu0 }
 0x10f   : > { %v2561_v8 = vpop.f32.mrf.mxu1 }
 0x110   : > { %v3358_v9 = vadd.f32 %v2560_v6, %v2496_v4  ;;  %v2498_v10 = vpop.f32.mrf.mxu0 }
 0x111   : > { %v2499_v11 = vadd.f32 %v2498_v10, %v2497_v7  ;;  %v2562_v12 = vpop.f32.mrf.mxu1 }
 0x112   : > { %3484 = vst [vmem:[#allocation5_spill] sm:$0xff] %v3358_v9  ;;  %v2563_v13 = vadd.f32 %v2562_v12, %v2561_v8  ;;  %v2500_v14 = vpop.f32.mrf.mxu0 }
 0x113   : > { %v2564_v15 = vpop.f32.mrf.mxu1 }
 0x114   : > { %v3360_v16 = vadd.f32 %v2563_v13, %v2499_v11  ;;  %v2501_v17 = vpop.f32.mrf.mxu0 }
 0x115   : > { %v2502_v18 = vadd.f32 %v2501_v17, %v2500_v14  ;;  %v2565_v19 = vpop.f32.mrf.mxu1 }
 0x116   : > { %3485 = vst [vmem:[#allocation6_spill] sm:$0xff] %v3360_v16  ;;  %v2566_v20 = vadd.f32 %v2565_v19, %v2564_v15  ;;  %v2503_v21 = vpop.f32.mrf.mxu0 }
 0x117   : > { %v2567_v22 = vpop.f32.mrf.mxu1 }
 0x118   : > { %v3362_v23 = vadd.f32 %v2566_v20, %v2502_v18  ;;  %v2504_v25 = vpop.f32.mrf.mxu0 }
 0x119   : > { %v2505_v26 = vadd.f32 %v2504_v25, %v2503_v21  ;;  %v2568_v27 = vpop.f32.mrf.mxu1 }
 0x11a   : > { %3486 = vst [vmem:[#allocation7_spill] sm:$0xff] %v3362_v23  ;;  %v2569_v28 = vadd.f32 %v2568_v27, %v2567_v22  ;;  %v2506_v29 = vpop.f32.mrf.mxu0 }
 0x11b   : > { %v2570_v30 = vpop.f32.mrf.mxu1 }
 0x11c   : > { %v3364_v32 = vadd.f32 %v2569_v28, %v2505_v26  ;;  %v2507_v33 = vpop.f32.mrf.mxu0 }
 0x11d   : > { %v2508_v34 = vadd.f32 %v2507_v33, %v2506_v29  ;;  %v2571_v35 = vpop.f32.mrf.mxu1 }
 0x11e   : > { %3487 = vst [vmem:[#allocation8_spill] sm:$0xff] %v3364_v32  ;;  %v2572_v36 = vadd.f32 %v2571_v35, %v2570_v30  ;;  %v2509_v37 = vpop.f32.mrf.mxu0 }
 0x11f   : > { %v2573_v39 = vpop.f32.mrf.mxu1 }
 0x120   : > { %v3366_v40 = vadd.f32 %v2572_v36, %v2508_v34  ;;  %v2510_v41 = vpop.f32.mrf.mxu0 }
 0x121   : > { %v2511_v42 = vadd.f32 %v2510_v41, %v2509_v37  ;;  %v2574_v43 = vpop.f32.mrf.mxu1 }
 0x122   : > { %3488 = vst [vmem:[#allocation9_spill] sm:$0xff] %v3366_v40  ;;  %v2575_v44 = vadd.f32 %v2574_v43, %v2573_v39  ;;  %v2512_v46 = vpop.f32.mrf.mxu0 }
 0x123   : > { %v2576_v47 = vpop.f32.mrf.mxu1 }
 0x124   : > { %v3368_v48 = vadd.f32 %v2575_v44, %v2511_v42  ;;  %v2513_v49 = vpop.f32.mrf.mxu0 }
 0x125   : > { %v2514_v50 = vadd.f32 %v2513_v49, %v2512_v46  ;;  %v2577_v51 = vpop.f32.mrf.mxu1 }
 0x126   : > { %3489 = vst [vmem:[#allocation10_spill] sm:$0xff] %v3368_v48  ;;  %v2578_v53 = vadd.f32 %v2577_v51, %v2576_v47  ;;  %v2515_v54 = vpop.f32.mrf.mxu0 }
 0x127   : > { %v2579_v55 = vpop.f32.mrf.mxu1 }
 0x128   : > { %v3370_v56 = vadd.f32 %v2578_v53, %v2514_v50  ;;  %v2516_v57 = vpop.f32.mrf.mxu0 }
 0x129   : > { %v2517_v58 = vadd.f32 %v2516_v57, %v2515_v54  ;;  %v2580_v60 = vpop.f32.mrf.mxu1 }
 0x12a   : > { %3490 = vst [vmem:[#allocation11_spill] sm:$0xff] %v3370_v56  ;;  %v2581_v61 = vadd.f32 %v2580_v60, %v2579_v55  ;;  %v2518_v62 = vpop.f32.mrf.mxu0 }
 0x12b   : > { %v2582_v63 = vpop.f32.mrf.mxu1 }
 0x12c   : > { %v3372_v0 = vadd.f32 %v2581_v61, %v2517_v58  ;;  %v2519_v1 = vpop.f32.mrf.mxu0 }
 0x12d   : > { %v2520_v3 = vadd.f32 %v2519_v1, %v2518_v62  ;;  %v2583_v4 = vpop.f32.mrf.mxu1 }
 0x12e   : > { %3491 = vst [vmem:[#allocation12_spill] sm:$0xff] %v3372_v0  ;;  %v2584_v5 = vadd.f32 %v2583_v4, %v2582_v63  ;;  %v2601_v6 = vpop.f32.mrf.mxu0 }
 0x12f   : > { %v2665_v7 = vpop.f32.mrf.mxu1 }
 0x130   : > { %v3374_v8 = vadd.f32 %v2584_v5, %v2520_v3  ;;  %v2602_v10 = vpop.f32.mrf.mxu0 }
 0x131   : > { %v2603_v11 = vadd.f32 %v2602_v10, %v2601_v6  ;;  %v2666_v12 = vpop.f32.mrf.mxu1 }
 0x132   : > { %3492 = vst [vmem:[#allocation13_spill] sm:$0xff] %v3374_v8  ;;  %v2667_v13 = vadd.f32 %v2666_v12, %v2665_v7  ;;  %v2604_v14 = vpop.f32.mrf.mxu0 }
 0x133   : > { %v1603_v15 = vadd.f32 %v2603_v11, %v3344_v24  ;;  %v2668_v17 = vpop.f32.mrf.mxu1 }
 0x134   : > { %v2605_v18 = vpop.f32.mrf.mxu0 }
 0x135   : > { %v2669_v19 = vpop.f32.mrf.mxu1  ;;  %v3377_v20 = vadd.f32 %v2667_v13, %v1603_v15  ;;  %v2606_v0 = vadd.f32 %v2605_v18, %v2604_v14 }
 0x136   : > { %v2607_v21 = vpop.f32.mrf.mxu0 }
 0x137   : > { %3493 = vst [vmem:[#allocation14_spill] sm:$0xff] %v3377_v20  ;;  %v2671_v22 = vpop.f32.mrf.mxu1 }
 0x138   : > { %v2608_v25 = vpop.f32.mrf.mxu0 }
 0x139   : > { %v2672_v26 = vpop.f32.mrf.mxu1 }
 0x13a   : > { %v2610_v27 = vpop.f32.mrf.mxu0  ;;  %v2673_v9 = vadd.f32 %v2672_v26, %v2671_v22 }
 0x13b   : > { %v2674_v28 = vpop.f32.mrf.mxu1 }
 0x13c   : > { %v2611_v29 = vpop.f32.mrf.mxu0 }
 0x13d   : > { %v2675_v30 = vpop.f32.mrf.mxu1  ;;  %v2612_v59 = vadd.f32 %v2611_v29, %v2610_v27 }
 0x13e   : > { %v2613_v33 = vpop.f32.mrf.mxu0  ;;  %v2676_v14 = vadd.f32 %v2675_v30, %v2674_v28  ;;  %v3506_v30 = vld [vmem:[#allocation7_spill] sm:$0xff] }
 0x13f   : > { %v2677_v34 = vpop.f32.mrf.mxu1 }
 0x140   : > { %v2614_v35 = vpop.f32.mrf.mxu0 }
 0x141   : > { %v2678_v36 = vpop.f32.mrf.mxu1  ;;  %v2615_v40 = vadd.f32 %v2614_v35, %v2613_v33  ;;  %v3503_v33 = vld [vmem:[#allocation4_spill] sm:$0xff] }
 0x142   : > { %v2616_v37 = vpop.f32.mrf.mxu0 }
 0x143   : > { %v3379_v39 = vpop.f32.mrf.mxu1  ;;  %v1619_v27 = vadd.f32 %v2615_v40, %v3352_v52  ;;  %v3508_v40 = vld [vmem:[#allocation9_spill] sm:$0xff] }
 0x144   : > { %3494 = vst [vmem:[#allocation15_spill] sm:$0xff] %v3379_v39  ;;  %v2617_v24 = vpop.f32.mrf.mxu0 }
 0x145   : > { %v3381_v41 = vpop.f32.mrf.mxu1 }
 0x146   : > { %3495 = vst [vmem:[#allocation16_spill] sm:$0xff] %v3381_v41  ;;  %v2619_v42 = vpop.f32.mrf.mxu0  ;;  %v2609_v41 = vadd.f32 %v2608_v25, %v2607_v21  ;;  %v1614_v25 = vadd.f32 %v2612_v59, %v3350_v45  ;;  %v3507_v45 = vld [vmem:[#allocation8_spill] sm:$0xff] }
 0x147   : > { %v2683_v43 = vpop.f32.mrf.mxu1 }
 0x148   : > { %v2620_v44 = vpop.f32.mrf.mxu0 }
 0x149   : > { %v2684_v46 = vpop.f32.mrf.mxu1  ;;  %v2621_v23 = vadd.f32 %v2620_v44, %v2619_v42  ;;  %v3505_v44 = vld [vmem:[#allocation6_spill] sm:$0xff] }
 0x14a   : > { %v2622_v47 = vpop.f32.mrf.mxu0 }
 0x14b   : > { %v2686_v49 = vpop.f32.mrf.mxu1  ;;  %v1627_v35 = vadd.f32 %v2621_v23, %v3503_v33 }
 0x14c   : > { %v2623_v50 = vpop.f32.mrf.mxu0 }
 0x14d   : > { %v2687_v51 = vpop.f32.mrf.mxu1 }
 0x14e   : > { %v2625_v53 = vpop.f32.mrf.mxu0  ;;  %v2688_v26 = vadd.f32 %v2687_v51, %v2686_v49  ;;  %v3509_v49 = vld [vmem:[#allocation3_spill] sm:$0xff] }
 0x14f   : > { %v2689_v54 = vpop.f32.mrf.mxu1 }
 0x150   : > { %v2626_v55 = vpop.f32.mrf.mxu0 }
 0x151   : > { %v2690_v57 = vpop.f32.mrf.mxu1 }
 0x152   : > { %v2628_v58 = vpop.f32.mrf.mxu0  ;;  %v2691_v28 = vadd.f32 %v2690_v57, %v2689_v54 }
 0x153   : > { %v2692_v60 = vpop.f32.mrf.mxu1 }
 0x154   : > { %v2629_v61 = vpop.f32.mrf.mxu0 }
 0x155   : > { %v2693_v62 = vpop.f32.mrf.mxu1  ;;  %v2630_v2 = vadd.f32 %v2629_v61, %v2628_v58 }
 0x156   : > { %v2631_v63 = vpop.f32.mrf.mxu0 }
 0x157   : > { %v2695_v1 = vpop.f32.mrf.mxu1 }
 0x158   : > { %v2632_v3 = vpop.f32.mrf.mxu0 }
 0x159   : > { %v2696_v4 = vpop.f32.mrf.mxu1  ;;  %v2633_v18 = vadd.f32 %v2632_v3, %v2631_v63 }
 0x15a   : > { %v2634_v5 = vpop.f32.mrf.mxu0  ;;  %v2697_v52 = vadd.f32 %v2696_v4, %v2695_v1 }
 0x15b   : > { %v2698_v6 = vpop.f32.mrf.mxu1  ;;  %v1643_v59 = vadd.f32 %v2633_v18, %v3507_v45  ;;  %v3521_v45 = vld [vmem:[#allocation11_spill] sm:$0xff] }
 0x15c   : > { %v2635_v7 = vpop.f32.mrf.mxu0 }
 0x15d   : > { %v2699_v10 = vpop.f32.mrf.mxu1 }
 0x15e   : > { %v3383_v11 = vpop.f32.mrf.mxu0 }
 0x15f   : > { %3496 = vst [vmem:[#allocation17_spill] sm:$0xff] %v3383_v11  ;;  %v3385_v12 = vpop.f32.mrf.mxu1  ;;  %v2670_v11 = vadd.f32 %v2669_v19, %v2668_v17  ;;  %v2679_v17 = vadd.f32 %v2678_v36, %v2677_v34  ;;  %v2618_v19 = vadd.f32 %v2617_v24, %v2616_v37  ;;  %v2700_v36 = vadd.f32 %v2699_v10, %v2698_v6 }
 0x160   : > { %3497 = vst [vmem:[#allocation18_spill] sm:$0xff] %v3385_v12  ;;  %v2638_v13 = vpop.f32.mrf.mxu0  ;;  %v2624_v12 = vadd.f32 %v2623_v50, %v2622_v47  ;;  %v2694_v47 = vadd.f32 %v2693_v62, %v2692_v60 }
 0x161   : > { %v3387_v15 = vpop.f32.mrf.mxu1  ;;  %v1622_v51 = vadd.f32 %v2618_v19, %v3509_v49  ;;  %v1716_v57 = vadd.f32 %v2679_v17, %v1619_v27  ;;  %v3518_v17 = vld [vmem:[#allocation12_spill] sm:$0xff] }
 0x162   : > { %3498 = vst [vmem:[#allocation19_spill] sm:$0xff] %v3387_v15  ;;  %v3389_v56 = vpop.f32.mrf.mxu0  ;;  %v1606_v15 = vadd.f32 %v2606_v0, %v3346_v31  ;;  %v2685_v31 = vadd.f32 %v2684_v46, %v2683_v43  ;;  %v3504_v0 = vld [vmem:[#allocation5_spill] sm:$0xff]  ;;  %v1711_v43 = vadd.f32 %v2676_v14, %v1614_v25 }
 0x163   : > { %3499 = vst [vmem:[#allocation20_spill] sm:$0xff] %v3389_v56  ;;  %v3391_v48 = vpop.f32.mrf.mxu1  ;;  %v2627_v56 = vadd.f32 %v2626_v55, %v2625_v53  ;;  %v1630_v22 = vadd.f32 %v2624_v12, %v3504_v0  ;;  %v3511_v53 = vld [vmem:[#allocation16_spill] sm:$0xff] }
 0x164   : > { %3500 = vst [vmem:[#allocation21_spill] sm:$0xff] %v3391_v48  ;;  %v3393_v8 = vpop.f32.mrf.mxu0  ;;  %v1703_v46 = vadd.f32 %v2670_v11, %v1606_v15  ;;  %v1724_v55 = vadd.f32 %v2685_v31, %v1627_v35  ;;  %v3515_v11 = vld [vmem:[#allocation14_spill] sm:$0xff] }
 0x165   : > { %3501 = vst [vmem:[#allocation22_spill] sm:$0xff] %v3393_v8  ;;  %v3395_v20 = vpop.f32.mrf.mxu1  ;;  %v1611_v8 = vadd.f32 %v2609_v41, %v3348_v38  ;;  %v1635_v38 = vadd.f32 %v2627_v56, %v3505_v44  ;;  %v1638_v41 = vadd.f32 %v2630_v2, %v3506_v30  ;;  %v3510_v56 = vld [vmem:[#allocation15_spill] sm:$0xff] }
 0x166   : > { %3502 = vst [vmem:[#allocation23_spill] sm:$0xff] %v3395_v20  ;;  %v2643_v39 = vpop.f32.mrf.mxu0  ;;  %v2636_v20 = vadd.f32 %v2635_v7, %v2634_v5  ;;  %v2682_v54 = vadd.f32 %v3511_v53, %v3510_v56  ;;  %v3512_v63 = vld [vmem:[#allocation17_spill] sm:$0xff] }
 0x167   : > { %v2707_v32 = vpop.f32.mrf.mxu1  ;;  %v1708_v37 = vadd.f32 %v2673_v9, %v1611_v8  ;;  %v1732_v60 = vadd.f32 %v2691_v28, %v1635_v38  ;;  %v1735_v62 = vadd.f32 %v2694_v47, %v1638_v41  ;;  %v2639_v1 = vadd.f32 %v2638_v13, %v3512_v63  ;;  %v3513_v5 = vld [vmem:[#allocation18_spill] sm:$0xff] }
 0x168   : > { %v2644_v16 = vpop.f32.mrf.mxu0  ;;  %v1646_v34 = vadd.f32 %v2636_v20, %v3508_v40  ;;  %v1727_v20 = vadd.f32 %v2688_v26, %v1630_v22  ;;  %v1740_v8 = vadd.f32 %v2697_v52, %v1643_v59  ;;  %v3519_v22 = vld [vmem:[#allocation13_spill] sm:$0xff]  ;;  %v3520_v47 = vld [vmem:[#allocation10_spill] sm:$0xff] }
 0x169   : > { %v2708_v48 = vpop.f32.mrf.mxu1  ;;  %v2645_v58 = vadd.f32 %v2644_v16, %v2643_v39  ;;  %v3514_v6 = vld [vmem:[#allocation19_spill] sm:$0xff] }
 0x16a   : > { %v2646_v21 = vpop.f32.mrf.mxu0  ;;  %v1743_v4 = vadd.f32 %v2700_v36, %v1646_v34  ;;  %v2703_v7 = vadd.f32 %v3514_v6, %v3513_v5  ;;  %v3516_v16 = vld [vmem:[#allocation20_spill] sm:$0xff]  ;;  %v2709_v25 = vadd.f32 %v2708_v48, %v2707_v32 }
 0x16b   : > { %v2710_v29 = vpop.f32.mrf.mxu1  ;;  %v1659_v19 = vadd.f32 %v2645_v58, %v3518_v17  ;;  %v3522_v52 = vld [vmem:[#allocation21_spill] sm:$0xff] }
 0x16c   : > { %v2647_v42 = vpop.f32.mrf.mxu0  ;;  %v3517_v39 = vld [vmem:[#allocation22_spill] sm:$0xff] }
 0x16d   : > { %v2711_v50 = vpop.f32.mrf.mxu1  ;;  %v2648_v9 = vadd.f32 %v2647_v42, %v2646_v21  ;;  %v2642_v18 = vadd.f32 %v3517_v39, %v3516_v16  ;;  %v3523_v40 = vld [vmem:[#allocation23_spill] sm:$0xff]  ;;  %v1756_v53 = vadd.f32 %v2709_v25, %v1659_v19 }
 0x16e   : > { %v2747_v23 = vpop.f32.mrf.mxu0  ;;  %v2712_v33 = vadd.f32 %v2711_v50, %v2710_v29  ;;  %v1651_v50 = vadd.f32 %v2639_v1, %v3520_v47  ;;  %v2706_v34 = vadd.f32 %v3523_v40, %v3522_v52 }
 0x16f   : > { %v2755_v24 = vpop.f32.mrf.mxu1  ;;  %v1805_v10 = vadd.f32 %v2747_v23, %v1708_v37  ;;  %v1662_v32 = vadd.f32 %v2648_v9, %v3519_v22  ;;  %v1654_v59 = vadd.f32 %v2642_v18, %v3521_v45 }
 0x170   : > { %v1796_v2 = vpop.f32.mrf.mxu0  ;;  %v3417_v27 = vadd.f32 %v2755_v24, %v1740_v8 }
 0x171   : > { %v1828_v61 = vpop.f32.mrf.mxu1  ;;  %v1797_v12 = vadd.f32 %v1796_v2, %v3515_v11  ;;  %v2014_v37 = vmul.f32 %v1805_v10, %v1805_v10  ;;  %v1759_v58 = vadd.f32 %v2712_v33, %v1662_v32  ;;  %v1751_v6 = vadd.f32 %v2706_v34, %v1654_v59 }
 0x172   : > { %v2748_v3 = vpop.f32.mrf.mxu0  ;;  %v3428_v48 = vadd.f32 %v1828_v61, %v1732_v60  ;;  %v1719_v60 = vadd.f32 %v2682_v54, %v1622_v51 }
 0x173   : > { %v1808_v15 = vadd.f32 %v2748_v3, %v1711_v43  ;;  %v2756_v14 = vpop.f32.mrf.mxu1  ;;  %v2012_v38 = vmul.f32 %v1797_v12, %v1797_v12  ;;  %v1748_v3 = vadd.f32 %v2703_v7, %v1651_v50 }
 0x174   : > { %v3424_v13 = vadd.f32 %v2756_v14, %v1743_v4  ;;  %v1799_v21 = vpop.f32.mrf.mxu0 }
 0x175   : > { %v2418_v35 = vpack.c.bf16 %v1808_v15, %v1805_v10  ;;  %v1800_v31 = vadd.f32 %v1799_v21, %v1703_v46  ;;  %v1831_v0 = vpop.f32.mrf.mxu1  ;;  %v2015_v56 = vmul.f32 %v1808_v15, %v1808_v15 }
 0x176   : > { %v2438_v26 = vpack.c.bf16 %v3424_v13, %v3417_v27  ;;  %v3432_v42 = vadd.f32 %v1831_v0, %v1735_v62  ;;  %v2751_v44 = vpop.f32.mrf.mxu0 }
 0x177   : > { %2450 = vst [vmem:[%s3422_s24 + $0x8] sm:$0xff] %v2418_v35   ;;  %v2413_v28 = vpack.c.bf16 %v1800_v31, %v1797_v12  ;;  %v1990_v30 = vadd.f32 %v1800_v31, %v1797_v12  ;;  %v2013_v29 = vmul.f32 %v1800_v31, %v1800_v31  ;;  %v2759_v41 = vpop.f32.mrf.mxu1  ;;  %v1821_v62 = vadd.f32 %v2751_v44, %v1724_v55 }
 0x178   : > { %2454 = vst [vmem:[%s3422_s24 + $0x28] sm:$0xff] %v2438_v26   ;;  %v2433_v36 = vpack.c.bf16 %v3432_v42, %v3428_v48  ;;  %v1812_v23 = vpop.f32.mrf.mxu0  ;;  %v1853_v8 = vadd.f32 %v2759_v41, %v1756_v53  ;;  %v2020_v31 = vmul.f32 %v3428_v48, %v3428_v48  ;;  %v2021_v32 = vmul.f32 %v3432_v42, %v3432_v42 }
 0x179   : > { %2414 = vst [vmem:[%s3422_s24] sm:$0xff] %v2413_v28   ;;  %v1991_v24 = vadd.f32 %v1990_v30, %v1805_v10  ;;  %v2028_v43 = vadd.f32 %v2013_v29, %v2012_v38  ;;  %v1813_v46 = vadd.f32 %v1812_v23, %v1716_v57  ;;  %v1844_v49 = vpop.f32.mrf.mxu1  ;;  %v2018_v25 = vmul.f32 %v1821_v62, %v1821_v62 }
 0x17a   : > { %2453 = vst [vmem:[%s3422_s24 + $0x20] sm:$0xff] %v2433_v36   ;;  %v2752_v2 = vpop.f32.mrf.mxu0  ;;  %v1845_v51 = vadd.f32 %v1844_v49, %v1748_v3  ;;  %v2022_v38 = vmul.f32 %v3417_v27, %v3417_v27  ;;  %v2023_v29 = vmul.f32 %v3424_v13, %v3424_v13  ;;  %v2026_v40 = vmul.f32 %v1853_v8, %v1853_v8 }
 0x17b   : > { %v2029_v61 = vadd.f32 %v2028_v43, %v2014_v37  ;;  %v1992_v63 = vadd.f32 %v1991_v24, %v1808_v15  ;;  %v1824_v1 = vadd.f32 %v2752_v2, %v1727_v20  ;;  %v2760_v9 = vpop.f32.mrf.mxu1  ;;  %v2016_v10 = vmul.f32 %v1813_v46, %v1813_v46 }
 0x17c   : > { %v1856_v4 = vadd.f32 %v2760_v9, %v1759_v58  ;;  %v1815_v5 = vpop.f32.mrf.mxu0  ;;  %v2024_v47 = vmul.f32 %v1845_v51, %v1845_v51 }
 0x17d   : > { %v1993_v57 = vadd.f32 %v1992_v63, %v1813_v46  ;;  %v2030_v11 = vadd.f32 %v2029_v61, %v2015_v56  ;;  %v2428_v12 = vpack.c.bf16 %v1824_v1, %v1821_v62  ;;  %v1847_v14 = vpop.f32.mrf.mxu1  ;;  %v1816_v55 = vadd.f32 %v1815_v5, %v1719_v60 }
 0x17e   : > { %v2448_v54 = vpack.c.bf16 %v1856_v4, %v1853_v8  ;;  %v1848_v15 = vadd.f32 %v1847_v14, %v1751_v6  ;;  %v2019_v19 = vmul.f32 %v1824_v1, %v1824_v1  ;;  %v2027_v23 = vmul.f32 %v1856_v4, %v1856_v4 }
 0x17f   : > { %v2031_v20 = vadd.f32 %v2030_v11, %v2016_v10  ;;  %2452 = vst [vmem:[%s3422_s24 + $0x18] sm:$0xff] %v2428_v12   ;;  %v2423_v16 = vpack.c.bf16 %v1816_v55, %v1813_v46  ;;  %v1994_v39 = vadd.f32 %v1993_v57, %v1816_v55  ;;  %v2017_v7 = vmul.f32 %v1816_v55, %v1816_v55 }
 0x180   : > { %2456 = vst [vmem:[%s3422_s24 + $0x38] sm:$0xff] %v2448_v54   ;;  %v2443_v18 = vpack.c.bf16 %v1848_v15, %v1845_v51  ;;  %v2025_v52 = vmul.f32 %v1848_v15, %v1848_v15 }
 0x181   : > { %2451 = vst [vmem:[%s3422_s24 + $0x10] sm:$0xff] %v2423_v16   ;;  %v1995_v21 = vadd.f32 %v1994_v39, %v1821_v62  ;;  %v2032_v17 = vadd.f32 %v2031_v20, %v2017_v7 }
 0x182   : > { %2455 = vst [vmem:[%s3422_s24 + $0x30] sm:$0xff] %v2443_v18  }
 0x183   : > { %v1996_v33 = vadd.f32 %v1995_v21, %v1824_v1  ;;  %v2033_v35 = vadd.f32 %v2032_v17, %v2018_v25 }
 0x185   : > { %v1997_v0 = vadd.f32 %v1996_v33, %v3428_v48  ;;  %v2034_v22 = vadd.f32 %v2033_v35, %v2019_v19 }
 0x187   : > { %v2035_v26 = vadd.f32 %v2034_v22, %v2020_v31  ;;  %v1998_v44 = vadd.f32 %v1997_v0, %v3432_v42 }
 0x189   : > { %v1999_v28 = vadd.f32 %v1998_v44, %v3417_v27  ;;  %v2036_v30 = vadd.f32 %v2035_v26, %v2021_v32 }
 0x18b   : > { %v2000_v41 = vadd.f32 %v1999_v28, %v3424_v13  ;;  %v2037_v48 = vadd.f32 %v2036_v30, %v2022_v38 }
 0x18d   : > { %v2001_v50 = vadd.f32 %v2000_v41, %v1845_v51  ;;  %v2038_v45 = vadd.f32 %v2037_v48, %v2023_v29 }
 0x18f   : > { %v2002_v59 = vadd.f32 %v2001_v50, %v1848_v15  ;;  %v2039_v42 = vadd.f32 %v2038_v45, %v2024_v47 }
 0x191   : > { %v2003_v34 = vadd.f32 %v2002_v59, %v1853_v8  ;;  %v2040_v36 = vadd.f32 %v2039_v42, %v2025_v52 }
 0x193   : > { %v2004_v27 = vadd.f32 %v2003_v34, %v1856_v4  ;;  %v2041_v37 = vadd.f32 %v2040_v36, %v2026_v40 }
 0x195   : > { %v2005_v24 = vrot.slane %v2004_v27, 4  ;;  %v2042_v43 = vadd.f32 %v2041_v37, %v2027_v23 }
 0x197   : > { %v2006_v46 = vadd.f32 %v2005_v24, %v2004_v27  ;;  %v2043_v13 = vrot.slane %v2042_v43, 4 }
 0x199   : > { %v2007_v49 = vrot.slane %v2006_v46, 2  ;;  %v2044_v56 = vadd.f32 %v2043_v13, %v2042_v43 }
 0x19b   : > { %v2008_v53 = vadd.f32 %v2007_v49, %v2006_v46  ;;  %v2045_v2 = vrot.slane %v2044_v56, 2 }
 0x19d   : > { %v2009_v58 = vrot.slane %v2008_v53, 1  ;;  %v2046_v60 = vadd.f32 %v2045_v2, %v2044_v56 }
 0x19f   : > { %v2010_v61 = vadd.f32 %v2009_v58, %v2008_v53  ;;  %v2047_v62 = vrot.slane %v2046_v60, 1 }
 0x1a1   : > { %2011 = vst [vmem:[%s306_s28] sm:$0x1] %v2010_v61  ;;  %v2048_v63 = vadd.f32 %v2047_v62, %v2046_v60 }
 0x1a3   : > { %2049 = vst [vmem:[%s312_s5] sm:$0x1] %v2048_v63 }
 0x1a4 PF: > { %s15_s17 = sadd.s32 1, %s3000_s17   ;;  %s3524_s15 = smov %s2996_s16 }
 0x1a5   : > { %p12_p6 = scmp.ge.s32.totalorder %s15_s17, 10   ;;  %s3525_s16 = smov %s3527_s18 }
 0x1a7   :  { %14 = sbr.rel (!%p12_p6) target bundleno = 2 (0x2), region = 93 }

// kernel: _lambda_.12
= control target key start
LH: loop header
LB: loop body
LE: loop exit
PB: predicated region body
PF: predicated region fallthrough
CT: control target
= control target key end

     0   :  { %s4491_s1 = inlined_call_operand.vmem [shape: bf16[1792,128], index: 1, kind: input, shape index: {}]   ;;  %s4492_s0 = inlined_call_operand.vmem [shape: bf16[128,1792], index: 0, kind: input, shape index: {}]   ;;  %s4493_s2 = inlined_call_operand.vmem [shape: bf16[128,128], index: 2, kind: output, shape index: {0}]   ;;  %s4494_s3 = inlined_call_operand.vmem [shape: f32[1,1,128], index: 3, kind: output, shape index: {1}]   ;;  %s4495_s4 = inlined_call_operand.vmem [shape: f32[1,1,128], index: 4, kind: output, shape index: {2}]  }
   0x1   :  { %v3268_v0 = vld [vmem:[%s4491_s1 + $0x78] sm:$0xff]   ;;  %v3270_v2 = vld [vmem:[%s4491_s1 + $0x70] sm:$0xff]   ;;  %v3272_v4 = vld [vmem:[%s4491_s1 + $0x68] sm:$0xff]  }
   0x2   :  { %v3269_v1 = vld [vmem:[%s4491_s1 + $0x38] sm:$0xff]   ;;  %2804 = vmatprep.subr.bf16.mxu0 %v3268_v0  ;;  %3252 = vmatprep.subr.bf16.mxu1 %v3268_v0  ;;  %v3271_v3 = vld [vmem:[%s4491_s1 + $0x30] sm:$0xff]   ;;  %v3273_v5 = vld [vmem:[%s4491_s1 + $0x28] sm:$0xff]  }
   0x3   :  { %2805 = vmatpush3.bf16.msra.mxu0 %v3269_v1  ;;  %3260 = vmatpush3.bf16.msra.mxu1 %v3269_v1  ;;  %v3274_v6 = vld [vmem:[%s4491_s1 + $0x60] sm:$0xff]   ;;  %v3276_v8 = vld [vmem:[%s4491_s1 + $0x58] sm:$0xff]   ;;  %v3278_v10 = vld [vmem:[%s4491_s1 + $0x50] sm:$0xff]  }
   0x4   :  { %2806 = vmatprep.subr.bf16.mxu0 %v3270_v2  ;;  %3253 = vmatprep.subr.bf16.mxu1 %v3270_v2  ;;  %v3275_v7 = vld [vmem:[%s4491_s1 + $0x20] sm:$0xff]   ;;  %v3277_v9 = vld [vmem:[%s4491_s1 + $0x18] sm:$0xff]   ;;  %v3279_v13 = vld [vmem:[%s4491_s1 + $0x10] sm:$0xff]  }
   0x5   :  { %v3286_v11 = vld [vmem:[%s4492_s0 + $0x4] ss:$56 sps:$4 sm:$0xff]   ;;  %v3280_v14 = vld [vmem:[%s4491_s1 + $0x48] sm:$0xff]   ;;  %v3284_v18 = vld [vmem:[%s4492_s0] ss:$56 sps:$4 sm:$0xff]  }
   0x6   :  { %v3289_v12 = vld [vmem:[%s4492_s0 + $0x1c4] ss:$56 sps:$4 sm:$0xff]   ;;  %1651 = vmatprep.mubr.bf16.mxu0 %v3286_v11  ;;  %v3281_v15 = vld [vmem:[%s4491_s1 + $0x8] sm:$0xff]   ;;  %v3287_v19 = vld [vmem:[%s4492_s0 + $0x1c0] ss:$56 sps:$4 sm:$0xff]  }
   0x7   :  { %2807 = vmatpush3.bf16.msra.mxu0 %v3271_v3  ;;  %3261 = vmatpush3.bf16.msra.mxu1 %v3271_v3  ;;  %v3282_v16 = vld [vmem:[%s4491_s1 + $0x40] sm:$0xff]   ;;  %v3290_v20 = vld [vmem:[%s4491_s1 + $0xf8] sm:$0xff]   ;;  %v3294_v24 = vld [vmem:[%s4491_s1 + $0xf0] sm:$0xff]  }
   0x8   :  { %2808 = vmatprep.subr.bf16.mxu0 %v3272_v4  ;;  %3254 = vmatprep.subr.bf16.mxu1 %v3272_v4  ;;  %v3283_v17 = vld [vmem:[%s4491_s1] sm:$0xff]   ;;  %v3291_v21 = vld [vmem:[%s4491_s1 + $0x178] sm:$0xff]   ;;  %v3295_v25 = vld [vmem:[%s4491_s1 + $0x170] sm:$0xff]  }
   0x9   :  { %1683 = vmatprep.mubr.bf16.mxu1 %v3289_v12  ;;  %v3292_v22 = vld [vmem:[%s4491_s1 + $0xb8] sm:$0xff]   ;;  %v3298_v26 = vld [vmem:[%s4492_s0 + $0x74] ss:$56 sps:$4 sm:$0xff]   ;;  %v3302_v31 = vld [vmem:[%s4492_s0 + $0x70] ss:$56 sps:$4 sm:$0xff]  }
   0xa   :  { %v3293_v23 = vld [vmem:[%s4491_s1 + $0x138] sm:$0xff]   ;;  %v3296_v27 = vld [vmem:[%s4491_s1 + $0xb0] sm:$0xff]   ;;  %v3304_v30 = vld [vmem:[%s4491_s1 + $0xe8] sm:$0xff]  }
   0xb   :  { %2809 = vmatpush3.bf16.msra.mxu0 %v3273_v5  ;;  %3262 = vmatpush3.bf16.msra.mxu1 %v3273_v5  ;;  %v3300_v28 = vld [vmem:[%s4492_s0 + $0x234] ss:$56 sps:$4 sm:$0xff]   ;;  %v3303_v33 = vld [vmem:[%s4492_s0 + $0x230] ss:$56 sps:$4 sm:$0xff]   ;;  %v3308_v36 = vld [vmem:[%s4491_s1 + $0xe0] sm:$0xff]  }
   0xc   :  { %2810 = vmatprep.subr.bf16.mxu0 %v3274_v6  ;;  %3255 = vmatprep.subr.bf16.mxu1 %v3274_v6  ;;  %v3297_v29 = vld [vmem:[%s4491_s1 + $0x130] sm:$0xff]   ;;  %v3305_v32 = vld [vmem:[%s4491_s1 + $0x168] sm:$0xff]   ;;  %v3309_v37 = vld [vmem:[%s4491_s1 + $0x160] sm:$0xff]  }
   0xd   :  { %v3306_v34 = vld [vmem:[%s4491_s1 + $0xa8] sm:$0xff]   ;;  %v3312_v38 = vld [vmem:[%s4492_s0 + $0xe4] ss:$56 sps:$4 sm:$0xff]   ;;  %v3316_v43 = vld [vmem:[%s4492_s0 + $0xe0] ss:$56 sps:$4 sm:$0xff]  }
   0xe   :  { %v3307_v35 = vld [vmem:[%s4491_s1 + $0x128] sm:$0xff]   ;;  %v3310_v39 = vld [vmem:[%s4491_s1 + $0xa0] sm:$0xff]   ;;  %v3318_v42 = vld [vmem:[%s4491_s1 + $0xd8] sm:$0xff]  }
   0xf   :  { %2811 = vmatpush3.bf16.msra.mxu0 %v3275_v7  ;;  %3263 = vmatpush3.bf16.msra.mxu1 %v3275_v7  ;;  %v3314_v40 = vld [vmem:[%s4492_s0 + $0x2a4] ss:$56 sps:$4 sm:$0xff]   ;;  %v3317_v44 = vld [vmem:[%s4492_s0 + $0x2a0] ss:$56 sps:$4 sm:$0xff]   ;;  %v3322_v48 = vld [vmem:[%s4491_s1 + $0xd0] sm:$0xff]  }
  0x10   :  { %2812 = vmatprep.subr.bf16.mxu0 %v3276_v8  ;;  %3256 = vmatprep.subr.bf16.mxu1 %v3276_v8  ;;  %v3311_v41 = vld [vmem:[%s4491_s1 + $0x120] sm:$0xff]   ;;  %v3319_v45 = vld [vmem:[%s4491_s1 + $0x158] sm:$0xff]   ;;  %v3323_v49 = vld [vmem:[%s4491_s1 + $0x150] sm:$0xff]  }
  0x11   :  { %v3320_v46 = vld [vmem:[%s4491_s1 + $0x98] sm:$0xff]   ;;  %v3326_v50 = vld [vmem:[%s4492_s0 + $0x154] ss:$56 sps:$4 sm:$0xff]   ;;  %v3330_v55 = vld [vmem:[%s4492_s0 + $0x150] ss:$56 sps:$4 sm:$0xff]  }
  0x12   :  { %v3321_v47 = vld [vmem:[%s4491_s1 + $0x118] sm:$0xff]   ;;  %v3328_v51 = vld [vmem:[%s4492_s0 + $0x314] ss:$56 sps:$4 sm:$0xff]   ;;  %v3331_v56 = vld [vmem:[%s4492_s0 + $0x310] ss:$56 sps:$4 sm:$0xff]  }
  0x13   :  { %2813 = vmatpush3.bf16.msra.mxu0 %v3277_v9  ;;  %3264 = vmatpush3.bf16.msra.mxu1 %v3277_v9  ;;  %v3324_v52 = vld [vmem:[%s4491_s1 + $0x90] sm:$0xff]   ;;  %v3332_v54 = vld [vmem:[%s4491_s1 + $0xc8] sm:$0xff]   ;;  %v3336_v60 = vld [vmem:[%s4491_s1 + $0xc0] sm:$0xff]  }
  0x14   :  { %2814 = vmatprep.subr.bf16.mxu0 %v3278_v10  ;;  %3257 = vmatprep.subr.bf16.mxu1 %v3278_v10  ;;  %v3325_v53 = vld [vmem:[%s4491_s1 + $0x110] sm:$0xff]   ;;  %v3333_v57 = vld [vmem:[%s4491_s1 + $0x148] sm:$0xff]   ;;  %v3337_v61 = vld [vmem:[%s4491_s1 + $0x140] sm:$0xff]  }
  0x15   :  { %v3334_v58 = vld [vmem:[%s4491_s1 + $0x88] sm:$0xff]   ;;  %v3338_v62 = vld [vmem:[%s4491_s1 + $0x80] sm:$0xff]   ;;  %v3346_v4 = vld [vmem:[%s4491_s1 + $0x1f8] sm:$0xff]  }
  0x16   :  { %v3335_v59 = vld [vmem:[%s4491_s1 + $0x108] sm:$0xff]   ;;  %v3339_v63 = vld [vmem:[%s4491_s1 + $0x100] sm:$0xff]   ;;  %v3347_v5 = vld [vmem:[%s4491_s1 + $0x1b8] sm:$0xff]  }
  0x17   :  { %2815 = vmatpush3.bf16.msra.mxu0 %v3279_v13  ;;  %3265 = vmatpush3.bf16.msra.mxu1 %v3279_v13  ;;  %v3342_v0 = vld [vmem:[%s4492_s0 + $0xc] ss:$56 sps:$4 sm:$0xff]   ;;  %v3340_v1 = vld [vmem:[%s4492_s0 + $0x8] ss:$56 sps:$4 sm:$0xff]   ;;  %v3348_v6 = vld [vmem:[%s4491_s1 + $0x278] sm:$0xff]  }
  0x18   :  { %2816 = vmatprep.subr.bf16.mxu0 %v3280_v14  ;;  %3258 = vmatprep.subr.bf16.mxu1 %v3280_v14  ;;  %v3343_v2 = vld [vmem:[%s4492_s0 + $0x10] ss:$56 sps:$4 sm:$0xff]   ;;  %v3345_v3 = vld [vmem:[%s4492_s0 + $0x14] ss:$56 sps:$4 sm:$0xff]   ;;  %v3349_v7 = vld [vmem:[%s4491_s1 + $0x238] sm:$0xff]  }
  0x19   :  { %v3350_v8 = vld [vmem:[%s4492_s0 + $0x7c] ss:$56 sps:$4 sm:$0xff]   ;;  %v3354_v10 = vld [vmem:[%s4492_s0 + $0x78] ss:$56 sps:$4 sm:$0xff]  }
  0x1a   :  { %v3352_v9 = vld [vmem:[%s4492_s0 + $0x84] ss:$56 sps:$4 sm:$0xff]   ;;  %v3355_v11 = vld [vmem:[%s4492_s0 + $0x80] ss:$56 sps:$4 sm:$0xff]   ;;  %v3356_v12 = vld [vmem:[%s4491_s1 + $0x1f0] sm:$0xff]  }
  0x1b   :  { %2817 = vmatpush3.bf16.msra.mxu0 %v3281_v15  ;;  %3266 = vmatpush3.bf16.msra.mxu1 %v3281_v15  ;;  %v3357_v13 = vld [vmem:[%s4491_s1 + $0x1b0] sm:$0xff]  }
  0x1c   :  { %2818 = vmatprep.subr.bf16.mxu0 %v3282_v16  ;;  %3259 = vmatprep.subr.bf16.mxu1 %v3282_v16  ;;  %v3358_v14 = vld [vmem:[%s4491_s1 + $0x270] sm:$0xff]   ;;  %v3360_v16 = vld [vmem:[%s4492_s0 + $0xec] ss:$56 sps:$4 sm:$0xff]  }
  0x1d   :  { %v3359_v15 = vld [vmem:[%s4491_s1 + $0x230] sm:$0xff]  }
  0x1f   :  { %2819 = vmatpush3.bf16.msra.mxu0 %v3283_v17  ;;  %3267 = vmatpush3.bf16.msra.mxu1 %v3283_v17  ;;  %v3362_v17 = vld [vmem:[%s4492_s0 + $0xf4] ss:$56 sps:$4 sm:$0xff]  }
  0x20   :  { %2868 = vmatprep.subr.bf16.mxu1 %v3290_v20  ;;  %2932 = vmatprep.subr.bf16.mxu0 %v3291_v21  ;;  %v3365_v20 = vld [vmem:[%s4492_s0 + $0xf0] ss:$56 sps:$4 sm:$0xff]  }
  0x21   :  { %v3367_v21 = vld [vmem:[%s4491_s1 + $0x1a8] sm:$0xff]  }
  0x22   :  { %1652 = vmatmul.mubr.bf16.vlgmr.msra.gmra.mxu0 %v3284_v18  ;;  %1684 = vmatmul.mubr.bf16.vlgmr.msra.gmra.mxu1 %v3287_v19  ;;  %v3366_v18 = vld [vmem:[%s4491_s1 + $0x1e8] sm:$0xff]  }
  0x23   :  { %2869 = vmatpush3.bf16.msra.mxu1 %v3292_v22  ;;  %2933 = vmatpush3.bf16.msra.mxu0 %v3293_v23  ;;  %v3364_v19 = vld [vmem:[%s4492_s0 + $0xe8] ss:$56 sps:$4 sm:$0xff]  }
  0x24   :  { %2870 = vmatprep.subr.bf16.mxu1 %v3294_v24  ;;  %2934 = vmatprep.subr.bf16.mxu0 %v3295_v25  ;;  %v3368_v22 = vld [vmem:[%s4491_s1 + $0x268] sm:$0xff]   ;;  %v3370_v24 = vld [vmem:[%s4492_s0 + $0x15c] ss:$56 sps:$4 sm:$0xff]  }
  0x25   :  { %1659 = vmatprep.mubr.bf16.mxu0 %v3298_v26  ;;  %1691 = vmatprep.mubr.bf16.mxu1 %v3300_v28  ;;  %v3369_v23 = vld [vmem:[%s4491_s1 + $0x228] sm:$0xff]   ;;  %v3372_v25 = vld [vmem:[%s4492_s0 + $0x164] ss:$56 sps:$4 sm:$0xff]   ;;  %v3374_v28 = vld [vmem:[%s4492_s0 + $0x158] ss:$56 sps:$4 sm:$0xff]  }
  0x26   :  { %v3376_v26 = vld [vmem:[%s4491_s1 + $0x1e0] sm:$0xff]  }
  0x27   :  { %2871 = vmatpush3.bf16.msra.mxu1 %v3296_v27  ;;  %2935 = vmatpush3.bf16.msra.mxu0 %v3297_v29  ;;  %v3377_v27 = vld [vmem:[%s4491_s1 + $0x1a0] sm:$0xff]  }
  0x28   :  { %2872 = vmatprep.subr.bf16.mxu1 %v3304_v30  ;;  %2936 = vmatprep.subr.bf16.mxu0 %v3305_v32  ;;  %v3378_v29 = vld [vmem:[%s4491_s1 + $0x260] sm:$0xff]  }
  0x29   :  { %v3379_v30 = vld [vmem:[%s4491_s1 + $0x220] sm:$0xff]  }
  0x2a   :  { %1660 = vmatmul.mubr.bf16.gmra.mxu0 %v3302_v31  ;;  %1692 = vmatmul.mubr.bf16.gmra.mxu1 %v3303_v33  ;;  %v3375_v31 = vld [vmem:[%s4492_s0 + $0x160] ss:$56 sps:$4 sm:$0xff]   ;;  %v3380_v32 = vld [vmem:[%s4492_s0 + $0x1cc] ss:$56 sps:$4 sm:$0xff]  }
  0x2b   :  { %2873 = vmatpush3.bf16.msra.mxu1 %v3306_v34  ;;  %2937 = vmatpush3.bf16.msra.mxu0 %v3307_v35  ;;  %v3382_v33 = vld [vmem:[%s4492_s0 + $0x1d4] ss:$56 sps:$4 sm:$0xff]   ;;  %v3386_v34 = vld [vmem:[%s4491_s1 + $0x1d8] sm:$0xff]  }
  0x2c   :  { %2874 = vmatprep.subr.bf16.mxu1 %v3308_v36  ;;  %2938 = vmatprep.subr.bf16.mxu0 %v3309_v37  ;;  %v3387_v35 = vld [vmem:[%s4491_s1 + $0x198] sm:$0xff]  }
  0x2d   :  { %1667 = vmatprep.mubr.bf16.mxu0 %v3312_v38  ;;  %1699 = vmatprep.mubr.bf16.mxu1 %v3314_v40  ;;  %v3388_v36 = vld [vmem:[%s4491_s1 + $0x258] sm:$0xff]   ;;  %v3384_v38 = vld [vmem:[%s4492_s0 + $0x1c8] ss:$56 sps:$4 sm:$0xff]  }
  0x2e   :  { %v3389_v37 = vld [vmem:[%s4491_s1 + $0x218] sm:$0xff]  }
  0x2f   :  { %2875 = vmatpush3.bf16.msra.mxu1 %v3310_v39  ;;  %2939 = vmatpush3.bf16.msra.mxu0 %v3311_v41  ;;  %v3385_v39 = vld [vmem:[%s4492_s0 + $0x1d0] ss:$56 sps:$4 sm:$0xff]   ;;  %v3390_v40 = vld [vmem:[%s4492_s0 + $0x23c] ss:$56 sps:$4 sm:$0xff]  }
  0x30   :  { %2876 = vmatprep.subr.bf16.mxu1 %v3318_v42  ;;  %2940 = vmatprep.subr.bf16.mxu0 %v3319_v45  ;;  %v3392_v41 = vld [vmem:[%s4492_s0 + $0x244] ss:$56 sps:$4 sm:$0xff]   ;;  %v3396_v42 = vld [vmem:[%s4491_s1 + $0x1d0] sm:$0xff]  }
  0x31   :  { %v3399_v45 = vld [vmem:[%s4491_s1 + $0x210] sm:$0xff]  }
  0x32   :  { %1668 = vmatmul.mubr.bf16.gmra.mxu0 %v3316_v43  ;;  %1700 = vmatmul.mubr.bf16.gmra.mxu1 %v3317_v44  ;;  %v3397_v43 = vld [vmem:[%s4491_s1 + $0x190] sm:$0xff]  }
  0x33   :  { %2877 = vmatpush3.bf16.msra.mxu1 %v3320_v46  ;;  %2941 = vmatpush3.bf16.msra.mxu0 %v3321_v47  ;;  %v3398_v44 = vld [vmem:[%s4491_s1 + $0x250] sm:$0xff]   ;;  %v3395_v47 = vld [vmem:[%s4492_s0 + $0x240] ss:$56 sps:$4 sm:$0xff]  }
  0x34   :  { %2878 = vmatprep.subr.bf16.mxu1 %v3322_v48  ;;  %2942 = vmatprep.subr.bf16.mxu0 %v3323_v49  ;;  %v3394_v46 = vld [vmem:[%s4492_s0 + $0x238] ss:$56 sps:$4 sm:$0xff]   ;;  %v3400_v48 = vld [vmem:[%s4492_s0 + $0x2ac] ss:$56 sps:$4 sm:$0xff]  }
  0x35   :  { %1675 = vmatprep.mubr.bf16.mxu0 %v3326_v50  ;;  %1707 = vmatprep.mubr.bf16.mxu1 %v3328_v51  ;;  %v3402_v49 = vld [vmem:[%s4492_s0 + $0x2b4] ss:$56 sps:$4 sm:$0xff]  }
  0x36   :  { %v3406_v50 = vld [vmem:[%s4491_s1 + $0x1c8] sm:$0xff]  }
  0x37   :  { %2879 = vmatpush3.bf16.msra.mxu1 %v3324_v52  ;;  %2943 = vmatpush3.bf16.msra.mxu0 %v3325_v53  ;;  %v3407_v51 = vld [vmem:[%s4491_s1 + $0x188] sm:$0xff]  }
  0x38   :  { %2880 = vmatprep.subr.bf16.mxu1 %v3332_v54  ;;  %2944 = vmatprep.subr.bf16.mxu0 %v3333_v57  ;;  %v3408_v52 = vld [vmem:[%s4491_s1 + $0x248] sm:$0xff]   ;;  %v3410_v57 = vld [vmem:[%s4492_s0 + $0x31c] ss:$56 sps:$4 sm:$0xff]  }
  0x39   :  { %v3409_v53 = vld [vmem:[%s4491_s1 + $0x208] sm:$0xff]  }
  0x3a   :  { %1676 = vmatmul.mubr.bf16.gmra.mxu0 %v3330_v55  ;;  %1708 = vmatmul.mubr.bf16.gmra.mxu1 %v3331_v56  ;;  %v3404_v54 = vld [vmem:[%s4492_s0 + $0x2a8] ss:$56 sps:$4 sm:$0xff]  }
  0x3b   :  { %2881 = vmatpush3.bf16.msra.mxu1 %v3334_v58  ;;  %2945 = vmatpush3.bf16.msra.mxu0 %v3335_v59  ;;  %v3405_v55 = vld [vmem:[%s4492_s0 + $0x2b0] ss:$56 sps:$4 sm:$0xff]   ;;  %v3416_v56 = vld [vmem:[%s4491_s1 + $0x1c0] sm:$0xff]  }
  0x3c   :  { %2882 = vmatprep.subr.bf16.mxu1 %v3336_v60  ;;  %2946 = vmatprep.subr.bf16.mxu0 %v3337_v61  ;;  %v3412_v58 = vld [vmem:[%s4492_s0 + $0x324] ss:$56 sps:$4 sm:$0xff]  }
  0x3d   :  { %1748 = vmatprep.mubr.bf16.mxu1 %v3342_v0  ;;  %1845 = vmatprep.mubr.bf16.mxu0 %v3345_v3  ;;  %v3417_v59 = vld [vmem:[%s4491_s1 + $0x180] sm:$0xff]  }
  0x3e   :  { %v3418_v60 = vld [vmem:[%s4491_s1 + $0x240] sm:$0xff]  }
  0x3f   :  { %2883 = vmatpush3.bf16.msra.mxu1 %v3338_v62  ;;  %2947 = vmatpush3.bf16.msra.mxu0 %v3339_v63  ;;  %v3419_v61 = vld [vmem:[%s4491_s1 + $0x200] sm:$0xff]   ;;  %v3426_v62 = vld [vmem:[%s4491_s1 + $0x2f8] sm:$0xff]  }
  0x40   :  { %2996 = vmatprep.subr.bf16.mxu1 %v3346_v4  ;;  %3060 = vmatprep.subr.bf16.mxu0 %v3348_v6  ;;  %v3414_v63 = vld [vmem:[%s4492_s0 + $0x318] ss:$56 sps:$4 sm:$0xff]   ;;  %v3425_v3 = vld [vmem:[%s4492_s0 + $0x24] ss:$56 sps:$4 sm:$0xff]  }
  0x41   :  { %v3415_v0 = vld [vmem:[%s4492_s0 + $0x320] ss:$56 sps:$4 sm:$0xff]  }
  0x42   :  { %1749 = vmatmul.mubr.bf16.vlgmr.msra.gmra.mxu1 %v3340_v1  ;;  %1846 = vmatmul.mubr.bf16.vlgmr.msra.gmra.mxu0 %v3343_v2  ;;  %v3428_v1 = vld [vmem:[%s4491_s1 + $0x378] sm:$0xff]  }
  0x43   :  { %2997 = vmatpush3.bf16.msra.mxu1 %v3347_v5  ;;  %3061 = vmatpush3.bf16.msra.mxu0 %v3349_v7  ;;  %v3422_v2 = vld [vmem:[%s4492_s0 + $0x1c] ss:$56 sps:$4 sm:$0xff]   ;;  %v3420_v4 = vld [vmem:[%s4492_s0 + $0x18] ss:$56 sps:$4 sm:$0xff]  }
  0x44   :  { %1756 = vmatprep.mubr.bf16.mxu1 %v3350_v8  ;;  %1853 = vmatprep.mubr.bf16.mxu0 %v3352_v9  ;;  %v3423_v5 = vld [vmem:[%s4492_s0 + $0x20] ss:$56 sps:$4 sm:$0xff]   ;;  %v3430_v8 = vld [vmem:[%s4492_s0 + $0x8c] ss:$56 sps:$4 sm:$0xff]  }
  0x45   :  { %2998 = vmatprep.subr.bf16.mxu1 %v3356_v12  ;;  %3062 = vmatprep.subr.bf16.mxu0 %v3358_v14  ;;  %v3427_v6 = vld [vmem:[%s4491_s1 + $0x2b8] sm:$0xff]   ;;  %v3432_v9 = vld [vmem:[%s4492_s0 + $0x94] ss:$56 sps:$4 sm:$0xff]  }
  0x46   :  { %v3429_v7 = vld [vmem:[%s4491_s1 + $0x338] sm:$0xff]   ;;  %v3438_v12 = vld [vmem:[%s4491_s1 + $0x370] sm:$0xff]   ;;  %v3446_v14 = vld [vmem:[%s4491_s1 + $0x2e8] sm:$0xff]  }
  0x47   :  { %2999 = vmatpush3.bf16.msra.mxu1 %v3357_v13  ;;  %3063 = vmatpush3.bf16.msra.mxu0 %v3359_v15  ;;  %v3439_v13 = vld [vmem:[%s4491_s1 + $0x330] sm:$0xff]   ;;  %v3434_v15 = vld [vmem:[%s4492_s0 + $0x88] ss:$56 sps:$4 sm:$0xff]  }
  0x48   :  { %3000 = vmatprep.subr.bf16.mxu1 %v3366_v18  ;;  %3064 = vmatprep.subr.bf16.mxu0 %v3368_v22  ;;  %v3440_v18 = vld [vmem:[%s4492_s0 + $0xfc] ss:$56 sps:$4 sm:$0xff]   ;;  %v3456_v22 = vld [vmem:[%s4491_s1 + $0x2e0] sm:$0xff]  }
  0x4a   :  { %1757 = vmatmul.mubr.bf16.gmra.mxu1 %v3354_v10  ;;  %1854 = vmatmul.mubr.bf16.gmra.mxu0 %v3355_v11  ;;  %v3436_v10 = vld [vmem:[%s4491_s1 + $0x2f0] sm:$0xff]  }
  0x4b   :  { %1764 = vmatprep.mubr.bf16.mxu1 %v3360_v16  ;;  %1861 = vmatprep.mubr.bf16.mxu0 %v3362_v17  ;;  %v3437_v11 = vld [vmem:[%s4491_s1 + $0x2b0] sm:$0xff]   ;;  %v3448_v17 = vld [vmem:[%s4491_s1 + $0x368] sm:$0xff]  }
  0x4c   :  { %3001 = vmatpush3.bf16.msra.mxu1 %v3367_v21  ;;  %3065 = vmatpush3.bf16.msra.mxu0 %v3369_v23  ;;  %v3435_v16 = vld [vmem:[%s4492_s0 + $0x90] ss:$56 sps:$4 sm:$0xff]   ;;  %v3458_v23 = vld [vmem:[%s4491_s1 + $0x360] sm:$0xff]  }
  0x4d   :  { %3002 = vmatprep.subr.bf16.mxu1 %v3376_v26  ;;  %3066 = vmatprep.subr.bf16.mxu0 %v3378_v29  ;;  %v3449_v21 = vld [vmem:[%s4491_s1 + $0x328] sm:$0xff]   ;;  %v3457_v26 = vld [vmem:[%s4491_s1 + $0x2a0] sm:$0xff]  }
  0x4e   :  { %v3452_v29 = vld [vmem:[%s4492_s0 + $0x174] ss:$56 sps:$4 sm:$0xff]  }
  0x50   :  { %3003 = vmatpush3.bf16.msra.mxu1 %v3377_v27  ;;  %3067 = vmatpush3.bf16.msra.mxu0 %v3379_v30  ;;  %v3459_v27 = vld [vmem:[%s4491_s1 + $0x320] sm:$0xff]   ;;  %v3466_v30 = vld [vmem:[%s4491_s1 + $0x2d8] sm:$0xff]  }
  0x51   :  { %3004 = vmatprep.subr.bf16.mxu1 %v3386_v34  ;;  %3068 = vmatprep.subr.bf16.mxu0 %v3388_v36  ;;  %v3454_v34 = vld [vmem:[%s4492_s0 + $0x168] ss:$56 sps:$4 sm:$0xff]   ;;  %v3476_v36 = vld [vmem:[%s4491_s1 + $0x2d0] sm:$0xff]  }
  0x52   :  { %1765 = vmatmul.mubr.bf16.gmra.mxu1 %v3364_v19  ;;  %1862 = vmatmul.mubr.bf16.gmra.mxu0 %v3365_v20  ;;  %v3442_v19 = vld [vmem:[%s4492_s0 + $0x104] ss:$56 sps:$4 sm:$0xff]   ;;  %v3447_v20 = vld [vmem:[%s4491_s1 + $0x2a8] sm:$0xff]  }
  0x53   :  { %1772 = vmatprep.mubr.bf16.mxu1 %v3370_v24  ;;  %1869 = vmatprep.mubr.bf16.mxu0 %v3372_v25  ;;  %v3444_v24 = vld [vmem:[%s4492_s0 + $0xf8] ss:$56 sps:$4 sm:$0xff]  }
  0x54   :  { %3005 = vmatpush3.bf16.msra.mxu1 %v3387_v35  ;;  %3069 = vmatpush3.bf16.msra.mxu0 %v3389_v37  ;;  %v3445_v25 = vld [vmem:[%s4492_s0 + $0x100] ss:$56 sps:$4 sm:$0xff]   ;;  %v3455_v35 = vld [vmem:[%s4492_s0 + $0x170] ss:$56 sps:$4 sm:$0xff]   ;;  %v3460_v37 = vld [vmem:[%s4492_s0 + $0x1dc] ss:$56 sps:$4 sm:$0xff]  }
  0x55   :  { %3006 = vmatprep.subr.bf16.mxu1 %v3396_v42  ;;  %3070 = vmatprep.subr.bf16.mxu0 %v3398_v44  ;;  %v3486_v42 = vld [vmem:[%s4491_s1 + $0x2c8] sm:$0xff]   ;;  %v3465_v44 = vld [vmem:[%s4492_s0 + $0x1e0] ss:$56 sps:$4 sm:$0xff]  }
  0x58   :  { %3007 = vmatpush3.bf16.msra.mxu1 %v3397_v43  ;;  %3071 = vmatpush3.bf16.msra.mxu0 %v3399_v45  ;;  %v3464_v43 = vld [vmem:[%s4492_s0 + $0x1d8] ss:$56 sps:$4 sm:$0xff]   ;;  %v3487_v45 = vld [vmem:[%s4491_s1 + $0x288] sm:$0xff]  }
  0x59   :  { %3008 = vmatprep.subr.bf16.mxu1 %v3406_v50  ;;  %3072 = vmatprep.subr.bf16.mxu0 %v3408_v52  ;;  %v3496_v50 = vld [vmem:[%s4491_s1 + $0x2c0] sm:$0xff]  }
  0x5a   :  { %1773 = vmatmul.mubr.bf16.gmra.mxu1 %v3374_v28  ;;  %1870 = vmatmul.mubr.bf16.gmra.mxu0 %v3375_v31  ;;  %v3450_v28 = vld [vmem:[%s4492_s0 + $0x16c] ss:$56 sps:$4 sm:$0xff]   ;;  %v3467_v31 = vld [vmem:[%s4491_s1 + $0x298] sm:$0xff]  }
  0x5b   :  { %1780 = vmatprep.mubr.bf16.mxu1 %v3380_v32  ;;  %1877 = vmatprep.mubr.bf16.mxu0 %v3382_v33  ;;  %v3468_v32 = vld [vmem:[%s4491_s1 + $0x358] sm:$0xff]   ;;  %v3498_v52 = vld [vmem:[%s4491_s1 + $0x340] sm:$0xff]  }
  0x5c   :  { %3009 = vmatpush3.bf16.msra.mxu1 %v3407_v51  ;;  %3073 = vmatpush3.bf16.msra.mxu0 %v3409_v53  ;;  %v3469_v33 = vld [vmem:[%s4491_s1 + $0x318] sm:$0xff]   ;;  %v3497_v51 = vld [vmem:[%s4491_s1 + $0x280] sm:$0xff]  }
  0x5d   :  { %3010 = vmatprep.subr.bf16.mxu1 %v3416_v56  ;;  %3074 = vmatprep.subr.bf16.mxu0 %v3418_v60  ;;  %v3499_v53 = vld [vmem:[%s4491_s1 + $0x300] sm:$0xff]   ;;  %v3480_v56 = vld [vmem:[%s4492_s0 + $0x2bc] ss:$56 sps:$4 sm:$0xff]  }
  0x5e   :  { %v3490_v60 = vld [vmem:[%s4492_s0 + $0x32c] ss:$56 sps:$4 sm:$0xff]  }
  0x60   :  { %3011 = vmatpush3.bf16.msra.mxu1 %v3417_v59  ;;  %3075 = vmatpush3.bf16.msra.mxu0 %v3419_v61  ;;  %v3485_v59 = vld [vmem:[%s4492_s0 + $0x2c0] ss:$56 sps:$4 sm:$0xff]   ;;  %v3492_v61 = vld [vmem:[%s4492_s0 + $0x334] ss:$56 sps:$4 sm:$0xff]  }
  0x61   :  { %3124 = vmatprep.subr.bf16.mxu1 %v3426_v62  ;;  %3188 = vmatprep.subr.bf16.mxu0 %v3428_v1  ;;  %v3494_v62 = vld [vmem:[%s4492_s0 + $0x328] ss:$56 sps:$4 sm:$0xff]   ;;  %v3505_v1 = vld [vmem:[%s4492_s0 + $0x34] ss:$56 sps:$4 sm:$0xff]  }
  0x62   :  { %1781 = vmatmul.mubr.bf16.gmra.mxu1 %v3384_v38  ;;  %1878 = vmatmul.mubr.bf16.gmra.mxu0 %v3385_v39  ;;  %v3462_v38 = vld [vmem:[%s4492_s0 + $0x1e4] ss:$56 sps:$4 sm:$0xff]   ;;  %v3477_v39 = vld [vmem:[%s4491_s1 + $0x290] sm:$0xff]  }
  0x63   :  { %1788 = vmatprep.mubr.bf16.mxu1 %v3390_v40  ;;  %1885 = vmatprep.mubr.bf16.mxu0 %v3392_v41  ;;  %v3478_v40 = vld [vmem:[%s4491_s1 + $0x350] sm:$0xff]  }
  0x64   :  { %v3479_v41 = vld [vmem:[%s4491_s1 + $0x310] sm:$0xff]  }
  0x6a   :  { %1789 = vmatmul.mubr.bf16.gmra.mxu1 %v3394_v46  ;;  %1886 = vmatmul.mubr.bf16.gmra.mxu0 %v3395_v47  ;;  %v3470_v46 = vld [vmem:[%s4492_s0 + $0x24c] ss:$56 sps:$4 sm:$0xff]  }
  0x6b   :  { %1796 = vmatprep.mubr.bf16.mxu1 %v3400_v48  ;;  %1893 = vmatprep.mubr.bf16.mxu0 %v3402_v49  ;;  %v3488_v47 = vld [vmem:[%s4491_s1 + $0x348] sm:$0xff]  }
  0x6c   :  { %v3489_v48 = vld [vmem:[%s4491_s1 + $0x308] sm:$0xff]  }
  0x6d   :  { %v3472_v49 = vld [vmem:[%s4492_s0 + $0x254] ss:$56 sps:$4 sm:$0xff]  }
  0x72   :  { %1797 = vmatmul.mubr.bf16.gmra.mxu1 %v3404_v54  ;;  %1894 = vmatmul.mubr.bf16.gmra.mxu0 %v3405_v55  ;;  %v3474_v54 = vld [vmem:[%s4492_s0 + $0x248] ss:$56 sps:$4 sm:$0xff]  }
  0x73   :  { %1804 = vmatprep.mubr.bf16.mxu1 %v3410_v57  ;;  %1901 = vmatprep.mubr.bf16.mxu0 %v3412_v58  ;;  %v3475_v55 = vld [vmem:[%s4492_s0 + $0x250] ss:$56 sps:$4 sm:$0xff]   ;;  %v3482_v57 = vld [vmem:[%s4492_s0 + $0x2c4] ss:$56 sps:$4 sm:$0xff]  }
  0x74   :  { %v3484_v58 = vld [vmem:[%s4492_s0 + $0x2b8] ss:$56 sps:$4 sm:$0xff]  }
  0x7a   :  { %1805 = vmatmul.mubr.bf16.gmra.mxu1 %v3414_v63  ;;  %1902 = vmatmul.mubr.bf16.gmra.mxu0 %v3415_v0  ;;  %v3495_v63 = vld [vmem:[%s4492_s0 + $0x330] ss:$56 sps:$4 sm:$0xff]   ;;  %v3502_v0 = vld [vmem:[%s4492_s0 + $0x2c] ss:$56 sps:$4 sm:$0xff]  }
  0x7b   :  { %1942 = vmatprep.mubr.bf16.mxu1 %v3422_v2  ;;  %2039 = vmatprep.mubr.bf16.mxu0 %v3425_v3  ;;  %v3500_v2 = vld [vmem:[%s4492_s0 + $0x28] ss:$56 sps:$4 sm:$0xff]  }
  0x7c   :  { %v3503_v3 = vld [vmem:[%s4492_s0 + $0x30] ss:$56 sps:$4 sm:$0xff]  }
  0x82   :  { %1943 = vmatmul.mubr.bf16.vlgmr.msra.gmra.mxu1 %v3420_v4  ;;  %2040 = vmatmul.mubr.bf16.vlgmr.msra.gmra.mxu0 %v3423_v5  ;;  %v3506_v4 = vld [vmem:[%s4492_s0 + $0x9c] ss:$56 sps:$4 sm:$0xff]  }
  0x83   :  { %3125 = vmatpush3.bf16.msra.mxu1 %v3427_v6  ;;  %3189 = vmatpush3.bf16.msra.mxu0 %v3429_v7  ;;  %v3508_v5 = vld [vmem:[%s4492_s0 + $0xa4] ss:$56 sps:$4 sm:$0xff]   ;;  %v3510_v6 = vld [vmem:[%s4492_s0 + $0x98] ss:$56 sps:$4 sm:$0xff]  }
  0x84   :  { %1950 = vmatprep.mubr.bf16.mxu1 %v3430_v8  ;;  %2047 = vmatprep.mubr.bf16.mxu0 %v3432_v9  ;;  %v3511_v7 = vld [vmem:[%s4492_s0 + $0xa0] ss:$56 sps:$4 sm:$0xff]   ;;  %v3512_v8 = vld [vmem:[%s4492_s0 + $0x10c] ss:$56 sps:$4 sm:$0xff]  }
  0x85   :  { %3126 = vmatprep.subr.bf16.mxu1 %v3436_v10  ;;  %3190 = vmatprep.subr.bf16.mxu0 %v3438_v12  ;;  %v3514_v9 = vld [vmem:[%s4492_s0 + $0x114] ss:$56 sps:$4 sm:$0xff]   ;;  %v3516_v10 = vld [vmem:[%s4492_s0 + $0x108] ss:$56 sps:$4 sm:$0xff]  }
  0x86   :  { %v3518_v12 = vld [vmem:[%s4492_s0 + $0x17c] ss:$56 sps:$4 sm:$0xff]  }
  0x87   :  { %3127 = vmatpush3.bf16.msra.mxu1 %v3437_v11  ;;  %3191 = vmatpush3.bf16.msra.mxu0 %v3439_v13  ;;  %v3517_v11 = vld [vmem:[%s4492_s0 + $0x110] ss:$56 sps:$4 sm:$0xff]   ;;  %v3520_v13 = vld [vmem:[%s4492_s0 + $0x184] ss:$56 sps:$4 sm:$0xff]  }
  0x88   :  { %3128 = vmatprep.subr.bf16.mxu1 %v3446_v14  ;;  %3192 = vmatprep.subr.bf16.mxu0 %v3448_v17  ;;  %v3522_v14 = vld [vmem:[%s4492_s0 + $0x178] ss:$56 sps:$4 sm:$0xff]   ;;  %v3526_v17 = vld [vmem:[%s4492_s0 + $0x1f4] ss:$56 sps:$4 sm:$0xff]  }
  0x8a   :  { %1951 = vmatmul.mubr.bf16.gmra.mxu1 %v3434_v15  ;;  %2048 = vmatmul.mubr.bf16.gmra.mxu0 %v3435_v16  ;;  %v3523_v15 = vld [vmem:[%s4492_s0 + $0x180] ss:$56 sps:$4 sm:$0xff]   ;;  %v3524_v16 = vld [vmem:[%s4492_s0 + $0x1ec] ss:$56 sps:$4 sm:$0xff]  }
  0x8b   :  { %1958 = vmatprep.mubr.bf16.mxu1 %v3440_v18  ;;  %2055 = vmatprep.mubr.bf16.mxu0 %v3442_v19  ;;  %v3528_v18 = vld [vmem:[%s4492_s0 + $0x1e8] ss:$56 sps:$4 sm:$0xff]  }
  0x8c   :  { %3129 = vmatpush3.bf16.msra.mxu1 %v3447_v20  ;;  %3193 = vmatpush3.bf16.msra.mxu0 %v3449_v21  ;;  %v3529_v19 = vld [vmem:[%s4492_s0 + $0x1f0] ss:$56 sps:$4 sm:$0xff]   ;;  %v3530_v20 = vld [vmem:[%s4492_s0 + $0x25c] ss:$56 sps:$4 sm:$0xff]  }
  0x8d   :  { %3130 = vmatprep.subr.bf16.mxu1 %v3456_v22  ;;  %3194 = vmatprep.subr.bf16.mxu0 %v3458_v23  ;;  %v3532_v21 = vld [vmem:[%s4492_s0 + $0x264] ss:$56 sps:$4 sm:$0xff]  }
  0x90   :  { %3131 = vmatpush3.bf16.msra.mxu1 %v3457_v26  ;;  %3195 = vmatpush3.bf16.msra.mxu0 %v3459_v27 }
  0x91   :  { %3132 = vmatprep.subr.bf16.mxu1 %v3466_v30  ;;  %3196 = vmatprep.subr.bf16.mxu0 %v3468_v32  ;;  %v3534_v30 = vld [vmem:[%s4492_s0 + $0x258] ss:$56 sps:$4 sm:$0xff]   ;;  %v3536_v32 = vld [vmem:[%s4492_s0 + $0x2cc] ss:$56 sps:$4 sm:$0xff]  }
  0x92   :  { %1959 = vmatmul.mubr.bf16.gmra.mxu1 %v3444_v24  ;;  %2056 = vmatmul.mubr.bf16.gmra.mxu0 %v3445_v25 }
  0x93   :  { %1966 = vmatprep.mubr.bf16.mxu1 %v3450_v28  ;;  %2063 = vmatprep.mubr.bf16.mxu0 %v3452_v29 }
  0x94   :  { %3133 = vmatpush3.bf16.msra.mxu1 %v3467_v31  ;;  %3197 = vmatpush3.bf16.msra.mxu0 %v3469_v33  ;;  %v3535_v31 = vld [vmem:[%s4492_s0 + $0x260] ss:$56 sps:$4 sm:$0xff]   ;;  %v3538_v33 = vld [vmem:[%s4492_s0 + $0x2d4] ss:$56 sps:$4 sm:$0xff]  }
  0x95   :  { %3134 = vmatprep.subr.bf16.mxu1 %v3476_v36  ;;  %3198 = vmatprep.subr.bf16.mxu0 %v3478_v40 }
  0x98   :  { %3135 = vmatpush3.bf16.msra.mxu1 %v3477_v39  ;;  %3199 = vmatpush3.bf16.msra.mxu0 %v3479_v41 }
  0x99   :  { %3136 = vmatprep.subr.bf16.mxu1 %v3486_v42  ;;  %3200 = vmatprep.subr.bf16.mxu0 %v3488_v47  ;;  %v3541_v47 = vld [vmem:[%s4492_s0 + $0x2d0] ss:$56 sps:$4 sm:$0xff]  }
  0x9a   :  { %1967 = vmatmul.mubr.bf16.gmra.mxu1 %v3454_v34  ;;  %2064 = vmatmul.mubr.bf16.gmra.mxu0 %v3455_v35 }
  0x9b   :  { %1974 = vmatprep.mubr.bf16.mxu1 %v3460_v37  ;;  %2071 = vmatprep.mubr.bf16.mxu0 %v3462_v38 }
  0x9c   :  { %3137 = vmatpush3.bf16.msra.mxu1 %v3487_v45  ;;  %3201 = vmatpush3.bf16.msra.mxu0 %v3489_v48  ;;  %v3542_v48 = vld [vmem:[%s4492_s0 + $0x33c] ss:$56 sps:$4 sm:$0xff]  }
  0x9d   :  { %3138 = vmatprep.subr.bf16.mxu1 %v3496_v50  ;;  %3202 = vmatprep.subr.bf16.mxu0 %v3498_v52 }
  0xa0   :  { %3139 = vmatpush3.bf16.msra.mxu1 %v3497_v51  ;;  %3203 = vmatpush3.bf16.msra.mxu0 %v3499_v53 }
  0xa2   :  { %1975 = vmatmul.mubr.bf16.gmra.mxu1 %v3464_v43  ;;  %2072 = vmatmul.mubr.bf16.gmra.mxu0 %v3465_v44 }
  0xa3   :  { %1982 = vmatprep.mubr.bf16.mxu1 %v3470_v46  ;;  %2079 = vmatprep.mubr.bf16.mxu0 %v3472_v49  ;;  %v3540_v46 = vld [vmem:[%s4492_s0 + $0x2c8] ss:$56 sps:$4 sm:$0xff]   ;;  %v3544_v49 = vld [vmem:[%s4492_s0 + $0x344] ss:$56 sps:$4 sm:$0xff]  }
  0xaa   :  { %1983 = vmatmul.mubr.bf16.gmra.mxu1 %v3474_v54  ;;  %2080 = vmatmul.mubr.bf16.gmra.mxu0 %v3475_v55 }
  0xab   :  { %1990 = vmatprep.mubr.bf16.mxu1 %v3480_v56  ;;  %2087 = vmatprep.mubr.bf16.mxu0 %v3482_v57 }
  0xb2   :  { %1991 = vmatmul.mubr.bf16.gmra.mxu1 %v3484_v58  ;;  %2088 = vmatmul.mubr.bf16.gmra.mxu0 %v3485_v59 }
  0xb3   :  { %1998 = vmatprep.mubr.bf16.mxu1 %v3490_v60  ;;  %2095 = vmatprep.mubr.bf16.mxu0 %v3492_v61 }
  0xba   :  { %1999 = vmatmul.mubr.bf16.gmra.mxu1 %v3494_v62  ;;  %2096 = vmatmul.mubr.bf16.gmra.mxu0 %v3495_v63  ;;  %v3546_v62 = vld [vmem:[%s4492_s0 + $0x338] ss:$56 sps:$4 sm:$0xff]  }
  0xbb   :  { %2136 = vmatprep.mubr.bf16.mxu1 %v3502_v0  ;;  %2233 = vmatprep.mubr.bf16.mxu0 %v3505_v1  ;;  %v3547_v63 = vld [vmem:[%s4492_s0 + $0x340] ss:$56 sps:$4 sm:$0xff]  }
  0xc2   :  { %2137 = vmatmul.mubr.bf16.vlgmr.msra.gmra.mxu1 %v3500_v2  ;;  %2234 = vmatmul.mubr.bf16.vlgmr.msra.gmra.mxu0 %v3503_v3 }
  0xc3   :  { %2144 = vmatprep.mubr.bf16.mxu1 %v3506_v4  ;;  %2241 = vmatprep.mubr.bf16.mxu0 %v3508_v5 }
  0xca   :  { %2145 = vmatmul.mubr.bf16.gmra.mxu1 %v3510_v6  ;;  %2242 = vmatmul.mubr.bf16.gmra.mxu0 %v3511_v7 }
  0xcb   :  { %2152 = vmatprep.mubr.bf16.mxu1 %v3512_v8  ;;  %2249 = vmatprep.mubr.bf16.mxu0 %v3514_v9 }
  0xd2   :  { %2153 = vmatmul.mubr.bf16.gmra.mxu1 %v3516_v10  ;;  %2250 = vmatmul.mubr.bf16.gmra.mxu0 %v3517_v11 }
  0xd3   :  { %2160 = vmatprep.mubr.bf16.mxu1 %v3518_v12  ;;  %2257 = vmatprep.mubr.bf16.mxu0 %v3520_v13 }
  0xda   :  { %2161 = vmatmul.mubr.bf16.gmra.mxu1 %v3522_v14  ;;  %2258 = vmatmul.mubr.bf16.gmra.mxu0 %v3523_v15 }
  0xdb   :  { %2168 = vmatprep.mubr.bf16.mxu1 %v3524_v16  ;;  %2265 = vmatprep.mubr.bf16.mxu0 %v3526_v17 }
  0xe2   :  { %v2820_v22 = vpop.f32.mrf.mxu0  ;;  %v2844_v23 = vpop.f32.mrf.mxu1  ;;  %2169 = vmatmul.mubr.bf16.gmra.mxu1 %v3528_v18  ;;  %2266 = vmatmul.mubr.bf16.gmra.mxu0 %v3529_v19 }
  0xe3   :  { %2176 = vmatprep.mubr.bf16.mxu1 %v3530_v20  ;;  %2273 = vmatprep.mubr.bf16.mxu0 %v3532_v21 }
  0xe4   :  { %v2821_v24 = vpop.f32.mrf.mxu0  ;;  %v2845_v25 = vpop.f32.mrf.mxu1 }
  0xe5   :  { %v4215_v26 = vadd.f32 %v2821_v24, %v2820_v22  ;;  %v4217_v27 = vadd.f32 %v2845_v25, %v2844_v23 }
  0xe6   :  { %v2823_v28 = vpop.f32.mrf.mxu0  ;;  %v2847_v29 = vpop.f32.mrf.mxu1 }
  0xe8   :  { %v2824_v34 = vpop.f32.mrf.mxu0  ;;  %v2848_v35 = vpop.f32.mrf.mxu1 }
  0xe9   :  { %v4231_v36 = vadd.f32 %v2824_v34, %v2823_v28  ;;  %v4233_v37 = vadd.f32 %v2848_v35, %v2847_v29 }
  0xea   :  { %v2826_v38 = vpop.f32.mrf.mxu0  ;;  %v2850_v39 = vpop.f32.mrf.mxu1  ;;  %2177 = vmatmul.mubr.bf16.gmra.mxu1 %v3534_v30  ;;  %2274 = vmatmul.mubr.bf16.gmra.mxu0 %v3535_v31 }
  0xeb   :  { %2184 = vmatprep.mubr.bf16.mxu1 %v3536_v32  ;;  %2281 = vmatprep.mubr.bf16.mxu0 %v3538_v33 }
  0xec   :  { %v2827_v40 = vpop.f32.mrf.mxu0  ;;  %v2851_v41 = vpop.f32.mrf.mxu1 }
  0xed   :  { %v4235_v42 = vadd.f32 %v2827_v40, %v2826_v38  ;;  %v4237_v43 = vadd.f32 %v2851_v41, %v2850_v39 }
  0xee   :  { %v2829_v44 = vpop.f32.mrf.mxu0  ;;  %v2853_v45 = vpop.f32.mrf.mxu1 }
  0xf0   :  { %v2830_v50 = vpop.f32.mrf.mxu0  ;;  %v2854_v51 = vpop.f32.mrf.mxu1 }
  0xf1   :  { %v4251_v52 = vadd.f32 %v2830_v50, %v2829_v44  ;;  %v4253_v53 = vadd.f32 %v2854_v51, %v2853_v45 }
  0xf2   :  { %v2832_v54 = vpop.f32.mrf.mxu0  ;;  %v2856_v55 = vpop.f32.mrf.mxu1  ;;  %2185 = vmatmul.mubr.bf16.gmra.mxu1 %v3540_v46  ;;  %2282 = vmatmul.mubr.bf16.gmra.mxu0 %v3541_v47 }
  0xf3   :  { %2192 = vmatprep.mubr.bf16.mxu1 %v3542_v48  ;;  %2289 = vmatprep.mubr.bf16.mxu0 %v3544_v49 }
  0xf4   :  { %v2833_v56 = vpop.f32.mrf.mxu0  ;;  %v2857_v57 = vpop.f32.mrf.mxu1 }
  0xf5   :  { %v4255_v58 = vadd.f32 %v2833_v56, %v2832_v54  ;;  %v4257_v59 = vadd.f32 %v2857_v57, %v2856_v55 }
  0xf6   :  { %v2835_v60 = vpop.f32.mrf.mxu0  ;;  %v2859_v61 = vpop.f32.mrf.mxu1 }
  0xf8   :  { %v2836_v0 = vpop.f32.mrf.mxu0  ;;  %v2860_v1 = vpop.f32.mrf.mxu1 }
  0xf9   :  { %v4265_v2 = vadd.f32 %v2836_v0, %v2835_v60  ;;  %v4267_v3 = vadd.f32 %v2860_v1, %v2859_v61 }
  0xfa   :  { %v2838_v4 = vpop.f32.mrf.mxu0  ;;  %v2862_v5 = vpop.f32.mrf.mxu1  ;;  %2193 = vmatmul.mubr.bf16.gmra.mxu1 %v3546_v62  ;;  %2290 = vmatmul.mubr.bf16.gmra.mxu0 %v3547_v63 }
  0xfc   :  { %v2839_v6 = vpop.f32.mrf.mxu0  ;;  %v2863_v7 = vpop.f32.mrf.mxu1 }
  0xfd   :  { %v4269_v8 = vadd.f32 %v2839_v6, %v2838_v4  ;;  %v4271_v9 = vadd.f32 %v2863_v7, %v2862_v5 }
  0xfe   :  { %v2841_v10 = vpop.f32.mrf.mxu0  ;;  %v2865_v11 = vpop.f32.mrf.mxu1 }
 0x100   :  { %v2842_v12 = vpop.f32.mrf.mxu0  ;;  %v2866_v13 = vpop.f32.mrf.mxu1 }
 0x101   :  { %v4273_v14 = vadd.f32 %v2842_v12, %v2841_v10  ;;  %v4275_v15 = vadd.f32 %v2866_v13, %v2865_v11 }
 0x102   :  { %v2884_v16 = vpop.f32.mrf.mxu1  ;;  %v2948_v17 = vpop.f32.mrf.mxu0 }
 0x104   :  { %v2885_v18 = vpop.f32.mrf.mxu1  ;;  %v2949_v19 = vpop.f32.mrf.mxu0 }
 0x105   :  { %v2886_v20 = vadd.f32 %v2885_v18, %v2884_v16  ;;  %v2950_v21 = vadd.f32 %v2949_v19, %v2948_v17 }
 0x106   :  { %v2887_v22 = vpop.f32.mrf.mxu1  ;;  %v2951_v23 = vpop.f32.mrf.mxu0 }
 0x107   :  { %v1751_v24 = vadd.f32 %v2886_v20, %v4215_v26 }
 0x108   :  { %v2888_v25 = vpop.f32.mrf.mxu1  ;;  %v2952_v28 = vpop.f32.mrf.mxu0 }
 0x109   :  { %v4278_v29 = vadd.f32 %v2950_v21, %v1751_v24  ;;  %v2889_v30 = vadd.f32 %v2888_v25, %v2887_v22  ;;  %v2953_v31 = vadd.f32 %v2952_v28, %v2951_v23 }
 0x10a   :  { %v2890_v32 = vpop.f32.mrf.mxu1  ;;  %v2954_v33 = vpop.f32.mrf.mxu0 }
 0x10b   :  { %v1754_v34 = vadd.f32 %v2889_v30, %v4231_v36 }
 0x10c   :  { %v2891_v35 = vpop.f32.mrf.mxu1  ;;  %v2955_v38 = vpop.f32.mrf.mxu0 }
 0x10d   :  { %v4281_v39 = vadd.f32 %v2953_v31, %v1754_v34  ;;  %v2892_v40 = vadd.f32 %v2891_v35, %v2890_v32  ;;  %v2956_v41 = vadd.f32 %v2955_v38, %v2954_v33 }
 0x10e   :  { %v2893_v44 = vpop.f32.mrf.mxu1  ;;  %v2957_v45 = vpop.f32.mrf.mxu0 }
 0x10f   :  { %v1759_v26 = vadd.f32 %v2892_v40, %v4235_v42 }
 0x110   :  { %v2894_v46 = vpop.f32.mrf.mxu1  ;;  %v2958_v47 = vpop.f32.mrf.mxu0 }
 0x111   :  { %v4284_v48 = vadd.f32 %v2956_v41, %v1759_v26  ;;  %v2895_v49 = vadd.f32 %v2894_v46, %v2893_v44  ;;  %v2959_v50 = vadd.f32 %v2958_v47, %v2957_v45 }
 0x112   :  { %v2896_v51 = vpop.f32.mrf.mxu1  ;;  %v2960_v54 = vpop.f32.mrf.mxu0 }
 0x113   :  { %v1762_v36 = vadd.f32 %v2895_v49, %v4251_v52 }
 0x114   :  { %v2897_v55 = vpop.f32.mrf.mxu1  ;;  %v2961_v56 = vpop.f32.mrf.mxu0 }
 0x115   :  { %v4287_v57 = vadd.f32 %v2959_v50, %v1762_v36  ;;  %v2898_v60 = vadd.f32 %v2897_v55, %v2896_v51  ;;  %v2962_v61 = vadd.f32 %v2961_v56, %v2960_v54 }
 0x116   :  { %v2899_v62 = vpop.f32.mrf.mxu1  ;;  %v2963_v63 = vpop.f32.mrf.mxu0 }
 0x117   :  { %v1767_v42 = vadd.f32 %v2898_v60, %v4255_v58 }
 0x118   :  { %v2900_v0 = vpop.f32.mrf.mxu1  ;;  %v2964_v1 = vpop.f32.mrf.mxu0 }
 0x119   :  { %v4290_v4 = vadd.f32 %v2962_v61, %v1767_v42  ;;  %v2901_v5 = vadd.f32 %v2900_v0, %v2899_v62  ;;  %v2965_v6 = vadd.f32 %v2964_v1, %v2963_v63 }
 0x11a   :  { %v2902_v7 = vpop.f32.mrf.mxu1  ;;  %v2966_v10 = vpop.f32.mrf.mxu0 }
 0x11b   :  { %v1770_v52 = vadd.f32 %v2901_v5, %v4265_v2 }
 0x11c   :  { %v2903_v11 = vpop.f32.mrf.mxu1  ;;  %v2967_v12 = vpop.f32.mrf.mxu0 }
 0x11d   :  { %v4293_v13 = vadd.f32 %v2965_v6, %v1770_v52  ;;  %v2904_v16 = vadd.f32 %v2903_v11, %v2902_v7  ;;  %v2968_v17 = vadd.f32 %v2967_v12, %v2966_v10 }
 0x11e   :  { %v2905_v18 = vpop.f32.mrf.mxu1  ;;  %v2969_v19 = vpop.f32.mrf.mxu0 }
 0x11f   :  { %v1775_v58 = vadd.f32 %v2904_v16, %v4269_v8 }
 0x120   :  { %v2906_v20 = vpop.f32.mrf.mxu1  ;;  %v2970_v21 = vpop.f32.mrf.mxu0 }
 0x121   :  { %v4296_v22 = vadd.f32 %v2968_v17, %v1775_v58  ;;  %v2907_v23 = vadd.f32 %v2906_v20, %v2905_v18  ;;  %v2971_v24 = vadd.f32 %v2970_v21, %v2969_v19 }
 0x122   :  { %v2908_v25 = vpop.f32.mrf.mxu1  ;;  %v2972_v28 = vpop.f32.mrf.mxu0 }
 0x123   :  { %v1778_v2 = vadd.f32 %v2907_v23, %v4273_v14 }
 0x124   :  { %v2909_v30 = vpop.f32.mrf.mxu1  ;;  %v2973_v31 = vpop.f32.mrf.mxu0 }
 0x125   :  { %v4299_v32 = vadd.f32 %v2971_v24, %v1778_v2  ;;  %v2910_v33 = vadd.f32 %v2909_v30, %v2908_v25  ;;  %v2974_v34 = vadd.f32 %v2973_v31, %v2972_v28 }
 0x126   :  { %v2911_v35 = vpop.f32.mrf.mxu1  ;;  %v2975_v38 = vpop.f32.mrf.mxu0 }
 0x127   :  { %v1783_v8 = vadd.f32 %v2910_v33, %v4217_v27 }
 0x128   :  { %v2912_v40 = vpop.f32.mrf.mxu1  ;;  %v2976_v41 = vpop.f32.mrf.mxu0 }
 0x129   :  { %v4302_v44 = vadd.f32 %v2974_v34, %v1783_v8  ;;  %v2913_v45 = vadd.f32 %v2912_v40, %v2911_v35  ;;  %v2977_v26 = vadd.f32 %v2976_v41, %v2975_v38 }
 0x12a   :  { %v2914_v46 = vpop.f32.mrf.mxu1  ;;  %v2978_v47 = vpop.f32.mrf.mxu0 }
 0x12b   :  { %v1786_v14 = vadd.f32 %v2913_v45, %v4233_v37 }
 0x12c   :  { %v2915_v49 = vpop.f32.mrf.mxu1  ;;  %v2979_v50 = vpop.f32.mrf.mxu0 }
 0x12d   :  { %v4305_v51 = vadd.f32 %v2977_v26, %v1786_v14  ;;  %v2916_v54 = vadd.f32 %v2915_v49, %v2914_v46  ;;  %v2980_v36 = vadd.f32 %v2979_v50, %v2978_v47 }
 0x12e   :  { %v2917_v55 = vpop.f32.mrf.mxu1  ;;  %v2981_v56 = vpop.f32.mrf.mxu0 }
 0x12f   :  { %v1791_v27 = vadd.f32 %v2916_v54, %v4237_v43 }
 0x130   :  { %v2918_v60 = vpop.f32.mrf.mxu1  ;;  %v2982_v61 = vpop.f32.mrf.mxu0 }
 0x131   :  { %v4308_v62 = vadd.f32 %v2980_v36, %v1791_v27  ;;  %v2919_v63 = vadd.f32 %v2918_v60, %v2917_v55  ;;  %v2983_v42 = vadd.f32 %v2982_v61, %v2981_v56 }
 0x132   :  { %v2920_v0 = vpop.f32.mrf.mxu1  ;;  %v2984_v1 = vpop.f32.mrf.mxu0 }
 0x133   :  { %v1794_v37 = vadd.f32 %v2919_v63, %v4253_v53 }
 0x134   :  { %v2921_v5 = vpop.f32.mrf.mxu1  ;;  %v2985_v6 = vpop.f32.mrf.mxu0 }
 0x135   :  { %v4311_v7 = vadd.f32 %v2983_v42, %v1794_v37  ;;  %v2922_v10 = vadd.f32 %v2921_v5, %v2920_v0  ;;  %v2986_v52 = vadd.f32 %v2985_v6, %v2984_v1 }
 0x136   :  { %v2923_v11 = vpop.f32.mrf.mxu1  ;;  %v2987_v12 = vpop.f32.mrf.mxu0 }
 0x137   :  { %v1799_v43 = vadd.f32 %v2922_v10, %v4257_v59 }
 0x138   :  { %v2924_v16 = vpop.f32.mrf.mxu1  ;;  %v2988_v17 = vpop.f32.mrf.mxu0 }
 0x139   :  { %v4314_v18 = vadd.f32 %v2986_v52, %v1799_v43  ;;  %v2925_v19 = vadd.f32 %v2924_v16, %v2923_v11  ;;  %v2989_v58 = vadd.f32 %v2988_v17, %v2987_v12 }
 0x13a   :  { %v2926_v20 = vpop.f32.mrf.mxu1  ;;  %v2990_v21 = vpop.f32.mrf.mxu0 }
 0x13b   :  { %v1802_v53 = vadd.f32 %v2925_v19, %v4267_v3 }
 0x13c   :  { %v2927_v23 = vpop.f32.mrf.mxu1  ;;  %v2991_v24 = vpop.f32.mrf.mxu0 }
 0x13d   :  { %v4317_v25 = vadd.f32 %v2989_v58, %v1802_v53  ;;  %v2928_v28 = vadd.f32 %v2927_v23, %v2926_v20  ;;  %v2992_v2 = vadd.f32 %v2991_v24, %v2990_v21 }
 0x13e   :  { %v2929_v30 = vpop.f32.mrf.mxu1  ;;  %v2993_v31 = vpop.f32.mrf.mxu0 }
 0x13f   :  { %v1807_v59 = vadd.f32 %v2928_v28, %v4271_v9 }
 0x140   :  { %v2930_v33 = vpop.f32.mrf.mxu1  ;;  %v2994_v34 = vpop.f32.mrf.mxu0 }
 0x141   :  { %v4320_v35 = vadd.f32 %v2992_v2, %v1807_v59  ;;  %v2931_v38 = vadd.f32 %v2930_v33, %v2929_v30  ;;  %v2995_v8 = vadd.f32 %v2994_v34, %v2993_v31 }
 0x142   :  { %v3012_v40 = vpop.f32.mrf.mxu1  ;;  %v3076_v41 = vpop.f32.mrf.mxu0 }
 0x143   :  { %v1810_v3 = vadd.f32 %v2931_v38, %v4275_v15 }
 0x144   :  { %v3013_v45 = vpop.f32.mrf.mxu1  ;;  %v3077_v26 = vpop.f32.mrf.mxu0 }
 0x145   :  { %v4323_v46 = vadd.f32 %v2995_v8, %v1810_v3  ;;  %v3014_v47 = vadd.f32 %v3013_v45, %v3012_v40  ;;  %v3078_v14 = vadd.f32 %v3077_v26, %v3076_v41 }
 0x146   :  { %v4325_v49 = vpop.f32.mrf.mxu1  ;;  %v4327_v50 = vpop.f32.mrf.mxu0 }
 0x147   :  { %v1945_v9 = vadd.f32 %v3014_v47, %v4278_v29 }
 0x148   :  { %v4330_v54 = vpop.f32.mrf.mxu1  ;;  %v4332_v36 = vpop.f32.mrf.mxu0 }
 0x149   :  { %v4334_v55 = vadd.f32 %v3078_v14, %v1945_v9 }
 0x14a   :  { %v3018_v56 = vpop.f32.mrf.mxu1  ;;  %v3082_v15 = vpop.f32.mrf.mxu0 }
 0x14c   :  { %v3019_v27 = vpop.f32.mrf.mxu1  ;;  %v3083_v60 = vpop.f32.mrf.mxu0 }
 0x14d   :  { %v3020_v61 = vadd.f32 %v3019_v27, %v3018_v56  ;;  %v3084_v63 = vadd.f32 %v3083_v60, %v3082_v15 }
 0x14e   :  { %v4336_v42 = vpop.f32.mrf.mxu1  ;;  %v4338_v0 = vpop.f32.mrf.mxu0 }
 0x14f   :  { %v1953_v1 = vadd.f32 %v3020_v61, %v4284_v48 }
 0x150   :  { %v4341_v37 = vpop.f32.mrf.mxu1  ;;  %v4343_v29 = vpop.f32.mrf.mxu0 }
 0x151   :  { %v4345_v5 = vadd.f32 %v3084_v63, %v1953_v1 }
 0x152   :  { %v3024_v6 = vpop.f32.mrf.mxu1  ;;  %v3088_v10 = vpop.f32.mrf.mxu0 }
 0x154   :  { %v3025_v52 = vpop.f32.mrf.mxu1  ;;  %v3089_v11 = vpop.f32.mrf.mxu0 }
 0x155   :  { %v3026_v12 = vadd.f32 %v3025_v52, %v3024_v6  ;;  %v3090_v43 = vadd.f32 %v3089_v11, %v3088_v10 }
 0x156   :  { %v4347_v16 = vpop.f32.mrf.mxu1  ;;  %v4349_v17 = vpop.f32.mrf.mxu0 }
 0x157   :  { %v1961_v19 = vadd.f32 %v3026_v12, %v4290_v4 }
 0x158   :  { %v4352_v58 = vpop.f32.mrf.mxu1  ;;  %v4354_v48 = vpop.f32.mrf.mxu0 }
 0x159   :  { %v4356_v20 = vadd.f32 %v3090_v43, %v1961_v19 }
 0x15a   :  { %v3030_v21 = vpop.f32.mrf.mxu1  ;;  %v3094_v53 = vpop.f32.mrf.mxu0 }
 0x15c   :  { %v3031_v23 = vpop.f32.mrf.mxu1  ;;  %v3095_v24 = vpop.f32.mrf.mxu0 }
 0x15d   :  { %v3032_v28 = vadd.f32 %v3031_v23, %v3030_v21  ;;  %v3096_v2 = vadd.f32 %v3095_v24, %v3094_v53 }
 0x15e   :  { %v4358_v30 = vpop.f32.mrf.mxu1  ;;  %v4360_v31 = vpop.f32.mrf.mxu0 }
 0x15f   :  { %v1969_v59 = vadd.f32 %v3032_v28, %v4296_v22 }
 0x160   :  { %v4363_v33 = vpop.f32.mrf.mxu1  ;;  %v4365_v4 = vpop.f32.mrf.mxu0 }
 0x161   :  { %v4367_v34 = vadd.f32 %v3096_v2, %v1969_v59 }
 0x162   :  { %v3036_v38 = vpop.f32.mrf.mxu1  ;;  %v3100_v8 = vpop.f32.mrf.mxu0 }
 0x164   :  { %v3037_v40 = vpop.f32.mrf.mxu1  ;;  %v3101_v41 = vpop.f32.mrf.mxu0 }
 0x165   :  { %v3038_v3 = vadd.f32 %v3037_v40, %v3036_v38  ;;  %v3102_v45 = vadd.f32 %v3101_v41, %v3100_v8 }
 0x166   :  { %v4369_v26 = vpop.f32.mrf.mxu1  ;;  %v4371_v47 = vpop.f32.mrf.mxu0 }
 0x167   :  { %v1977_v14 = vadd.f32 %v3038_v3, %v4302_v44 }
 0x168   :  { %v4374_v9 = vpop.f32.mrf.mxu1  ;;  %v4376_v22 = vpop.f32.mrf.mxu0 }
 0x169   :  { %v4378_v56 = vadd.f32 %v3102_v45, %v1977_v14 }
 0x16a   :  { %v3042_v15 = vpop.f32.mrf.mxu1  ;;  %v3106_v27 = vpop.f32.mrf.mxu0 }
 0x16c   :  { %v3043_v60 = vpop.f32.mrf.mxu1  ;;  %v3107_v61 = vpop.f32.mrf.mxu0 }
 0x16d   :  { %v3044_v63 = vadd.f32 %v3043_v60, %v3042_v15  ;;  %v3108_v1 = vadd.f32 %v3107_v61, %v3106_v27 }
 0x16e   :  { %v4380_v6 = vpop.f32.mrf.mxu1  ;;  %v4382_v10 = vpop.f32.mrf.mxu0 }
 0x16f   :  { %v1985_v52 = vadd.f32 %v3044_v63, %v4308_v62 }
 0x170   :  { %v4385_v11 = vpop.f32.mrf.mxu1  ;;  %v4387_v44 = vpop.f32.mrf.mxu0 }
 0x171   :  { %v4389_v12 = vadd.f32 %v3108_v1, %v1985_v52  ;;  %v3017_v1 = vadd.f32 %v4330_v54, %v4325_v49  ;;  %v3023_v54 = vadd.f32 %v4341_v37, %v4336_v42 }
 0x172   :  { %v3048_v43 = vpop.f32.mrf.mxu1  ;;  %v3112_v19 = vpop.f32.mrf.mxu0 }
 0x174   :  { %v3049_v21 = vpop.f32.mrf.mxu1  ;;  %v3113_v53 = vpop.f32.mrf.mxu0 }
 0x175   :  { %v3050_v23 = vadd.f32 %v3049_v21, %v3048_v43  ;;  %v3114_v24 = vadd.f32 %v3113_v53, %v3112_v19 }
 0x176   :  { %v4391_v28 = vpop.f32.mrf.mxu1  ;;  %v4393_v2 = vpop.f32.mrf.mxu0 }
 0x177   :  { %v1993_v59 = vadd.f32 %v3050_v23, %v4314_v18  ;;  %v1948_v23 = vadd.f32 %v3017_v1, %v4281_v39 }
 0x178   :  { %v4396_v38 = vpop.f32.mrf.mxu1  ;;  %v4398_v62 = vpop.f32.mrf.mxu0 }
 0x179   :  { %v4400_v8 = vadd.f32 %v3114_v24, %v1993_v59 }
 0x17a   :  { %v3054_v40 = vpop.f32.mrf.mxu1  ;;  %v3118_v41 = vpop.f32.mrf.mxu0 }
 0x17c   :  { %v3055_v3 = vpop.f32.mrf.mxu1  ;;  %v3119_v45 = vpop.f32.mrf.mxu0 }
 0x17d   :  { %v3056_v14 = vadd.f32 %v3055_v3, %v3054_v40  ;;  %v3120_v61 = vadd.f32 %v3119_v45, %v3118_v41 }
 0x17e   :  { %v4402_v15 = vpop.f32.mrf.mxu1  ;;  %v4404_v27 = vpop.f32.mrf.mxu0 }
 0x17f   :  { %4496 = vst [vmem:[#allocation3_spill] sm:$0xff] %v4404_v27  ;;  %v2001_v60 = vadd.f32 %v3056_v14, %v4320_v35  ;;  %v3081_v35 = vadd.f32 %v4332_v36, %v4327_v50  ;;  %v1956_v27 = vadd.f32 %v3023_v54, %v4287_v57 }
 0x180   :  { %v4407_v63 = vpop.f32.mrf.mxu1  ;;  %v4409_v18 = vpop.f32.mrf.mxu0 }
 0x181   :  { %4497 = vst [vmem:[#allocation4_spill] sm:$0xff] %v4409_v18  ;;  %v4413_v52 = vadd.f32 %v3120_v61, %v2001_v60  ;;  %v2045_v49 = vadd.f32 %v3081_v35, %v1948_v23 }
 0x182   :  { %v3140_v43 = vpop.f32.mrf.mxu1  ;;  %v3204_v19 = vpop.f32.mrf.mxu0 }
 0x183   :  { %4498 = vst [vmem:[#allocation5_spill] sm:$0xff] %v4413_v52 }
 0x184   :  { %v3141_v21 = vpop.f32.mrf.mxu1  ;;  %v3205_v53 = vpop.f32.mrf.mxu0 }
 0x185   :  { %v3142_v24 = vadd.f32 %v3141_v21, %v3140_v43  ;;  %v3206_v3 = vadd.f32 %v3205_v53, %v3204_v19 }
 0x186   :  { %v3143_v59 = vpop.f32.mrf.mxu1  ;;  %v3207_v40 = vpop.f32.mrf.mxu0 }
 0x187   :  { %v2139_v41 = vadd.f32 %v3142_v24, %v4334_v55  ;;  %v3087_v55 = vadd.f32 %v4343_v29, %v4338_v0 }
 0x188   :  { %v3144_v45 = vpop.f32.mrf.mxu1  ;;  %v3208_v14 = vpop.f32.mrf.mxu0 }
 0x189   :  { %v3145_v60 = vadd.f32 %v3144_v45, %v3143_v59  ;;  %v2236_v61 = vadd.f32 %v3206_v3, %v2139_v41  ;;  %v3209_v1 = vadd.f32 %v3208_v14, %v3207_v40  ;;  %v3029_v40 = vadd.f32 %v4352_v58, %v4347_v16 }
 0x18a   :  { %v3146_v52 = vpop.f32.mrf.mxu1  ;;  %v3210_v18 = vpop.f32.mrf.mxu0  ;;  %v2053_v57 = vadd.f32 %v3087_v55, %v1956_v27 }
 0x18b   :  { %v2142_v39 = vadd.f32 %v3145_v60, %v2045_v49  ;;  %v2451_v19 = vmul.f32 %v2236_v61, %v2236_v61 }
 0x18c   :  { %v3147_v43 = vpop.f32.mrf.mxu1  ;;  %v3211_v21 = vpop.f32.mrf.mxu0 }
 0x18d   :  { %v2239_v50 = vadd.f32 %v3209_v1, %v2142_v39  ;;  %v3148_v36 = vadd.f32 %v3147_v43, %v3146_v52  ;;  %v3212_v53 = vadd.f32 %v3211_v21, %v3210_v18  ;;  %v3093_v1 = vadd.f32 %v4354_v48, %v4349_v17 }
 0x18e   :  { %v3149_v23 = vpop.f32.mrf.mxu1  ;;  %v3213_v24 = vpop.f32.mrf.mxu0 }
 0x18f   :  { %v2760_v42 = vpack.c.bf16 %v2239_v50, %v2236_v61  ;;  %v2429_v37 = vadd.f32 %v2239_v50, %v2236_v61  ;;  %v2452_v59 = vmul.f32 %v2239_v50, %v2239_v50  ;;  %v2147_v35 = vadd.f32 %v3148_v36, %v4345_v5 }
 0x190   :  { %v3150_v41 = vpop.f32.mrf.mxu1  ;;  %v3214_v3 = vpop.f32.mrf.mxu0  ;;  %v1964_v5 = vadd.f32 %v3029_v40, %v4293_v13  ;;  %v3035_v13 = vadd.f32 %v4363_v33, %v4358_v30  ;;  %v3099_v33 = vadd.f32 %v4365_v4, %v4360_v31 }
 0x191   :  { %2761 = vst [vmem:[%s4493_s2] sm:$0xff] %v2760_v42   ;;  %v2467_v0 = vadd.f32 %v2452_v59, %v2451_v19  ;;  %v2244_v29 = vadd.f32 %v3212_v53, %v2147_v35  ;;  %v3151_v18 = vadd.f32 %v3150_v41, %v3149_v23  ;;  %v3215_v60 = vadd.f32 %v3214_v3, %v3213_v24 }
 0x192   :  { %v3152_v52 = vpop.f32.mrf.mxu1  ;;  %v3216_v45 = vpop.f32.mrf.mxu0  ;;  %v2061_v23 = vadd.f32 %v3093_v1, %v1964_v5 }
 0x193   :  { %v2430_v14 = vadd.f32 %v2429_v37, %v2244_v29  ;;  %v2453_v49 = vmul.f32 %v2244_v29, %v2244_v29  ;;  %v2150_v54 = vadd.f32 %v3151_v18, %v2053_v57 }
 0x194   :  { %v3153_v61 = vpop.f32.mrf.mxu1  ;;  %v3217_v16 = vpop.f32.mrf.mxu0 }
 0x195   :  { %v2468_v58 = vadd.f32 %v2467_v0, %v2453_v49  ;;  %v2247_v39 = vadd.f32 %v3215_v60, %v2150_v54  ;;  %v3154_v27 = vadd.f32 %v3153_v61, %v3152_v52  ;;  %v3218_v43 = vadd.f32 %v3217_v16, %v3216_v45 }
 0x196   :  { %v3155_v21 = vpop.f32.mrf.mxu1  ;;  %v3219_v50 = vpop.f32.mrf.mxu0  ;;  %v3041_v16 = vadd.f32 %v4374_v9, %v4369_v26 }
 0x197   :  { %v2765_v36 = vpack.c.bf16 %v2247_v39, %v2244_v29  ;;  %v2431_v55 = vadd.f32 %v2430_v14, %v2247_v39  ;;  %v2454_v19 = vmul.f32 %v2247_v39, %v2247_v39  ;;  %v2155_v53 = vadd.f32 %v3154_v27, %v4356_v20 }
 0x198   :  { %v3156_v24 = vpop.f32.mrf.mxu1  ;;  %v3220_v42 = vpop.f32.mrf.mxu0  ;;  %v1972_v29 = vadd.f32 %v3035_v13, %v4299_v32 }
 0x199   :  { %2797 = vst [vmem:[%s4493_s2 + $0x8] sm:$0xff] %v2765_v36   ;;  %v2469_v37 = vadd.f32 %v2468_v58, %v2454_v19  ;;  %v2252_v17 = vadd.f32 %v3218_v43, %v2155_v53  ;;  %v3157_v48 = vadd.f32 %v3156_v24, %v3155_v21  ;;  %v3221_v57 = vadd.f32 %v3220_v42, %v3219_v50 }
 0x19a   :  { %v3158_v59 = vpop.f32.mrf.mxu1  ;;  %v3222_v35 = vpop.f32.mrf.mxu0  ;;  %v2069_v32 = vadd.f32 %v3099_v33, %v1972_v29  ;;  %v3105_v24 = vadd.f32 %v4376_v22, %v4371_v47 }
 0x19b   :  { %v2432_v40 = vadd.f32 %v2431_v55, %v2252_v17  ;;  %v2455_v41 = vmul.f32 %v2252_v17, %v2252_v17  ;;  %v2158_v3 = vadd.f32 %v3157_v48, %v2061_v23 }
 0x19c   :  { %v3159_v20 = vpop.f32.mrf.mxu1  ;;  %v3223_v0 = vpop.f32.mrf.mxu0 }
 0x19d   :  { %v2470_v18 = vadd.f32 %v2469_v37, %v2455_v41  ;;  %v2255_v52 = vadd.f32 %v3221_v57, %v2158_v3  ;;  %v3160_v30 = vadd.f32 %v3159_v20, %v3158_v59  ;;  %v3224_v45 = vadd.f32 %v3223_v0, %v3222_v35 }
 0x19e   :  { %v3161_v14 = vpop.f32.mrf.mxu1  ;;  %v3225_v49 = vpop.f32.mrf.mxu0 }
 0x19f   :  { %v2770_v54 = vpack.c.bf16 %v2255_v52, %v2252_v17  ;;  %v2433_v60 = vadd.f32 %v2432_v40, %v2255_v52  ;;  %v2456_v5 = vmul.f32 %v2255_v52, %v2255_v52  ;;  %v2163_v61 = vadd.f32 %v3160_v30, %v4367_v34 }
 0x1a0   :  { %v3162_v58 = vpop.f32.mrf.mxu1  ;;  %v3226_v39 = vpop.f32.mrf.mxu0  ;;  %v1980_v34 = vadd.f32 %v3041_v16, %v4305_v51  ;;  %v3047_v51 = vadd.f32 %v4385_v11, %v4380_v6  ;;  %v3111_v11 = vadd.f32 %v4387_v44, %v4382_v10 }
 0x1a1   :  { %2798 = vst [vmem:[%s4493_s2 + $0x10] sm:$0xff] %v2770_v54   ;;  %v2471_v27 = vadd.f32 %v2470_v18, %v2456_v5  ;;  %v2260_v31 = vadd.f32 %v3224_v45, %v2163_v61  ;;  %v3163_v4 = vadd.f32 %v3162_v58, %v3161_v14  ;;  %v3227_v55 = vadd.f32 %v3226_v39, %v3225_v49 }
 0x1a2   :  { %v3164_v1 = vpop.f32.mrf.mxu1  ;;  %v3228_v43 = vpop.f32.mrf.mxu0  ;;  %v2077_v40 = vadd.f32 %v3105_v24, %v1980_v34  ;;  %v1988_v45 = vadd.f32 %v3047_v51, %v4311_v7 }
 0x1a3   :  { %v2434_v21 = vadd.f32 %v2433_v60, %v2260_v31  ;;  %v2457_v50 = vmul.f32 %v2260_v31, %v2260_v31  ;;  %v2166_v36 = vadd.f32 %v3163_v4, %v2069_v32  ;;  %v3053_v32 = vadd.f32 %v4396_v38, %v4391_v28 }
 0x1a4   :  { %v3165_v19 = vpop.f32.mrf.mxu1  ;;  %v3229_v26 = vpop.f32.mrf.mxu0  ;;  %v2085_v7 = vadd.f32 %v3111_v11, %v1988_v45  ;;  %v4501_v11 = vld [vmem:[#allocation5_spill] sm:$0xff] }
 0x1a5   :  { %v2472_v9 = vadd.f32 %v2471_v27, %v2457_v50  ;;  %v2263_v53 = vadd.f32 %v3227_v55, %v2166_v36  ;;  %v3166_v23 = vadd.f32 %v3165_v19, %v3164_v1  ;;  %v3230_v42 = vadd.f32 %v3229_v26, %v3228_v43 }
 0x1a6   :  { %v3167_v13 = vpop.f32.mrf.mxu1  ;;  %v3231_v37 = vpop.f32.mrf.mxu0 }
 0x1a7   :  { %v2775_v17 = vpack.c.bf16 %v2263_v53, %v2260_v31  ;;  %v2435_v48 = vadd.f32 %v2434_v21, %v2263_v53  ;;  %v2458_v59 = vmul.f32 %v2263_v53, %v2263_v53  ;;  %v2171_v35 = vadd.f32 %v3166_v23, %v4378_v56 }
 0x1a8   :  { %v3168_v41 = vpop.f32.mrf.mxu1  ;;  %v3232_v3 = vpop.f32.mrf.mxu0 }
 0x1a9   :  { %2799 = vst [vmem:[%s4493_s2 + $0x18] sm:$0xff] %v2775_v17   ;;  %v2473_v57 = vadd.f32 %v2472_v9, %v2458_v59  ;;  %v2268_v47 = vadd.f32 %v3230_v42, %v2171_v35  ;;  %v3169_v22 = vadd.f32 %v3168_v41, %v3167_v13  ;;  %v3233_v30 = vadd.f32 %v3232_v3, %v3231_v37 }
 0x1aa   :  { %v3170_v20 = vpop.f32.mrf.mxu1  ;;  %v3234_v0 = vpop.f32.mrf.mxu0  ;;  %v3117_v9 = vadd.f32 %v4398_v62, %v4393_v2 }
 0x1ab   :  { %v2436_v29 = vadd.f32 %v2435_v48, %v2268_v47  ;;  %v2459_v18 = vmul.f32 %v2268_v47, %v2268_v47  ;;  %v2174_v52 = vadd.f32 %v3169_v22, %v2077_v40 }
 0x1ac   :  { %v3171_v56 = vpop.f32.mrf.mxu1  ;;  %v3235_v33 = vpop.f32.mrf.mxu0 }
 0x1ad   :  { %v2474_v14 = vadd.f32 %v2473_v57, %v2459_v18  ;;  %v2271_v49 = vadd.f32 %v3233_v30, %v2174_v52  ;;  %v3172_v6 = vadd.f32 %v3171_v56, %v3170_v20  ;;  %v3236_v54 = vadd.f32 %v3235_v33, %v3234_v0  ;;  %v4500_v52 = vld [vmem:[#allocation4_spill] sm:$0xff] }
 0x1ae   :  { %v3173_v60 = vpop.f32.mrf.mxu1  ;;  %v3237_v5 = vpop.f32.mrf.mxu0 }
 0x1af   :  { %v2780_v61 = vpack.c.bf16 %v2271_v49, %v2268_v47  ;;  %v2437_v16 = vadd.f32 %v2436_v29, %v2271_v49  ;;  %v2460_v58 = vmul.f32 %v2271_v49, %v2271_v49  ;;  %v2179_v39 = vadd.f32 %v3172_v6, %v4389_v12 }
 0x1b0   :  { %v3174_v27 = vpop.f32.mrf.mxu1  ;;  %v3238_v31 = vpop.f32.mrf.mxu0  ;;  %v1996_v12 = vadd.f32 %v3053_v32, %v4317_v25  ;;  %v3059_v25 = vadd.f32 %v4407_v63, %v4402_v15  ;;  %v4499_v63 = vld [vmem:[#allocation3_spill] sm:$0xff] }
 0x1b1   :  { %2800 = vst [vmem:[%s4493_s2 + $0x20] sm:$0xff] %v2780_v61   ;;  %v2475_v4 = vadd.f32 %v2474_v14, %v2460_v58  ;;  %v2276_v10 = vadd.f32 %v3236_v54, %v2179_v39  ;;  %v3175_v44 = vadd.f32 %v3174_v27, %v3173_v60  ;;  %v3239_v55 = vadd.f32 %v3238_v31, %v3237_v5 }
 0x1b2   :  { %v3176_v1 = vpop.f32.mrf.mxu1  ;;  %v3240_v43 = vpop.f32.mrf.mxu0  ;;  %v2093_v48 = vadd.f32 %v3117_v9, %v1996_v12  ;;  %v2004_v0 = vadd.f32 %v3059_v25, %v4323_v46  ;;  %v3123_v30 = vadd.f32 %v4500_v52, %v4499_v63 }
 0x1b3   :  { %v2438_v21 = vadd.f32 %v2437_v16, %v2276_v10  ;;  %v2461_v50 = vmul.f32 %v2276_v10, %v2276_v10  ;;  %v2182_v36 = vadd.f32 %v3175_v44, %v2085_v7 }
 0x1b4   :  { %v3177_v34 = vpop.f32.mrf.mxu1  ;;  %v3241_v28 = vpop.f32.mrf.mxu0  ;;  %v2101_v61 = vadd.f32 %v3123_v30, %v2004_v0 }
 0x1b5   :  { %v2476_v38 = vadd.f32 %v2475_v4, %v2461_v50  ;;  %v2279_v19 = vadd.f32 %v3239_v55, %v2182_v36  ;;  %v3178_v26 = vadd.f32 %v3177_v34, %v3176_v1  ;;  %v3242_v53 = vadd.f32 %v3241_v28, %v3240_v43 }
 0x1b6   :  { %v3179_v23 = vpop.f32.mrf.mxu1  ;;  %v3243_v24 = vpop.f32.mrf.mxu0 }
 0x1b7   :  { %v2785_v42 = vpack.c.bf16 %v2279_v19, %v2276_v10  ;;  %v2439_v13 = vadd.f32 %v2438_v21, %v2279_v19  ;;  %v2462_v37 = vmul.f32 %v2279_v19, %v2279_v19  ;;  %v2187_v17 = vadd.f32 %v3178_v26, %v4400_v8 }
 0x1b8   :  { %v3180_v59 = vpop.f32.mrf.mxu1  ;;  %v3244_v35 = vpop.f32.mrf.mxu0 }
 0x1b9   :  { %2801 = vst [vmem:[%s4493_s2 + $0x28] sm:$0xff] %v2785_v42   ;;  %v2477_v40 = vadd.f32 %v2476_v38, %v2462_v37  ;;  %v2284_v2 = vadd.f32 %v3242_v53, %v2187_v17  ;;  %v3181_v62 = vadd.f32 %v3180_v59, %v3179_v23  ;;  %v3245_v22 = vadd.f32 %v3244_v35, %v3243_v24 }
 0x1ba   :  { %v3182_v41 = vpop.f32.mrf.mxu1  ;;  %v3246_v3 = vpop.f32.mrf.mxu0 }
 0x1bb   :  { %v2440_v51 = vadd.f32 %v2439_v13, %v2284_v2  ;;  %v2463_v57 = vmul.f32 %v2284_v2, %v2284_v2  ;;  %v2190_v47 = vadd.f32 %v3181_v62, %v2093_v48 }
 0x1bc   :  { %v3183_v8 = vpop.f32.mrf.mxu1  ;;  %v3247_v20 = vpop.f32.mrf.mxu0 }
 0x1bd   :  { %v2478_v29 = vadd.f32 %v2477_v40, %v2463_v57  ;;  %v2287_v18 = vadd.f32 %v3245_v22, %v2190_v47  ;;  %v3184_v15 = vadd.f32 %v3183_v8, %v3182_v41  ;;  %v3248_v56 = vadd.f32 %v3247_v20, %v3246_v3 }
 0x1be   :  { %v3185_v33 = vpop.f32.mrf.mxu1  ;;  %v3249_v45 = vpop.f32.mrf.mxu0 }
 0x1bf   :  { %v2790_v14 = vpack.c.bf16 %v2287_v18, %v2284_v2  ;;  %v2441_v49 = vadd.f32 %v2440_v51, %v2287_v18  ;;  %v2464_v6 = vmul.f32 %v2287_v18, %v2287_v18  ;;  %v2195_v54 = vadd.f32 %v3184_v15, %v4501_v11 }
 0x1c0   :  { %v3186_v60 = vpop.f32.mrf.mxu1  ;;  %v3250_v5 = vpop.f32.mrf.mxu0 }
 0x1c1   :  { %2802 = vst [vmem:[%s4493_s2 + $0x30] sm:$0xff] %v2790_v14   ;;  %v2479_v46 = vadd.f32 %v2478_v29, %v2464_v6  ;;  %v2292_v16 = vadd.f32 %v3248_v56, %v2195_v54  ;;  %v3187_v58 = vadd.f32 %v3186_v60, %v3185_v33  ;;  %v3251_v31 = vadd.f32 %v3250_v5, %v3249_v45 }
 0x1c3   :  { %v2442_v39 = vadd.f32 %v2441_v49, %v2292_v16  ;;  %v2465_v32 = vmul.f32 %v2292_v16, %v2292_v16  ;;  %v2198_v27 = vadd.f32 %v3187_v58, %v2101_v61 }
 0x1c5   :  { %v2480_v7 = vadd.f32 %v2479_v46, %v2465_v32  ;;  %v2295_v4 = vadd.f32 %v3251_v31, %v2198_v27 }
 0x1c7   :  { %v2795_v10 = vpack.c.bf16 %v2295_v4, %v2292_v16  ;;  %v2443_v44 = vadd.f32 %v2442_v39, %v2295_v4  ;;  %v2466_v1 = vmul.f32 %v2295_v4, %v2295_v4 }
 0x1c9   :  { %2803 = vst [vmem:[%s4493_s2 + $0x38] sm:$0xff] %v2795_v10   ;;  %v2444_v43 = vrot.slane %v2443_v44, 4  ;;  %v2481_v21 = vadd.f32 %v2480_v7, %v2466_v1 }
 0x1cb   :  { %v2445_v50 = vadd.f32 %v2444_v43, %v2443_v44  ;;  %v2482_v36 = vrot.slane %v2481_v21, 4 }
 0x1cd   :  { %v2446_v55 = vrot.slane %v2445_v50, 2  ;;  %v2483_v12 = vadd.f32 %v2482_v36, %v2481_v21 }
 0x1cf   :  { %v2447_v34 = vadd.f32 %v2446_v55, %v2445_v50  ;;  %v2484_v28 = vrot.slane %v2483_v12, 2 }
 0x1d1   :  { %v2448_v38 = vrot.slane %v2447_v34, 1  ;;  %v2485_v19 = vadd.f32 %v2484_v28, %v2483_v12 }
 0x1d3   :  { %v2449_v26 = vadd.f32 %v2448_v38, %v2447_v34  ;;  %v2486_v9 = vrot.slane %v2485_v19, 1 }
 0x1d5   :  { %2450 = vst [vmem:[%s4494_s3] sm:$0x1] %v2449_v26  ;;  %v2487_v53 = vadd.f32 %v2486_v9, %v2485_v19 }
 0x1d7   :  { %2488 = vst [vmem:[%s4495_s4] sm:$0x1] %v2487_v53 }

// kernel: _lambda_.13
= control target key start
LH: loop header
LB: loop body
LE: loop exit
PB: predicated region body
PF: predicated region fallthrough
CT: control target
= control target key end

     0   :  { %s422_s0 = inlined_call_operand.vmem [shape: bf16[128,128], index: 0, kind: input, shape index: {}]   ;;  %s423_s1 = inlined_call_operand.vmem [shape: f32[1,128], index: 1, kind: input, shape index: {}]   ;;  %s424_s2 = inlined_call_operand.vmem [shape: f32[1,128], index: 2, kind: input, shape index: {}]   ;;  %s425_s3 = inlined_call_operand.vmem [shape: bf16[128,128], index: 3, kind: output, shape index: {}]  }
   0x1   :  { %v227_v0 = vld [vmem:[%s422_s0] sm:$0xff]   ;;  %v298_v4 = vld [vmem:[%s422_s0 + $0x8] sm:$0xff]   ;;  %v299_v5 = vld [vmem:[%s422_s0 + $0x10] sm:$0xff]  }
   0x2   :  { %v338_v1 = vld [vmem:[%s423_s1] ss:$0 sm:$0xff]  ;;  %v228_v2 = vunpack.c.l.bf16 %v227_v0  ;;  %v229_v3 = vunpack.c.h.bf16 %v227_v0  ;;  %v300_v6 = vld [vmem:[%s422_s0 + $0x18] sm:$0xff]   ;;  %v232_v8 = vunpack.c.l.bf16 %v298_v4  ;;  %v233_v9 = vunpack.c.h.bf16 %v298_v4  ;;  %v302_v33 = vld [vmem:[%s422_s0 + $0x28] sm:$0xff]  }
   0x3   :  { %v352_v7 = vld [vmem:[%s424_s2] ss:$0 sm:$0xff]  ;;  %v236_v10 = vunpack.c.l.bf16 %v299_v5  ;;  %v237_v11 = vunpack.c.h.bf16 %v299_v5  ;;  %v240_v14 = vunpack.c.l.bf16 %v300_v6  ;;  %v241_v15 = vunpack.c.h.bf16 %v300_v6  ;;  %v303_v38 = vld [vmem:[%s422_s0 + $0x30] sm:$0xff]   ;;  %v304_v43 = vld [vmem:[%s422_s0 + $0x38] sm:$0xff]  }
   0x4   :  { %v53_v12 = vmul.f32 %v228_v2, %v338_v1  ;;  %v54_v13 = vmul.f32 %v229_v3, %v338_v1  ;;  %v55_v16 = vmul.f32 %v232_v8, %v338_v1  ;;  %v56_v17 = vmul.f32 %v233_v9, %v338_v1  ;;  %v301_v28 = vld [vmem:[%s422_s0 + $0x20] sm:$0xff]  }
   0x5   :  { %v57_v18 = vmul.f32 %v236_v10, %v338_v1  ;;  %v58_v19 = vmul.f32 %v237_v11, %v338_v1  ;;  %v59_v22 = vmul.f32 %v240_v14, %v338_v1  ;;  %v60_v23 = vmul.f32 %v241_v15, %v338_v1 }
   0x6   :  { %v76_v20 = vadd.f32 %v352_v7, %v53_v12  ;;  %v77_v21 = vadd.f32 %v352_v7, %v54_v13  ;;  %v78_v24 = vadd.f32 %v352_v7, %v55_v16  ;;  %v79_v25 = vadd.f32 %v352_v7, %v56_v17 }
   0x7   :  { %v80_v26 = vadd.f32 %v352_v7, %v57_v18  ;;  %v81_v27 = vadd.f32 %v352_v7, %v58_v19  ;;  %v82_v31 = vadd.f32 %v352_v7, %v59_v22  ;;  %v83_v32 = vadd.f32 %v352_v7, %v60_v23 }
   0x8   :  { %v92_v29 = vmax.f32 %v76_v20, 0.0  ;;  %v93_v30 = vmax.f32 %v77_v21, 0.0  ;;  %v94_v34 = vmax.f32 %v78_v24, 0.0  ;;  %v95_v35 = vmax.f32 %v79_v25, 0.0 }
   0x9   :  { %v96_v36 = vmax.f32 %v80_v26, 0.0  ;;  %v97_v37 = vmax.f32 %v81_v27, 0.0  ;;  %v98_v40 = vmax.f32 %v82_v31, 0.0  ;;  %v99_v41 = vmax.f32 %v83_v32, 0.0 }
   0xa   :  { %v261_v39 = vpack.c.bf16 %v93_v30, %v92_v29  ;;  %v244_v42 = vunpack.c.l.bf16 %v301_v28  ;;  %v266_v44 = vpack.c.bf16 %v95_v35, %v94_v34  ;;  %v245_v46 = vunpack.c.h.bf16 %v301_v28 }
   0xb   :  { %v271_v45 = vpack.c.bf16 %v97_v37, %v96_v36  ;;  %v248_v47 = vunpack.c.l.bf16 %v302_v33  ;;  %v276_v48 = vpack.c.bf16 %v99_v41, %v98_v40  ;;  %v249_v50 = vunpack.c.h.bf16 %v302_v33 }
   0xc   :  { %262 = vst [vmem:[%s425_s3] sm:$0xff] %v261_v39   ;;  %v61_v49 = vmul.f32 %v244_v42, %v338_v1  ;;  %v252_v51 = vunpack.c.l.bf16 %v303_v38  ;;  %305 = vst [vmem:[%s425_s3 + $0x8] sm:$0xff] %v266_v44   ;;  %v62_v52 = vmul.f32 %v245_v46, %v338_v1  ;;  %v253_v54 = vunpack.c.h.bf16 %v303_v38 }
   0xd   :  { %306 = vst [vmem:[%s425_s3 + $0x10] sm:$0xff] %v271_v45   ;;  %v63_v53 = vmul.f32 %v248_v47, %v338_v1  ;;  %v256_v55 = vunpack.c.l.bf16 %v304_v43  ;;  %307 = vst [vmem:[%s425_s3 + $0x18] sm:$0xff] %v276_v48   ;;  %v64_v57 = vmul.f32 %v249_v50, %v338_v1  ;;  %v257_v59 = vunpack.c.h.bf16 %v304_v43 }
   0xe   :  { %v84_v56 = vadd.f32 %v352_v7, %v61_v49  ;;  %v65_v58 = vmul.f32 %v252_v51, %v338_v1  ;;  %v85_v60 = vadd.f32 %v352_v7, %v62_v52  ;;  %v66_v62 = vmul.f32 %v253_v54, %v338_v1 }
   0xf   :  { %v86_v61 = vadd.f32 %v352_v7, %v63_v53  ;;  %v67_v63 = vmul.f32 %v256_v55, %v338_v1  ;;  %v87_v2 = vadd.f32 %v352_v7, %v64_v57  ;;  %v68_v4 = vmul.f32 %v257_v59, %v338_v1 }
  0x10   :  { %v100_v0 = vmax.f32 %v84_v56, 0.0  ;;  %v88_v3 = vadd.f32 %v352_v7, %v65_v58  ;;  %v101_v5 = vmax.f32 %v85_v60, 0.0  ;;  %v89_v8 = vadd.f32 %v352_v7, %v66_v62 }
  0x11   :  { %v102_v6 = vmax.f32 %v86_v61, 0.0  ;;  %v90_v9 = vadd.f32 %v352_v7, %v67_v63  ;;  %v103_v10 = vmax.f32 %v87_v2, 0.0  ;;  %v91_v12 = vadd.f32 %v352_v7, %v68_v4 }
  0x12   :  { %v104_v11 = vmax.f32 %v88_v3, 0.0  ;;  %v281_v13 = vpack.c.bf16 %v101_v5, %v100_v0  ;;  %v105_v14 = vmax.f32 %v89_v8, 0.0 }
  0x13   :  { %v106_v15 = vmax.f32 %v90_v9, 0.0  ;;  %v286_v16 = vpack.c.bf16 %v103_v10, %v102_v6  ;;  %v107_v17 = vmax.f32 %v91_v12, 0.0 }
  0x14   :  { %308 = vst [vmem:[%s425_s3 + $0x20] sm:$0xff] %v281_v13   ;;  %v291_v1 = vpack.c.bf16 %v105_v14, %v104_v11 }
  0x15   :  { %309 = vst [vmem:[%s425_s3 + $0x28] sm:$0xff] %v286_v16   ;;  %v296_v18 = vpack.c.bf16 %v107_v17, %v106_v15 }
  0x16   :  { %310 = vst [vmem:[%s425_s3 + $0x30] sm:$0xff] %v291_v1  }
  0x17   :  { %311 = vst [vmem:[%s425_s3 + $0x38] sm:$0xff] %v296_v18  }

// kernel: _lambda_.15
= control target key start
LH: loop header
LB: loop body
LE: loop exit
PB: predicated region body
PF: predicated region fallthrough
CT: control target
= control target key end

     0   :  { %s541_s0 = inlined_call_operand.vmem [shape: bf16[128,128], index: 0, kind: input, shape index: {}]   ;;  %s542_s1 = inlined_call_operand.vmem [shape: f32[1,128], index: 1, kind: input, shape index: {}]   ;;  %s543_s2 = inlined_call_operand.vmem [shape: f32[1,128], index: 2, kind: input, shape index: {}]   ;;  %s544_s3 = inlined_call_operand.vmem [shape: bf16[128,128], index: 3, kind: input, shape index: {}]   ;;  %s545_s4 = inlined_call_operand.vmem [shape: bf16[128,128], index: 4, kind: output, shape index: {}]  }
   0x1   :  { %v278_v0 = vld [vmem:[%s541_s0] sm:$0xff]   ;;  %v381_v5 = vld [vmem:[%s541_s0 + $0x8] sm:$0xff]   ;;  %v382_v12 = vld [vmem:[%s541_s0 + $0x10] sm:$0xff]  }
   0x2   :  { %v433_v1 = vld [vmem:[%s542_s1] ss:$0 sm:$0xff]  ;;  %v279_v2 = vunpack.c.l.bf16 %v278_v0  ;;  %v280_v3 = vunpack.c.h.bf16 %v278_v0  ;;  %v388_v6 = vld [vmem:[%s544_s3 + $0x8] sm:$0xff]   ;;  %v283_v10 = vunpack.c.l.bf16 %v381_v5  ;;  %v284_v11 = vunpack.c.h.bf16 %v381_v5  ;;  %v389_v13 = vld [vmem:[%s544_s3 + $0x10] sm:$0xff]  }
   0x3   :  { %v310_v4 = vld [vmem:[%s544_s3] sm:$0xff]   ;;  %v315_v16 = vunpack.c.l.bf16 %v388_v6  ;;  %v316_v17 = vunpack.c.h.bf16 %v388_v6  ;;  %v287_v20 = vunpack.c.l.bf16 %v382_v12  ;;  %v288_v21 = vunpack.c.h.bf16 %v382_v12  ;;  %v383_v22 = vld [vmem:[%s541_s0 + $0x18] sm:$0xff]   ;;  %v385_v54 = vld [vmem:[%s541_s0 + $0x28] sm:$0xff]  }
   0x4   :  { %v447_v7 = vld [vmem:[%s543_s2] ss:$0 sm:$0xff]  ;;  %v311_v8 = vunpack.c.l.bf16 %v310_v4  ;;  %v312_v9 = vunpack.c.h.bf16 %v310_v4  ;;  %v56_v14 = vmul.f32 %v279_v2, %v433_v1  ;;  %v57_v15 = vmul.f32 %v280_v3, %v433_v1  ;;  %v390_v39 = vld [vmem:[%s544_s3 + $0x18] sm:$0xff]   ;;  %v392_v63 = vld [vmem:[%s544_s3 + $0x28] sm:$0xff]  }
   0x5   :  { %v58_v18 = vmul.f32 %v283_v10, %v433_v1  ;;  %v59_v19 = vmul.f32 %v284_v11, %v433_v1  ;;  %v319_v25 = vunpack.c.l.bf16 %v389_v13  ;;  %v320_v26 = vunpack.c.h.bf16 %v389_v13  ;;  %v384_v48 = vld [vmem:[%s541_s0 + $0x20] sm:$0xff]   ;;  %v386_v5 = vld [vmem:[%s541_s0 + $0x30] sm:$0xff]  }
   0x6   :  { %v79_v23 = vadd.f32 %v447_v7, %v56_v14  ;;  %v80_v24 = vadd.f32 %v447_v7, %v57_v15  ;;  %v60_v29 = vmul.f32 %v287_v20, %v433_v1  ;;  %v61_v30 = vmul.f32 %v288_v21, %v433_v1  ;;  %v391_v49 = vld [vmem:[%s544_s3 + $0x20] sm:$0xff]   ;;  %v393_v11 = vld [vmem:[%s544_s3 + $0x30] sm:$0xff]   ;;  %v387_v20 = vld [vmem:[%s541_s0 + $0x38] sm:$0xff]  }
   0x7   :  { %v81_v27 = vadd.f32 %v447_v7, %v58_v18  ;;  %v82_v28 = vadd.f32 %v447_v7, %v59_v19  ;;  %v291_v33 = vunpack.c.l.bf16 %v383_v22  ;;  %v292_v34 = vunpack.c.h.bf16 %v383_v22 }
   0x8   :  { %v127_v31 = vadd.f32 %v311_v8, %v79_v23  ;;  %v128_v32 = vadd.f32 %v312_v9, %v80_v24  ;;  %v83_v37 = vadd.f32 %v447_v7, %v60_v29  ;;  %v84_v38 = vadd.f32 %v447_v7, %v61_v30 }
   0x9   :  { %v129_v35 = vadd.f32 %v315_v16, %v81_v27  ;;  %v130_v36 = vadd.f32 %v316_v17, %v82_v28  ;;  %v62_v42 = vmul.f32 %v291_v33, %v433_v1  ;;  %v63_v43 = vmul.f32 %v292_v34, %v433_v1  ;;  %v394_v33 = vld [vmem:[%s544_s3 + $0x38] sm:$0xff]  }
   0xa   :  { %v143_v40 = vmax.f32 %v127_v31, 0.0  ;;  %v144_v41 = vmax.f32 %v128_v32, 0.0  ;;  %v131_v46 = vadd.f32 %v319_v25, %v83_v37  ;;  %v132_v47 = vadd.f32 %v320_v26, %v84_v38 }
   0xb   :  { %v145_v44 = vmax.f32 %v129_v35, 0.0  ;;  %v146_v45 = vmax.f32 %v130_v36, 0.0  ;;  %v85_v51 = vadd.f32 %v447_v7, %v62_v42  ;;  %v86_v52 = vadd.f32 %v447_v7, %v63_v43 }
   0xc   :  { %v344_v50 = vpack.c.bf16 %v144_v41, %v143_v40  ;;  %v323_v53 = vunpack.c.l.bf16 %v390_v39  ;;  %v147_v56 = vmax.f32 %v131_v46, 0.0  ;;  %v148_v57 = vmax.f32 %v132_v47, 0.0 }
   0xd   :  { %v349_v55 = vpack.c.bf16 %v146_v45, %v145_v44  ;;  %v324_v58 = vunpack.c.h.bf16 %v390_v39  ;;  %v295_v60 = vunpack.c.l.bf16 %v384_v48  ;;  %v296_v61 = vunpack.c.h.bf16 %v384_v48 }
   0xe   :  { %345 = vst [vmem:[%s545_s4] sm:$0xff] %v344_v50   ;;  %v133_v59 = vadd.f32 %v323_v53, %v85_v51  ;;  %v327_v62 = vunpack.c.l.bf16 %v391_v49  ;;  %v354_v0 = vpack.c.bf16 %v148_v57, %v147_v56  ;;  %v328_v3 = vunpack.c.h.bf16 %v391_v49 }
   0xf   :  { %395 = vst [vmem:[%s545_s4 + $0x8] sm:$0xff] %v349_v55   ;;  %v134_v2 = vadd.f32 %v324_v58, %v86_v52  ;;  %v299_v4 = vunpack.c.l.bf16 %v385_v54  ;;  %v64_v8 = vmul.f32 %v295_v60, %v433_v1  ;;  %v65_v9 = vmul.f32 %v296_v61, %v433_v1 }
  0x10   :  { %v149_v6 = vmax.f32 %v133_v59, 0.0  ;;  %v300_v10 = vunpack.c.h.bf16 %v385_v54  ;;  %396 = vst [vmem:[%s545_s4 + $0x10] sm:$0xff] %v354_v0   ;;  %v331_v14 = vunpack.c.l.bf16 %v392_v63  ;;  %v332_v15 = vunpack.c.h.bf16 %v392_v63 }
  0x11   :  { %v150_v12 = vmax.f32 %v134_v2, 0.0  ;;  %v66_v13 = vmul.f32 %v299_v4, %v433_v1  ;;  %v87_v16 = vadd.f32 %v447_v7, %v64_v8  ;;  %v88_v17 = vadd.f32 %v447_v7, %v65_v9 }
  0x12   :  { %v67_v18 = vmul.f32 %v300_v10, %v433_v1  ;;  %v303_v19 = vunpack.c.l.bf16 %v386_v5  ;;  %v304_v23 = vunpack.c.h.bf16 %v386_v5  ;;  %v335_v24 = vunpack.c.l.bf16 %v393_v11 }
  0x13   :  { %v359_v21 = vpack.c.bf16 %v150_v12, %v149_v6  ;;  %v89_v22 = vadd.f32 %v447_v7, %v66_v13  ;;  %v135_v25 = vadd.f32 %v327_v62, %v87_v16  ;;  %v136_v26 = vadd.f32 %v328_v3, %v88_v17 }
  0x14   :  { %v90_v27 = vadd.f32 %v447_v7, %v67_v18  ;;  %v68_v28 = vmul.f32 %v303_v19, %v433_v1  ;;  %v69_v30 = vmul.f32 %v304_v23, %v433_v1  ;;  %v336_v31 = vunpack.c.h.bf16 %v393_v11 }
  0x15   :  { %397 = vst [vmem:[%s545_s4 + $0x18] sm:$0xff] %v359_v21   ;;  %v137_v29 = vadd.f32 %v331_v14, %v89_v22  ;;  %v307_v32 = vunpack.c.l.bf16 %v387_v20  ;;  %v151_v34 = vmax.f32 %v135_v25, 0.0  ;;  %v152_v35 = vmax.f32 %v136_v26, 0.0 }
  0x16   :  { %v138_v36 = vadd.f32 %v332_v15, %v90_v27  ;;  %v91_v37 = vadd.f32 %v447_v7, %v68_v28  ;;  %v92_v39 = vadd.f32 %v447_v7, %v69_v30  ;;  %v308_v40 = vunpack.c.h.bf16 %v387_v20 }
  0x17   :  { %v153_v38 = vmax.f32 %v137_v29, 0.0  ;;  %v70_v41 = vmul.f32 %v307_v32, %v433_v1  ;;  %v364_v42 = vpack.c.bf16 %v152_v35, %v151_v34  ;;  %v339_v45 = vunpack.c.l.bf16 %v394_v33 }
  0x18   :  { %v154_v43 = vmax.f32 %v138_v36, 0.0  ;;  %v139_v44 = vadd.f32 %v335_v24, %v91_v37  ;;  %v140_v46 = vadd.f32 %v336_v31, %v92_v39  ;;  %v71_v47 = vmul.f32 %v308_v40, %v433_v1 }
  0x19   :  { %v93_v48 = vadd.f32 %v447_v7, %v70_v41  ;;  %v340_v49 = vunpack.c.h.bf16 %v394_v33  ;;  %398 = vst [vmem:[%s545_s4 + $0x20] sm:$0xff] %v364_v42  }
  0x1a   :  { %v369_v50 = vpack.c.bf16 %v154_v43, %v153_v38  ;;  %v155_v51 = vmax.f32 %v139_v44, 0.0  ;;  %v156_v52 = vmax.f32 %v140_v46, 0.0  ;;  %v94_v53 = vadd.f32 %v447_v7, %v71_v47 }
  0x1b   :  { %v141_v54 = vadd.f32 %v339_v45, %v93_v48 }
  0x1c   :  { %399 = vst [vmem:[%s545_s4 + $0x28] sm:$0xff] %v369_v50   ;;  %v374_v55 = vpack.c.bf16 %v156_v52, %v155_v51  ;;  %v142_v56 = vadd.f32 %v340_v49, %v94_v53 }
  0x1d   :  { %v157_v1 = vmax.f32 %v141_v54, 0.0 }
  0x1e   :  { %400 = vst [vmem:[%s545_s4 + $0x30] sm:$0xff] %v374_v55   ;;  %v158_v57 = vmax.f32 %v142_v56, 0.0 }
  0x20   :  { %v379_v58 = vpack.c.bf16 %v158_v57, %v157_v1 }
  0x22   :  { %401 = vst [vmem:[%s545_s4 + $0x38] sm:$0xff] %v379_v58  }

</bundles_post_ra>
